<compile_context>
chip_gen: v5e
topology: v5e:2x2
jax: 0.10.0
libtpu: 0.0.40
codegen_flags: <defaults>
</compile_context>

<pallas_src>
import functools
import numpy as np
import jax
import jax.numpy as jnp
from jax.experimental import pallas as pl
from jax.experimental.pallas import tpu as pltpu


def _round_up(x, m):
    return ((x + m - 1) // m) * m


def _cdiv(a, b):
    return (a + b - 1) // b


# ----------------------------------------------------------------------------
# Kernel: one (freq-tile, batch, time-tile) grid step.
#   hm_ref     : (tt, hop)      hop-rows [i*tt, i*tt+tt)        (compute dtype)
#   hh_ref     : (halo, hop)    hop-rows [i*tt+tt, i*tt+tt+halo)(compute dtype)
#   w_ref      : (n_fft, 2*tn)  fused [Wr_tile | Wi_tile] DFT weights
#   o_ref      : (tt, tn)       power-spectrogram tile (f32)
#   frames_ref : (tt, n_fft)    VMEM scratch: framed audio tile
# ----------------------------------------------------------------------------
def _spec_kernel(hm_ref, hh_ref, w_ref, o_ref, frames_ref, *, hop, k_hops, tn):
    main = hm_ref[...]                                      # (tt, hop)
    frames_ref[:, 0:hop] = main
    if k_hops > 1:
        halo = hh_ref[...]                                  # (halo, hop)
        for j in range(1, k_hops):                          # static unroll
            # frame t, columns [j*hop, (j+1)*hop) == hop-row (i*tt + t + j)
            frames_ref[:, j * hop:(j + 1) * hop] = jnp.concatenate(
                [main[j:, :], halo[:j, :]], axis=0)
    # One K = n_fft matmul, f32 accumulation on the MXU.
    acc = jnp.dot(frames_ref[...], w_ref[...], preferred_element_type=jnp.float32)
    real = acc[:, :tn]
    imag = acc[:, tn:]
    o_ref[...] = (real * real + imag * imag).astype(o_ref.dtype)


def spectrogram_pallas(x, *, n_fft=2048, hop_length=None, center=True,
                       pad_mode="reflect", power=2.0,
                       compute_dtype=jnp.bfloat16):
    """x: (B, S) audio -> (B, 1, T, n_fft//2 + 1) power spectrogram."""
    if hop_length is None:
        hop_length = n_fft // 4
    hop = int(hop_length)
    out_channels = n_fft // 2 + 1
    B, S = x.shape
    x = x.astype(jnp.float32)

    if n_fft % hop != 0:
        # TODO(synk): general hop (not dividing n_fft) needs a host-framing fallback.
        raise NotImplementedError("spectrogram_pallas requires hop_length to divide n_fft")
    k_hops = n_fft // hop
    itemsize = np.dtype(compute_dtype).itemsize

    # --- windowed DFT weights (periodic Hann; matches STFT.__init__) ---
    n = np.arange(n_fft)
    window = 0.5 - 0.5 * np.cos(2.0 * np.pi * n / n_fft)
    freq = np.arange(out_channels)
    ang = 2.0 * np.pi * np.outer(n, freq) / n_fft               # (n_fft, F)
    wr = (np.cos(ang) * window[:, None]).astype(np.float32)
    wi = (-np.sin(ang) * window[:, None]).astype(np.float32)

    # --- per-generation VMEM budget -> frequency tiling (usually n_tiles = 1) ---
    try:
        vmem_cap = int(pltpu.get_tpu_info().vmem_capacity_bytes)
    except Exception:
        vmem_cap = 64 * 1024 * 1024                             # conservative (v7x)
    w_budget = max(vmem_cap // 6, 2 * 1024 * 1024)              # single-buffered weight block
    N_pad = _round_up(out_channels, 128)
    n_tiles = max(1, _cdiv(n_fft * 2 * N_pad * itemsize, w_budget))
    tn = _round_up(_cdiv(N_pad, n_tiles), 128)
    n_tiles = _cdiv(N_pad, tn)
    N_pad2 = n_tiles * tn

    wr_p = np.zeros((n_fft, N_pad2), np.float32); wr_p[:, :out_channels] = wr
    wi_p = np.zeros((n_fft, N_pad2), np.float32); wi_p[:, :out_channels] = wi
    w_fused = np.concatenate(
        [np.concatenate([wr_p[:, j * tn:(j + 1) * tn],
                         wi_p[:, j * tn:(j + 1) * tn]], axis=1)
         for j in range(n_tiles)], axis=1)                      # (n_fft, n_tiles*2*tn)
    w_fused = jnp.asarray(w_fused).astype(compute_dtype)        # cast once (bf16 default)

    # --- center pad, hop-reshape, cast ONCE to the matmul operand dtype ---
    if center:
        x = jnp.pad(x, ((0, 0), (n_fft // 2, n_fft // 2)), mode=pad_mode)
    P = x.shape[1]
    T = (P - n_fft) // hop + 1

    # Time tile / halo (sublane granularity 16 so bf16 packing stays aligned).
    halo = _round_up(max(k_hops - 1, 1), 16)
    tt = 256 if T >= 256 else _round_up(T, 16)
    tt = max(tt, _round_up(k_hops, 16))
    tt = _round_up(tt, halo)
    halo_ratio = tt // halo
    T_tiles = _cdiv(T, tt)
    T_pad = T_tiles * tt
    num_hops_pad = _round_up(max(T_pad + halo, _cdiv(P, hop)), 16)

    x_p = jnp.pad(x, ((0, 0), (0, num_hops_pad * hop - P)))
    h = x_p.astype(compute_dtype).reshape(B, num_hops_pad, hop)

    grid = (n_tiles, B, T_tiles)
    kernel = functools.partial(_spec_kernel, hop=hop, k_hops=k_hops, tn=tn)

    # VMEM footprint (assume double-buffered weights so the fallback also fits).
    w_bytes = n_fft * 2 * tn * itemsize
    footprint = (2 * w_bytes
                 + 2 * (tt + halo) * hop * itemsize             # main + halo buffers
                 + 2 * tt * tn * 4                              # output tiles
                 + tt * n_fft * itemsize                        # frames scratch
                 + tt * 2 * tn * 4)                             # matmul result temp
    vmem_limit = int(min(max(footprint + 8 * 1024 * 1024, 24 * 1024 * 1024),
                         vmem_cap * 4 // 5))
    vmem_limit = max(vmem_limit, footprint + 2 * 1024 * 1024)

    flops = int(2 * B * T_pad * n_fft * (2 * N_pad2) + 3 * B * T_pad * N_pad2)
    bytes_accessed = int(B * T_tiles * n_tiles * (tt + halo) * hop * itemsize
                         + w_fused.size * itemsize
                         + B * T_pad * N_pad2 * 4)

    def build(single_buffer_weights):
        if single_buffer_weights:
            w_spec = pl.BlockSpec((n_fft, 2 * tn), lambda jn, b, i: (0, jn),
                                  pipeline_mode=pl.Buffered(1))
        else:
            w_spec = pl.BlockSpec((n_fft, 2 * tn), lambda jn, b, i: (0, jn))
        return pl.pallas_call(
            kernel,
            out_shape=jax.ShapeDtypeStruct((B, T_pad, N_pad2), jnp.float32),
            grid_spec=pltpu.PrefetchScalarGridSpec(
                num_scalar_prefetch=0,
                grid=grid,
                in_specs=[
                    # main strip: hop-rows [i*tt, i*tt + tt)
                    pl.BlockSpec((None, tt, hop), lambda jn, b, i: (b, i, 0)),
                    # halo strip: hop-rows [i*tt + tt, i*tt + tt + halo)
                    pl.BlockSpec((None, halo, hop),
                                 lambda jn, b, i: (b, (i + 1) * halo_ratio, 0)),
                    w_spec,
                ],
                out_specs=pl.BlockSpec((None, tt, tn), lambda jn, b, i: (b, i, jn)),
                scratch_shapes=[pltpu.VMEM((tt, n_fft), compute_dtype)],
            ),
            compiler_params=pltpu.CompilerParams(
                dimension_semantics=("parallel", "parallel", "parallel"),
                vmem_limit_bytes=vmem_limit),
            cost_estimate=pl.CostEstimate(flops=flops, transcendentals=0,
                                          bytes_accessed=bytes_accessed),
        )

    try:
        out = build(True)(h, h, w_fused)
    except Exception:
        # pl.Buffered(1) not accepted on this version: default double-buffering.
        out = build(False)(h, h, w_fused)

    spec = out[:, :T, :out_channels][:, None, :, :]             # (B, 1, T, F)
    if power != 2.0:
        spec = spec ** (power / 2.0)
    return spec


# ----------------------------------------------------------------------------
# Pure-JAX reference (same math, host framing, no Pallas)
# ----------------------------------------------------------------------------
def spectrogram_ref(x, *, n_fft, hop_length=None, center=True):
    if hop_length is None:
        hop_length = n_fft // 4
    out_channels = n_fft // 2 + 1
    n = np.arange(n_fft)
    window = 0.5 - 0.5 * np.cos(2.0 * np.pi * n / n_fft)
    freq = np.arange(out_channels)
    ang = 2.0 * np.pi * np.outer(n, freq) / n_fft
    wr = jnp.asarray((np.cos(ang) * window[:, None]).astype(np.float32))
    wi = jnp.asarray((-np.sin(ang) * window[:, None]).astype(np.float32))
    if center:
        x = jnp.pad(x, ((0, 0), (n_fft // 2, n_fft // 2)), mode="reflect")
    T = (x.shape[1] - n_fft) // hop_length + 1
    idx = np.arange(T)[:, None] * hop_length + np.arange(n_fft)[None, :]
    frames = x[:, idx].astype(jnp.float32)                      # (B, T, n_fft)
    real = jnp.einsum("btn,nf->btf", frames, wr)
    imag = jnp.einsum("btn,nf->btf", frames, wi)
    return (real ** 2 + imag ** 2)[:, None, :, :]


if __name__ == "__main__":
    key = jax.random.PRNGKey(0)
    B, S = 2, 2048
    n_fft = 512          # small stand-in for the module default n_fft=2048 (hop = 128)
    x = jax.random.normal(key, (B, S), dtype=jnp.float32)

    ref = jax.block_until_ready(spectrogram_ref(x, n_fft=n_fft))
    T = S // (n_fft // 4) + 1
    F = n_fft // 2 + 1

    # f32-operand path: tight numerical check against the pure-JAX reference.
    out_f32 = jax.block_until_ready(
        spectrogram_pallas(x, n_fft=n_fft, compute_dtype=jnp.float32))
    assert out_f32.shape == (B, 1, T, F), out_f32.shape
    np.testing.assert_allclose(np.asarray(out_f32), np.asarray(ref),
                               rtol=1e-3, atol=5e-3)

    # Default bf16-operand path (fast): looser tolerance (operand quantization only;
    # accumulation stays f32).
    out_bf16 = jax.block_until_ready(spectrogram_pallas(x, n_fft=n_fft))
    assert out_bf16.shape == (B, 1, T, F), out_bf16.shape
    np.testing.assert_allclose(np.asarray(out_bf16), np.asarray(ref),
                               rtol=1e-1, atol=5.0)

    print("KERNEL_OK")
</pallas_src>

<mosaic_0001>
module attributes {stable_mosaic.version = 11 : i64} {
  func.func @_spec_kernel(%arg0: i32, %arg1: i32, %arg2: i32, %arg3: memref<1x32x128xf32, #tpu.memory_space<vmem>>, %arg4: memref<1x16x128xf32, #tpu.memory_space<vmem>>, %arg5: memref<512x768xf32, #tpu.memory_space<vmem>>, %arg6: memref<1x32x384xf32, #tpu.memory_space<vmem>>, %arg7: memref<32x512xf32, #tpu.memory_space<vmem>>) attributes {dimension_semantics = [#tpu.dimension_semantics<parallel>, #tpu.dimension_semantics<parallel>, #tpu.dimension_semantics<parallel>], iteration_bounds = array<i64: 1, 2, 1>, scalar_prefetch = 0 : i64, scratch_operands = 1 : i64, tpu.core_type = #tpu.core_type<tc>, window_params = [{transform_indices = @transform_0, window_bounds = array<i64: 1, 32, 128>}, {transform_indices = @transform_1, window_bounds = array<i64: 1, 16, 128>}, {pipeline_mode = #tpu.pipeline_mode<synchronous>, transform_indices = @transform_2, window_bounds = array<i64: 512, 768>}, {transform_indices = @transform_3, window_bounds = array<i64: 1, 32, 384>}]} {
    %c0 = arith.constant 0 : index
    %c0_0 = arith.constant 0 : index
    %c0_1 = arith.constant 0 : index
    %0 = vector.load %arg3[%c0, %c0_0, %c0_1] : memref<1x32x128xf32, #tpu.memory_space<vmem>>, vector<1x32x128xf32>
    %1 = vector.shape_cast %0 : vector<1x32x128xf32> to vector<32x128xf32>
    %c0_2 = arith.constant 0 : index
    %c0_3 = arith.constant 0 : index
    %2 = vector.load %arg7[%c0_2, %c0_3] : memref<32x512xf32, #tpu.memory_space<vmem>>, vector<32x128xf32>
    tpu.vector_store %arg7[%c0_2, %c0_3], %1 {strides = array<i32>} : memref<32x512xf32, #tpu.memory_space<vmem>>, vector<32x128xf32>,
    %c0_4 = arith.constant 0 : index
    %c0_5 = arith.constant 0 : index
    %c0_6 = arith.constant 0 : index
    %3 = vector.load %arg4[%c0_4, %c0_5, %c0_6] : memref<1x16x128xf32, #tpu.memory_space<vmem>>, vector<1x16x128xf32>
    %4 = vector.shape_cast %3 : vector<1x16x128xf32> to vector<16x128xf32>
    %5 = vector.extract_strided_slice %1 {offsets = [1, 0], sizes = [31, 128], strides = [1, 1]} : vector<32x128xf32> to vector<31x128xf32>
    %6 = vector.extract_strided_slice %4 {offsets = [0, 0], sizes = [1, 128], strides = [1, 1]} : vector<16x128xf32> to vector<1x128xf32>
    %7 = tpu.concatenate %5, %6 in 0 : vector<31x128xf32>, vector<1x128xf32> -> vector<32x128xf32>
    %c0_7 = arith.constant 0 : index
    %c128 = arith.constant 128 : index
    %8 = vector.load %arg7[%c0_7, %c128] : memref<32x512xf32, #tpu.memory_space<vmem>>, vector<32x128xf32>
    tpu.vector_store %arg7[%c0_7, %c128], %7 {strides = array<i32>} : memref<32x512xf32, #tpu.memory_space<vmem>>, vector<32x128xf32>,
    %9 = vector.extract_strided_slice %1 {offsets = [2, 0], sizes = [30, 128], strides = [1, 1]} : vector<32x128xf32> to vector<30x128xf32>
    %10 = vector.extract_strided_slice %4 {offsets = [0, 0], sizes = [2, 128], strides = [1, 1]} : vector<16x128xf32> to vector<2x128xf32>
    %11 = tpu.concatenate %9, %10 in 0 : vector<30x128xf32>, vector<2x128xf32> -> vector<32x128xf32>
    %c0_8 = arith.constant 0 : index
    %c256 = arith.constant 256 : index
    %12 = vector.load %arg7[%c0_8, %c256] : memref<32x512xf32, #tpu.memory_space<vmem>>, vector<32x128xf32>
    tpu.vector_store %arg7[%c0_8, %c256], %11 {strides = array<i32>} : memref<32x512xf32, #tpu.memory_space<vmem>>, vector<32x128xf32>,
    %13 = vector.extract_strided_slice %1 {offsets = [3, 0], sizes = [29, 128], strides = [1, 1]} : vector<32x128xf32> to vector<29x128xf32>
    %14 = vector.extract_strided_slice %4 {offsets = [0, 0], sizes = [3, 128], strides = [1, 1]} : vector<16x128xf32> to vector<3x128xf32>
    %15 = tpu.concatenate %13, %14 in 0 : vector<29x128xf32>, vector<3x128xf32> -> vector<32x128xf32>
    %c0_9 = arith.constant 0 : index
    %c384 = arith.constant 384 : index
    %16 = vector.load %arg7[%c0_9, %c384] : memref<32x512xf32, #tpu.memory_space<vmem>>, vector<32x128xf32>
    tpu.vector_store %arg7[%c0_9, %c384], %15 {strides = array<i32>} : memref<32x512xf32, #tpu.memory_space<vmem>>, vector<32x128xf32>,
    %c0_10 = arith.constant 0 : index
    %c0_11 = arith.constant 0 : index
    %17 = vector.load %arg7[%c0_10, %c0_11] : memref<32x512xf32, #tpu.memory_space<vmem>>, vector<32x512xf32>
    %c0_12 = arith.constant 0 : index
    %c0_13 = arith.constant 0 : index
    %18 = vector.load %arg5[%c0_12, %c0_13] : memref<512x768xf32, #tpu.memory_space<vmem>>, vector<512x768xf32>
    %cst = arith.constant dense<0.000000e+00> : vector<32x768xf32>
    %19 = tpu.matmul %17, %18, %cst {dimension_numbers = #tpu.dot_dimension_numbers<[1], [0], [0], [1], [0, 0, 1, 1], [], []>} : vector<32x512xf32>, vector<512x768xf32>, vector<32x768xf32> -> vector<32x768xf32>
    %20 = vector.extract_strided_slice %19 {offsets = [0, 0], sizes = [32, 384], strides = [1, 1]} : vector<32x768xf32> to vector<32x384xf32>
    %21 = vector.extract_strided_slice %19 {offsets = [0, 384], sizes = [32, 384], strides = [1, 1]} : vector<32x768xf32> to vector<32x384xf32>
    %22 = arith.mulf %20, %20 : vector<32x384xf32>
    %23 = arith.mulf %21, %21 : vector<32x384xf32>
    %24 = arith.addf %22, %23 : vector<32x384xf32>
    %c0_14 = arith.constant 0 : index
    %c0_15 = arith.constant 0 : index
    %c0_16 = arith.constant 0 : index
    %25 = vector.load %arg6[%c0_14, %c0_15, %c0_16] : memref<1x32x384xf32, #tpu.memory_space<vmem>>, vector<1x32x384xf32>
    %26 = vector.shape_cast %25 : vector<1x32x384xf32> to vector<32x384xf32>
    %27 = vector.shape_cast %24 : vector<32x384xf32> to vector<1x32x384xf32>
    tpu.vector_store %arg6[%c0_14, %c0_15, %c0_16], %27 {strides = array<i32>} : memref<1x32x384xf32, #tpu.memory_space<vmem>>, vector<1x32x384xf32>,
    return
  }
  func.func @transform_0(%arg0: i32, %arg1: i32, %arg2: i32) -> (i32, i32, i32) {
    %c0_i32 = arith.constant 0 : i32
    %c0_i32_0 = arith.constant 0 : i32
    return %arg1, %arg2, %c0_i32 : i32, i32, i32
  }
  func.func @transform_1(%arg0: i32, %arg1: i32, %arg2: i32) -> (i32, i32, i32) {
    %c1_i32 = arith.constant 1 : i32
    %0 = arith.addi %arg2, %c1_i32 : i32
    %c2_i32 = arith.constant 2 : i32
    %1 = arith.muli %0, %c2_i32 : i32
    %c0_i32 = arith.constant 0 : i32
    %c0_i32_0 = arith.constant 0 : i32
    return %arg1, %1, %c0_i32 : i32, i32, i32
  }
  func.func @transform_2(%arg0: i32, %arg1: i32, %arg2: i32) -> (i32, i32) {
    %c0_i32 = arith.constant 0 : i32
    %c0_i32_0 = arith.constant 0 : i32
    return %c0_i32, %arg0 : i32, i32
  }
  func.func @transform_3(%arg0: i32, %arg1: i32, %arg2: i32) -> (i32, i32, i32) {
    %c0_i32 = arith.constant 0 : i32
    return %arg1, %arg2, %arg0 : i32, i32, i32
  }
}

module attributes {stable_mosaic.version = 11 : i64} {
  func.func @_spec_kernel(%arg0: i32, %arg1: i32, %arg2: i32, %arg3: memref<1x32x128xf32, #tpu.memory_space<vmem>>, %arg4: memref<1x16x128xf32, #tpu.memory_space<vmem>>, %arg5: memref<512x768xf32, #tpu.memory_space<vmem>>, %arg6: memref<1x32x384xf32, #tpu.memory_space<vmem>>, %arg7: memref<32x512xf32, #tpu.memory_space<vmem>>) attributes {dimension_semantics = [#tpu.dimension_semantics<parallel>, #tpu.dimension_semantics<parallel>, #tpu.dimension_semantics<parallel>], iteration_bounds = array<i64: 1, 2, 1>, scalar_prefetch = 0 : i64, scratch_operands = 1 : i64, tpu.core_type = #tpu.core_type<tc>, window_params = [{transform_indices = @transform_0, window_bounds = array<i64: 1, 32, 128>}, {transform_indices = @transform_1, window_bounds = array<i64: 1, 16, 128>}, {transform_indices = @transform_2, window_bounds = array<i64: 512, 768>}, {transform_indices = @transform_3, window_bounds = array<i64: 1, 32, 384>}]} {
    %c0 = arith.constant 0 : index
    %c0_0 = arith.constant 0 : index
    %c0_1 = arith.constant 0 : index
    %0 = vector.load %arg3[%c0, %c0_0, %c0_1] : memref<1x32x128xf32, #tpu.memory_space<vmem>>, vector<1x32x128xf32>
    %1 = vector.shape_cast %0 : vector<1x32x128xf32> to vector<32x128xf32>
    %c0_2 = arith.constant 0 : index
    %c0_3 = arith.constant 0 : index
    %2 = vector.load %arg7[%c0_2, %c0_3] : memref<32x512xf32, #tpu.memory_space<vmem>>, vector<32x128xf32>
    tpu.vector_store %arg7[%c0_2, %c0_3], %1 {strides = array<i32>} : memref<32x512xf32, #tpu.memory_space<vmem>>, vector<32x128xf32>,
    %c0_4 = arith.constant 0 : index
    %c0_5 = arith.constant 0 : index
    %c0_6 = arith.constant 0 : index
    %3 = vector.load %arg4[%c0_4, %c0_5, %c0_6] : memref<1x16x128xf32, #tpu.memory_space<vmem>>, vector<1x16x128xf32>
    %4 = vector.shape_cast %3 : vector<1x16x128xf32> to vector<16x128xf32>
    %5 = vector.extract_strided_slice %1 {offsets = [1, 0], sizes = [31, 128], strides = [1, 1]} : vector<32x128xf32> to vector<31x128xf32>
    %6 = vector.extract_strided_slice %4 {offsets = [0, 0], sizes = [1, 128], strides = [1, 1]} : vector<16x128xf32> to vector<1x128xf32>
    %7 = tpu.concatenate %5, %6 in 0 : vector<31x128xf32>, vector<1x128xf32> -> vector<32x128xf32>
    %c0_7 = arith.constant 0 : index
    %c128 = arith.constant 128 : index
    %8 = vector.load %arg7[%c0_7, %c128] : memref<32x512xf32, #tpu.memory_space<vmem>>, vector<32x128xf32>
    tpu.vector_store %arg7[%c0_7, %c128], %7 {strides = array<i32>} : memref<32x512xf32, #tpu.memory_space<vmem>>, vector<32x128xf32>,
    %9 = vector.extract_strided_slice %1 {offsets = [2, 0], sizes = [30, 128], strides = [1, 1]} : vector<32x128xf32> to vector<30x128xf32>
    %10 = vector.extract_strided_slice %4 {offsets = [0, 0], sizes = [2, 128], strides = [1, 1]} : vector<16x128xf32> to vector<2x128xf32>
    %11 = tpu.concatenate %9, %10 in 0 : vector<30x128xf32>, vector<2x128xf32> -> vector<32x128xf32>
    %c0_8 = arith.constant 0 : index
    %c256 = arith.constant 256 : index
    %12 = vector.load %arg7[%c0_8, %c256] : memref<32x512xf32, #tpu.memory_space<vmem>>, vector<32x128xf32>
    tpu.vector_store %arg7[%c0_8, %c256], %11 {strides = array<i32>} : memref<32x512xf32, #tpu.memory_space<vmem>>, vector<32x128xf32>,
    %13 = vector.extract_strided_slice %1 {offsets = [3, 0], sizes = [29, 128], strides = [1, 1]} : vector<32x128xf32> to vector<29x128xf32>
    %14 = vector.extract_strided_slice %4 {offsets = [0, 0], sizes = [3, 128], strides = [1, 1]} : vector<16x128xf32> to vector<3x128xf32>
    %15 = tpu.concatenate %13, %14 in 0 : vector<29x128xf32>, vector<3x128xf32> -> vector<32x128xf32>
    %c0_9 = arith.constant 0 : index
    %c384 = arith.constant 384 : index
    %16 = vector.load %arg7[%c0_9, %c384] : memref<32x512xf32, #tpu.memory_space<vmem>>, vector<32x128xf32>
    tpu.vector_store %arg7[%c0_9, %c384], %15 {strides = array<i32>} : memref<32x512xf32, #tpu.memory_space<vmem>>, vector<32x128xf32>,
    %c0_10 = arith.constant 0 : index
    %c0_11 = arith.constant 0 : index
    %17 = vector.load %arg7[%c0_10, %c0_11] : memref<32x512xf32, #tpu.memory_space<vmem>>, vector<32x512xf32>
    %c0_12 = arith.constant 0 : index
    %c0_13 = arith.constant 0 : index
    %18 = vector.load %arg5[%c0_12, %c0_13] : memref<512x768xf32, #tpu.memory_space<vmem>>, vector<512x768xf32>
    %cst = arith.constant dense<0.000000e+00> : vector<32x768xf32>
    %19 = tpu.matmul %17, %18, %cst {dimension_numbers = #tpu.dot_dimension_numbers<[1], [0], [0], [1], [0, 0, 1, 1], [], []>} : vector<32x512xf32>, vector<512x768xf32>, vector<32x768xf32> -> vector<32x768xf32>
    %20 = vector.extract_strided_slice %19 {offsets = [0, 0], sizes = [32, 384], strides = [1, 1]} : vector<32x768xf32> to vector<32x384xf32>
    %21 = vector.extract_strided_slice %19 {offsets = [0, 384], sizes = [32, 384], strides = [1, 1]} : vector<32x768xf32> to vector<32x384xf32>
    %22 = arith.mulf %20, %20 : vector<32x384xf32>
    %23 = arith.mulf %21, %21 : vector<32x384xf32>
    %24 = arith.addf %22, %23 : vector<32x384xf32>
    %c0_14 = arith.constant 0 : index
    %c0_15 = arith.constant 0 : index
    %c0_16 = arith.constant 0 : index
    %25 = vector.load %arg6[%c0_14, %c0_15, %c0_16] : memref<1x32x384xf32, #tpu.memory_space<vmem>>, vector<1x32x384xf32>
    %26 = vector.shape_cast %25 : vector<1x32x384xf32> to vector<32x384xf32>
    %27 = vector.shape_cast %24 : vector<32x384xf32> to vector<1x32x384xf32>
    tpu.vector_store %arg6[%c0_14, %c0_15, %c0_16], %27 {strides = array<i32>} : memref<1x32x384xf32, #tpu.memory_space<vmem>>, vector<1x32x384xf32>,
    return
  }
  func.func @transform_0(%arg0: i32, %arg1: i32, %arg2: i32) -> (i32, i32, i32) {
    %c0_i32 = arith.constant 0 : i32
    %c0_i32_0 = arith.constant 0 : i32
    return %arg1, %arg2, %c0_i32 : i32, i32, i32
  }
  func.func @transform_1(%arg0: i32, %arg1: i32, %arg2: i32) -> (i32, i32, i32) {
    %c1_i32 = arith.constant 1 : i32
    %0 = arith.addi %arg2, %c1_i32 : i32
    %c2_i32 = arith.constant 2 : i32
    %1 = arith.muli %0, %c2_i32 : i32
    %c0_i32 = arith.constant 0 : i32
    %c0_i32_0 = arith.constant 0 : i32
    return %arg1, %1, %c0_i32 : i32, i32, i32
  }
  func.func @transform_2(%arg0: i32, %arg1: i32, %arg2: i32) -> (i32, i32) {
    %c0_i32 = arith.constant 0 : i32
    %c0_i32_0 = arith.constant 0 : i32
    return %c0_i32, %arg0 : i32, i32
  }
  func.func @transform_3(%arg0: i32, %arg1: i32, %arg2: i32) -> (i32, i32, i32) {
    %c0_i32 = arith.constant 0 : i32
    return %arg1, %arg2, %arg0 : i32, i32, i32
  }
}

</mosaic_0001>

<bundles_post_ra>
// kernel: tpu_custom_call.1
= control target key start
LH: loop header
LB: loop body
LE: loop exit
PB: predicated region body
PF: predicated region fallthrough
CT: control target
= control target key end

     0   :  { %s2392_s0 = inlined_call_operand.hbm [shape: f32[2,48,128], index: 0, kind: input, shape index: {}]   ;;  %s2393_s1 = inlined_call_operand.hbm [shape: f32[2,48,128], index: 1, kind: input, shape index: {}]   ;;  %s2394_s2 = inlined_call_operand.hbm [shape: f32[512,768], index: 2, kind: input, shape index: {}]   ;;  %s2395_s3 = inlined_call_operand.hbm [shape: f32[2,32,384], index: 3, kind: output, shape index: {}]  }
   0x1   :  { %2398 = sst [smem:[#allocation17_spill]] %s2394_s2 }
   0x2   :  { %8 = vsyncpa [#allocation4], 0 }
   0x3   :  { %10 = vsyncpa [#allocation4 + $0x1], 0 }
   0x4   :  { %11 = vsyncpa [#allocation7], 0 }
   0x5   :  { %13 = vsyncpa [#allocation7 + $0x1], 0 }
   0x6   :  { %14 = vsyncpa [#allocation5], 0 }
   0x7   :  { %16 = vsyncpa [#allocation5 + $0x1], 0  ;;  %s1994_s12 = smov 0   ;;  %s1996_s13 = smov 0  }
   0x8   :  { %s1998_s14 = smov 0   ;;  %s2000_s15 = smov 0  }
   0x9   :  { %s2002_s16 = smov 0   ;;  %s2004_s17 = smov 0  }
   0xa LB: > { %2399 = sst [smem:[#allocation14_spill]] %s1961_s16  ;;  %s2025_s18 = sadd.s32 4294967295, %s1965_s17   ;;  %s1965_s17 = sphi %s2004_s17, %s22_s17   ;;  %s1961_s16 = sphi %s2002_s16, %s2410_s16   ;;  %s1957_s15 = sphi %s2000_s15, %s2409_s15   ;;  %s1953_s14 = sphi %s1998_s14, %s2413_s14   ;;  %s1949_s13 = sphi %s1996_s13, %s2412_s13   ;;  %s1945_s12 = sphi %s1994_s12, %s2411_s12  }
   0xb   : > { %s1679_s19 = sadd.s32 4294967294, %s1965_s17   ;;  %p63_p0 = scmp.ne.s32.totalorder %s1949_s13, %s1945_s12 }
   0xc   : > { %p64_p1 = scmp.eq.s32.totalorder %s2025_s18, 0  ;;  %p149_p2 = scmp.eq.s32.totalorder %s2025_s18, 1 }
   0xd   : > { %p155_p3 = scmp.eq.s32.totalorder %s1679_s19, 1  ;;  %p1680_p5 = scmp.ge.s32.totalorder %s1965_s17, 1 }
   0xe   : > { %p2034_p4 = por %p64_p1, %p63_p0  ;;  %p162_p7 = scmp.lt.s32.totalorder %s1965_s17, 3 }
   0xf   : > { %p2039_p6 = por %p155_p3, %p63_p0  ;;  %s2402_s2 = sld [smem:[#allocation17_spill]] }
  0x10   : > { %p2047_p8 = pnand %p1680_p5, %p162_p7  ;;  %s1967_s26 = smov [#allocation8]  }
  0x11   : > { %s178_s27 = sshll.u32 %s1967_s26, 4  ;;  %p1682_p11 = scmp.ge.s32.totalorder %s1965_s17, 2  ;;  %s179_s27 = int_to_ptr.vmem [resolvable:$true] %s178_s27 }
  0x12   : > { %p1707_p9 = pneg %p2047_p8  ;;  %s1968_s28 = smov 768  }
  0x13   : > { %s1969_s29 = smov 48   ;;  %s37_s30 = sadd.s32 1, %s1961_s16 }
  0x14   : > { %p1708_p10 = pnand %p1707_p9, %p64_p1  ;;  %p39_p12 = scmp.ge.s32.totalorder %s37_s30, 2 }
  0x15   : > { %s176_s24 = sshll.u32 %s2402_s2, 4  ;;  %s50_s4 = sadd.s32 1, %s1953_s14  ;;  %s177_s24 = int_to_ptr.hbm [resolvable:$true] %s176_s24 }
  0x16   : > { %1710 = dma.hbm_to_vmem [thread:$0]  (!%p1708_p10), %s177_s24, 49152, %s179_s27, [#allocation7], %s1968_s28, %s1968_s28, %s1969_s29  }
  0x17   : > { %p57_p13 = scmp.ne.s32.totalorder %s1953_s14, %s1949_s13  ;;  %p58_p0 = scmp.eq.s32.totalorder %s1965_s17, 0 }
  0x18   : > { %s2415_s30 = smov (%p39_p12, %s37_s30), 0  ;;  %p1723_p7 = scmp.lt.s32.totalorder %s1965_s17, 2 }
  0x19   : > { %2404 = sst [smem:[#allocation15_spill]] %s2415_s30  ;;  %p59_p3 = por %p58_p0, %p57_p13 }
  0x1a   : > { %p2065_p5 = por %p149_p2, %p57_p13  ;;  %s45_s6 = ssub.s32 %s1961_s16, %s2415_s30 }
  0x1b   : > { %p48_p9 = scmp.eq.s32.totalorder %s45_s6, 0  ;;  %s192_s7 = sand.u32 1, %s1953_s14  }
  0x1c   : > { %s1683_s8 = sshll.u32 %s192_s7, 5  ;;  %s1694_s10 = smul.u32 48, %s1961_s16 }
  0x1d   : > { %s2074_s9 = scalar_select %p48_p9, %s1953_s14, %s50_s4  }
  0x1e   : > { %s196_s11 = scalar_lea.vmem [#allocation3], %s1683_s8  ;;  %p2077_p10 = pnand %p1723_p7, %p59_p3 }
  0x1f   : > { %2406 = sst [smem:[#allocation16_spill]] %s2074_s9  ;;  %s213_s19 = sshll.u32 %s196_s11, 4  ;;  %s214_s19 = int_to_ptr.vmem [resolvable:$true] %s213_s19 }
  0x20   : > { %s209_s26 = scalar_lea.hbm %s2392_s0, %s1694_s10  ;;  %s223_s28 = sand.u32 1, %s1965_s17  }
  0x21   : > { %s211_s27 = sshll.u32 %s209_s26, 4  ;;  %s193_s29 = scalar_lea.sflag [#allocation4], %s192_s7  ;;  %s212_s27 = int_to_ptr.hbm [resolvable:$true] %s211_s27 }
  0x22   : > { %s1970_s4 = smov 128   ;;  %s1971_s6 = smov 8  }
  0x23   : > { %1714 = dma.hbm_to_vmem [thread:$0]  (!%p2077_p10), %s212_s27, 512, %s214_s19, %s193_s29, %s1970_s4, %s1970_s4, %s1971_s6  }
  0x24   : > { %s1685_s8 = sshll.u32 %s192_s7, 4  ;;  %s1595_s30 = scalar_lea.hbm %s2393_s1, %s1694_s10 }
  0x25   : > { %s1596_s16 = scalar_lea.hbm %s1595_s30, 32  ;;  %s227_s9 = scalar_lea.vmem [#allocation6], %s1685_s8 }
  0x26   : > { %s239_s23 = sshll.u32 %s227_s9, 4  ;;  %s237_s24 = sshll.u32 %s1596_s16, 4  ;;  %s240_s23 = int_to_ptr.vmem [resolvable:$true] %s239_s23  ;;  %s238_s24 = int_to_ptr.hbm [resolvable:$true] %s237_s24 }
  0x27   : > { %s224_s26 = scalar_lea.sflag [#allocation7], %s223_s28  ;;  %251 = sbr.rel (%p2047_p8) target bundleno = 450 (0x1c2), region = 32 }
  0x28   : > { %1717 = dma.hbm_to_vmem [thread:$0]  (!%p2077_p10), %s238_s24, 256, %s240_s23, %s224_s26, %s1970_s4, %s1970_s4, %s1971_s6  }
  0x29   : > { %s2095_s19 = sand.u32 (!%p2047_p8), 1, %s1949_s13  }
  0x2a   : > { %s1688_s2 = sshll.u32 (!%p2047_p8), %s2095_s19, 5  ;;  %s254_s7 = scalar_lea.sflag (!%p2047_p8), [#allocation4], %s2095_s19 }
  0x2b   : > { %s2099_s30 = scalar_lea.vmem (!%p2047_p8), [#allocation3], %s1688_s2 }
  0x2c   : > { %1928 = dma.done.wait (%p2034_p4), %s254_s7, 512  }
  0x2d   : > { %1930 = vsyncadd (%p2034_p4), %s254_s7, 4294966784  ;;  %s263_s16 = sand.u32 1, %s2025_s18   ;;  %s1689_s25 = sshll.u32 %s2095_s19, 4 }
  0x2e   : > { %s264_s9 = scalar_lea.sflag [#allocation7], %s263_s16  ;;  %s2107_s10 = scalar_lea.vmem [#allocation6], %s1689_s25 }
  0x2f   : > { %1932 = dma.done.wait (%p2034_p4), %s264_s9, 256  }
  0x30   : > { %1934 = vsyncadd (%p2034_p4), %s264_s9, 4294967040 }
  0x31   : > { %1936 = dma.done.wait (%p64_p1), [#allocation7], 49152  }
  0x32   : > { %1938 = vsyncadd (%p64_p1), [#allocation7], 4294918144  ;;  %v681_v0 = vld [vmem:[#allocation8 + $0x8d0] sm:$0xff]  ;;  %v675_v1 = vld [vmem:[#allocation8 + $0x8a0] sm:$0xff]  ;;  %vm345_vm0 = vcmask 1045504   ;;  %vm364_vm1 = vcmask 1044480  }
  0x33   : > { %v777_v2 = vld [vmem:[#allocation8 + $0xbd0] sm:$0xff]  ;;  %841 = vmatpush.msra.mxu2 %v681_v0  ;;  %v771_v6 = vld [vmem:[#allocation8 + $0xba0] sm:$0xff]  ;;  %v2121_v51 = vld [vmem:[%s2099_s30 + $0x8] sm:$0xff]  ;;  %vm325_vm2 = vcmask 1046528   ;;  %s1695_s18 = smul.u32 96, %s2095_s19  ;;  %s1528_s6 = scalar_lea.sflag [#allocation5], %s2095_s19 }
  0x34   : > { %870 = vmatpush.msra.mxu3 %v777_v2  ;;  %v489_v3 = vld [vmem:[#allocation8 + $0x2d0] sm:$0xff]  ;;  %v483_v7 = vld [vmem:[#allocation8 + $0x2a0] sm:$0xff]  ;;  %v347_v59 = vrot.slane %v2121_v51, 2  ;;  %v366_v61 = vrot.slane %v2121_v51, 3  ;;  %s1696_s22 = smul.u32 96, %s1957_s15  ;;  %s1895_s26 = scalar_lea.hbm %s2395_s3, 192 }
  0x35   : > { %v585_v4 = vld [vmem:[#allocation8 + $0x5d0] sm:$0xff]  ;;  %783 = vmatpush.msra.mxu0 %v489_v3  ;;  %v579_v8 = vld [vmem:[#allocation8 + $0x5a0] sm:$0xff]  ;;  %842 = vmatpush.msra.mxu2 %v675_v1  ;;  %s2317_s20 = scalar_lea.vmem [#allocation9], %s1695_s18 }
  0x36   : > { %v669_v5 = vld [vmem:[#allocation8 + $0x870] sm:$0xff]  ;;  %812 = vmatpush.msra.mxu1 %v585_v4  ;;  %871 = vmatpush.msra.mxu3 %v771_v6  ;;  %v663_v11 = vld [vmem:[#allocation8 + $0x840] sm:$0xff]  ;;  %s1544_s29 = scalar_lea.hbm %s2395_s3, %s1696_s22  ;;  %s1545_s15 = sshll.u32 %s2317_s20, 4  ;;  %s1546_s15 = int_to_ptr.vmem [resolvable:$true] %s1545_s15 }
  0x37   : > { %v765_v9 = vld [vmem:[#allocation8 + $0xb70] sm:$0xff]  ;;  %784 = vmatpush.msra.mxu0 %v483_v7  ;;  %v759_v13 = vld [vmem:[#allocation8 + $0xb40] sm:$0xff]  ;;  %843 = vmatpush.msra.mxu2 %v669_v5  ;;  %v327_v7 = vrot.slane %v2121_v51, 1  ;;  %s1547_s4 = sshll.u32 %s1544_s29, 4  ;;  %s1548_s4 = int_to_ptr.hbm [resolvable:$true] %s1547_s4 }
  0x38   : > { %v477_v10 = vld [vmem:[#allocation8 + $0x270] sm:$0xff]  ;;  %813 = vmatpush.msra.mxu1 %v579_v8  ;;  %872 = vmatpush.msra.mxu3 %v765_v9  ;;  %v471_v14 = vld [vmem:[#allocation8 + $0x240] sm:$0xff]  ;;  %v682_v8 = vld [vmem:[#allocation8 + $0x8d8] sm:$0xff]  ;;  %s1889_s8 = sshra.s32 %s1548_s4, 4  ;;  %s1890_s8 = int_to_ptr.hbm [resolvable:$true] %s1889_s8 }
  0x39   : > { %v573_v12 = vld [vmem:[#allocation8 + $0x570] sm:$0xff]  ;;  %v567_v15 = vld [vmem:[#allocation8 + $0x540] sm:$0xff]  ;;  %785 = vmatpush.msra.mxu0 %v477_v10  ;;  %844 = vmatpush.msra.mxu2 %v663_v11  ;;  %v778_v9 = vld [vmem:[#allocation8 + $0xbd8] sm:$0xff]  ;;  %s1891_s11 = scalar_lea.hbm %s1890_s8, 96  ;;  %p1896_p8 = scmp.lt.s32.totalorder %s1890_s8, %s2395_s3 }
  0x3a   : > { %814 = vmatpush.msra.mxu1 %v573_v12  ;;  %v657_v16 = vld [vmem:[#allocation8 + $0x810] sm:$0xff]  ;;  %873 = vmatpush.msra.mxu3 %v759_v13  ;;  %v651_v20 = vld [vmem:[#allocation8 + $0x7e0] sm:$0xff]  ;;  %v676_v13 = vld [vmem:[#allocation8 + $0x8a8] sm:$0xff]  ;;  %p1892_p1 = scmp.ne.s32.totalorder %s1890_s8, %s1891_s11  ;;  %p1897_p12 = scmp.lt.s32.totalorder %s1895_s26, %s1891_s11 }
  0x3b   : > { %v753_v17 = vld [vmem:[#allocation8 + $0xb10] sm:$0xff]  ;;  %786 = vmatpush.msra.mxu0 %v471_v14  ;;  %v747_v21 = vld [vmem:[#allocation8 + $0xae0] sm:$0xff]  ;;  %845 = vmatpush.msra.mxu2 %v657_v16 }
  0x3c   : > { %v465_v18 = vld [vmem:[#allocation8 + $0x210] sm:$0xff]  ;;  %815 = vmatpush.msra.mxu1 %v567_v15  ;;  %874 = vmatpush.msra.mxu3 %v753_v17  ;;  %v459_v22 = vld [vmem:[#allocation8 + $0x1e0] sm:$0xff]  ;;  %v490_v15 = vld [vmem:[#allocation8 + $0x2d8] sm:$0xff]  ;;  %p1893_p2 = pnand %p1892_p1, %p2065_p5  ;;  %p1898_p13 = por %p1897_p12, %p1896_p8 }
  0x3d   : > { %v561_v19 = vld [vmem:[#allocation8 + $0x510] sm:$0xff]  ;;  %v555_v23 = vld [vmem:[#allocation8 + $0x4e0] sm:$0xff]  ;;  %787 = vmatpush.msra.mxu0 %v465_v18  ;;  %846 = vmatpush.msra.mxu2 %v651_v20  ;;  %v586_v17 = vld [vmem:[#allocation8 + $0x5d8] sm:$0xff] }
  0x3e   : > { %816 = vmatpush.msra.mxu1 %v561_v19  ;;  %v645_v24 = vld [vmem:[#allocation8 + $0x7b0] sm:$0xff]  ;;  %875 = vmatpush.msra.mxu3 %v747_v21  ;;  %v639_v28 = vld [vmem:[#allocation8 + $0x780] sm:$0xff]  ;;  %v670_v18 = vld [vmem:[#allocation8 + $0x878] sm:$0xff]  ;;  %p1894_p4 = pneg %p1893_p2 }
  0x3f   : > { %v741_v25 = vld [vmem:[#allocation8 + $0xab0] sm:$0xff]  ;;  %788 = vmatpush.msra.mxu0 %v459_v22  ;;  %v735_v29 = vld [vmem:[#allocation8 + $0xa80] sm:$0xff]  ;;  %847 = vmatpush.msra.mxu2 %v645_v24  ;;  %v772_v19 = vld [vmem:[#allocation8 + $0xba8] sm:$0xff] }
  0x40   : > { %v453_v26 = vld [vmem:[#allocation8 + $0x1b0] sm:$0xff]  ;;  %817 = vmatpush.msra.mxu1 %v555_v23  ;;  %876 = vmatpush.msra.mxu3 %v741_v25  ;;  %v447_v30 = vld [vmem:[#allocation8 + $0x180] sm:$0xff]  ;;  %v484_v20 = vld [vmem:[#allocation8 + $0x2a8] sm:$0xff]  ;;  %p1899_p0 = pnand %p1898_p13, %p1894_p4 }
  0x41   : > { %v549_v27 = vld [vmem:[#allocation8 + $0x4b0] sm:$0xff]  ;;  %v543_v31 = vld [vmem:[#allocation8 + $0x480] sm:$0xff]  ;;  %789 = vmatpush.msra.mxu0 %v453_v26  ;;  %848 = vmatpush.msra.mxu2 %v639_v28  ;;  %v580_v21 = vld [vmem:[#allocation8 + $0x5a8] sm:$0xff] }
  0x42   : > { %818 = vmatpush.msra.mxu1 %v549_v27  ;;  %v633_v32 = vld [vmem:[#allocation8 + $0x750] sm:$0xff]  ;;  %877 = vmatpush.msra.mxu3 %v735_v29  ;;  %v627_v36 = vld [vmem:[#allocation8 + $0x720] sm:$0xff]  ;;  %v664_v22 = vld [vmem:[#allocation8 + $0x848] sm:$0xff] }
  0x43   : > { %v729_v33 = vld [vmem:[#allocation8 + $0xa50] sm:$0xff]  ;;  %790 = vmatpush.msra.mxu0 %v447_v30  ;;  %v723_v37 = vld [vmem:[#allocation8 + $0xa20] sm:$0xff]  ;;  %849 = vmatpush.msra.mxu2 %v633_v32  ;;  %v766_v24 = vld [vmem:[#allocation8 + $0xb78] sm:$0xff] }
  0x44   : > { %v441_v34 = vld [vmem:[#allocation8 + $0x150] sm:$0xff]  ;;  %819 = vmatpush.msra.mxu1 %v543_v31  ;;  %878 = vmatpush.msra.mxu3 %v729_v33  ;;  %v435_v38 = vld [vmem:[#allocation8 + $0x120] sm:$0xff]  ;;  %v478_v26 = vld [vmem:[#allocation8 + $0x278] sm:$0xff] }
  0x45   : > { %v537_v35 = vld [vmem:[#allocation8 + $0x450] sm:$0xff]  ;;  %v531_v39 = vld [vmem:[#allocation8 + $0x420] sm:$0xff]  ;;  %791 = vmatpush.msra.mxu0 %v441_v34  ;;  %850 = vmatpush.msra.mxu2 %v627_v36  ;;  %v574_v27 = vld [vmem:[#allocation8 + $0x578] sm:$0xff] }
  0x46   : > { %820 = vmatpush.msra.mxu1 %v537_v35  ;;  %v621_v40 = vld [vmem:[#allocation8 + $0x6f0] sm:$0xff]  ;;  %879 = vmatpush.msra.mxu3 %v723_v37  ;;  %v615_v44 = vld [vmem:[#allocation8 + $0x6c0] sm:$0xff]  ;;  %v658_v28 = vld [vmem:[#allocation8 + $0x818] sm:$0xff] }
  0x47   : > { %v717_v41 = vld [vmem:[#allocation8 + $0x9f0] sm:$0xff]  ;;  %792 = vmatpush.msra.mxu0 %v435_v38  ;;  %v711_v45 = vld [vmem:[#allocation8 + $0x9c0] sm:$0xff]  ;;  %851 = vmatpush.msra.mxu2 %v621_v40  ;;  %v760_v29 = vld [vmem:[#allocation8 + $0xb48] sm:$0xff] }
  0x48   : > { %v429_v42 = vld [vmem:[#allocation8 + $0xf0] sm:$0xff]  ;;  %821 = vmatpush.msra.mxu1 %v531_v39  ;;  %880 = vmatpush.msra.mxu3 %v717_v41  ;;  %v423_v47 = vld [vmem:[#allocation8 + $0xc0] sm:$0xff]  ;;  %v472_v32 = vld [vmem:[#allocation8 + $0x248] sm:$0xff] }
  0x49   : > { %v525_v43 = vld [vmem:[#allocation8 + $0x3f0] sm:$0xff]  ;;  %v519_v48 = vld [vmem:[#allocation8 + $0x3c0] sm:$0xff]  ;;  %793 = vmatpush.msra.mxu0 %v429_v42  ;;  %852 = vmatpush.msra.mxu2 %v615_v44  ;;  %v2160_v33 = vld [vmem:[%s2099_s30 + $0x18] sm:$0xff] }
  0x4a   : > { %v609_v46 = vld [vmem:[#allocation8 + $0x690] sm:$0xff]  ;;  %822 = vmatpush.msra.mxu1 %v525_v43  ;;  %v2118_v50 = vld [vmem:[%s2099_s30] sm:$0xff]  ;;  %881 = vmatpush.msra.mxu3 %v711_v45  ;;  %v568_v34 = vld [vmem:[#allocation8 + $0x548] sm:$0xff]  ;;  %v351_v39 = vrot.slane %v2160_v33, 2 }
  0x4b   : > { %v705_v49 = vld [vmem:[#allocation8 + $0x990] sm:$0xff]  ;;  %794 = vmatpush.msra.mxu0 %v423_v47  ;;  %v603_v54 = vld [vmem:[#allocation8 + $0x660] sm:$0xff]  ;;  %853 = vmatpush.msra.mxu2 %v609_v46  ;;  %v346_v58 = vrot.slane %v2118_v50, 2  ;;  %v365_v60 = vrot.slane %v2118_v50, 3  ;;  %v326_v6 = vrot.slane %v2118_v50, 1  ;;  %v652_v35 = vld [vmem:[#allocation8 + $0x7e8] sm:$0xff] }
  0x4c   : > { %v417_v52 = vld [vmem:[#allocation8 + $0x90] sm:$0xff]  ;;  %823 = vmatpush.msra.mxu1 %v519_v48  ;;  %v699_v55 = vld [vmem:[#allocation8 + $0x960] sm:$0xff]  ;;  %882 = vmatpush.msra.mxu3 %v705_v49  ;;  %v754_v36 = vld [vmem:[#allocation8 + $0xb18] sm:$0xff]  ;;  %v370_v46 = vrot.slane %v2160_v33, 3 }
  0x4d   : > { %v513_v53 = vld [vmem:[#allocation8 + $0x390] sm:$0xff]  ;;  %v411_v56 = vld [vmem:[#allocation8 + $0x60] sm:$0xff]  ;;  %795 = vmatpush.msra.mxu0 %v417_v52  ;;  %854 = vmatpush.msra.mxu2 %v603_v54  ;;  %v2128_v4 = vsel %vm345_vm0, %v346_v58, %v347_v59  ;;  %v2133_v5 = vsel %vm364_vm1, %v365_v60, %v366_v61  ;;  %v2143_v14 = vsel %vm325_vm2, %v326_v6, %v327_v7  ;;  %v466_v38 = vld [vmem:[#allocation8 + $0x218] sm:$0xff] }
  0x4e   : > { %v507_v57 = vld [vmem:[#allocation8 + $0x360] sm:$0xff]  ;;  %824 = vmatpush.msra.mxu1 %v513_v53  ;;  %v597_v62 = vld [vmem:[#allocation8 + $0x630] sm:$0xff]  ;;  %883 = vmatpush.msra.mxu3 %v699_v55  ;;  %v562_v40 = vld [vmem:[#allocation8 + $0x518] sm:$0xff]  ;;  %v331_v55 = vrot.slane %v2160_v33, 1 }
  0x4f   : > { %v693_v63 = vld [vmem:[#allocation8 + $0x930] sm:$0xff]  ;;  %796 = vmatpush.msra.mxu0 %v411_v56  ;;  %v591_v2 = vld [vmem:[#allocation8 + $0x600] sm:$0xff]  ;;  %855 = vmatpush.msra.mxu2 %v597_v62  ;;  %v646_v41 = vld [vmem:[#allocation8 + $0x7b8] sm:$0xff] }
  0x50   : > { %v405_v0 = vld [vmem:[#allocation8 + $0x30] sm:$0xff]  ;;  %825 = vmatpush.msra.mxu1 %v507_v57  ;;  %v687_v3 = vld [vmem:[#allocation8 + $0x900] sm:$0xff]  ;;  %884 = vmatpush.msra.mxu3 %v693_v63  ;;  %v748_v42 = vld [vmem:[#allocation8 + $0xae8] sm:$0xff] }
  0x51   : > { %v501_v1 = vld [vmem:[#allocation8 + $0x330] sm:$0xff]  ;;  %797 = vmatpush.msra.mxu0 %v405_v0  ;;  %856 = vmatpush.msra.mxu2 %v591_v2  ;;  %v399_v11 = vld [vmem:[#allocation8] sm:$0xff]  ;;  %v460_v43 = vld [vmem:[#allocation8 + $0x1e8] sm:$0xff] }
  0x52   : > { %826 = vmatpush.msra.mxu1 %v501_v1  ;;  %v2138_v10 = vld [vmem:[%s2099_s30 + $0x10] sm:$0xff]  ;;  %885 = vmatpush.msra.mxu3 %v687_v3  ;;  %v495_v12 = vld [vmem:[#allocation8 + $0x300] sm:$0xff]  ;;  %v556_v44 = vld [vmem:[#allocation8 + $0x4e8] sm:$0xff] }
  0x53   : > { %857 = vmatmul.f32.vlgmr.msra.gmra.mxu2 %v2128_v4  ;;  %886 = vmatmul.f32.vlgmr.msra.gmra.mxu3 %v2133_v5  ;;  %v349_v16 = vrot.slane %v2138_v10, 2  ;;  %v368_v23 = vrot.slane %v2138_v10, 3  ;;  %v329_v30 = vrot.slane %v2138_v10, 1  ;;  %v640_v45 = vld [vmem:[#allocation8 + $0x788] sm:$0xff]  ;;  %v742_v47 = vld [vmem:[#allocation8 + $0xab8] sm:$0xff]  ;;  %v320_v58 = vld [vmem:[%s2107_s10] sm:$0xff] }
  0x54   : > { %957 = vmatpush.msrb.mxu2 %v682_v8  ;;  %986 = vmatpush.msrb.mxu3 %v778_v9  ;;  %v454_v49 = vld [vmem:[#allocation8 + $0x1b8] sm:$0xff]  ;;  %v736_v54 = vld [vmem:[#allocation8 + $0xa88] sm:$0xff]  ;;  %v357_v0 = vrot.slane %v320_v58, 2  ;;  %v376_v9 = vrot.slane %v320_v58, 3 }
  0x55   : > { %798 = vmatpush.msra.mxu0 %v399_v11  ;;  %827 = vmatpush.msra.mxu1 %v495_v12  ;;  %v2150_v25 = vsel %vm345_vm0, %v347_v59, %v349_v16  ;;  %v2157_v31 = vsel %vm364_vm1, %v366_v61, %v368_v23  ;;  %v2164_v37 = vsel %vm325_vm2, %v327_v7, %v329_v30  ;;  %v550_v52 = vld [vmem:[#allocation8 + $0x4b8] sm:$0xff]  ;;  %v448_v57 = vld [vmem:[#allocation8 + $0x188] sm:$0xff] }
  0x56   : > { %958 = vmatpush.msrb.mxu2 %v676_v13  ;;  %799 = vmatmul.f32.vlgmr.msra.gmra.mxu0 %v2118_v50  ;;  %v2171_v48 = vsel %vm345_vm0, %v349_v16, %v351_v39  ;;  %v634_v53 = vld [vmem:[#allocation8 + $0x758] sm:$0xff]  ;;  %v2176_v56 = vsel %vm364_vm1, %v368_v23, %v370_v46  ;;  %v544_v59 = vld [vmem:[#allocation8 + $0x488] sm:$0xff]  ;;  %v2181_v62 = vsel %vm325_vm2, %v329_v30, %v331_v55 }
  0x57   : > { %828 = vmatmul.f32.vlgmr.msra.gmra.mxu1 %v2143_v14  ;;  %899 = vmatpush.msrb.mxu0 %v490_v15  ;;  %v628_v60 = vld [vmem:[#allocation8 + $0x728] sm:$0xff]  ;;  %v730_v61 = vld [vmem:[#allocation8 + $0xa58] sm:$0xff]  ;;  %v2186_v12 = vsel %vm345_vm0, %v351_v39, %v357_v0  ;;  %v653_v0 = vld [vmem:[#allocation8 + $0x7f0] sm:$0xff] }
  0x58   : > { %928 = vmatpush.msrb.mxu1 %v586_v17  ;;  %959 = vmatpush.msrb.mxu2 %v670_v18  ;;  %v442_v63 = vld [vmem:[#allocation8 + $0x158] sm:$0xff]  ;;  %v724_v3 = vld [vmem:[#allocation8 + $0xa28] sm:$0xff]  ;;  %v338_v18 = vrot.slane %v320_v58, 1  ;;  %v575_v58 = vld [vmem:[#allocation8 + $0x580] sm:$0xff] }
  0x59   : > { %987 = vmatpush.msrb.mxu3 %v772_v19  ;;  %900 = vmatpush.msrb.mxu0 %v484_v20  ;;  %v538_v1 = vld [vmem:[#allocation8 + $0x458] sm:$0xff]  ;;  %v436_v6 = vld [vmem:[#allocation8 + $0x128] sm:$0xff]  ;;  %v2190_v19 = vsel %vm364_vm1, %v370_v46, %v376_v9  ;;  %v587_v46 = vld [vmem:[#allocation8 + $0x5e0] sm:$0xff] }
  0x5a   : > { %929 = vmatpush.msrb.mxu1 %v580_v21  ;;  %960 = vmatpush.msrb.mxu2 %v664_v22  ;;  %v622_v2 = vld [vmem:[#allocation8 + $0x6f8] sm:$0xff]  ;;  %v532_v7 = vld [vmem:[#allocation8 + $0x428] sm:$0xff]  ;;  %v557_v9 = vld [vmem:[#allocation8 + $0x4f0] sm:$0xff] }
  0x5b   : > { %988 = vmatpush.msrb.mxu3 %v766_v24  ;;  %860 = vmatmul.f32.gmra.mxu2 %v2150_v25  ;;  %v616_v8 = vld [vmem:[#allocation8 + $0x6c8] sm:$0xff]  ;;  %v718_v11 = vld [vmem:[#allocation8 + $0x9f8] sm:$0xff]  ;;  %v2194_v24 = vsel %vm325_vm2, %v331_v55, %v338_v18  ;;  %v767_v55 = vld [vmem:[#allocation8 + $0xb80] sm:$0xff] }
  0x5c   : > { %901 = vmatpush.msrb.mxu0 %v478_v26  ;;  %930 = vmatpush.msrb.mxu1 %v574_v27  ;;  %v430_v13 = vld [vmem:[#allocation8 + $0xf8] sm:$0xff]  ;;  %v712_v17 = vld [vmem:[#allocation8 + $0x9c8] sm:$0xff]  ;;  %v737_v18 = vld [vmem:[#allocation8 + $0xa90] sm:$0xff] }
  0x5d   : > { %961 = vmatpush.msrb.mxu2 %v658_v28  ;;  %989 = vmatpush.msrb.mxu3 %v760_v29  ;;  %v526_v15 = vld [vmem:[#allocation8 + $0x3f8] sm:$0xff]  ;;  %v424_v20 = vld [vmem:[#allocation8 + $0xc8] sm:$0xff] }
  0x5e   : > { %889 = vmatmul.f32.gmra.mxu3 %v2157_v31  ;;  %902 = vmatpush.msrb.mxu0 %v472_v32  ;;  %v610_v16 = vld [vmem:[#allocation8 + $0x698] sm:$0xff]  ;;  %v520_v21 = vld [vmem:[#allocation8 + $0x3c8] sm:$0xff] }
  0x5f   : > { %931 = vmatpush.msrb.mxu1 %v568_v34  ;;  %962 = vmatpush.msrb.mxu2 %v652_v35  ;;  %v604_v22 = vld [vmem:[#allocation8 + $0x668] sm:$0xff]  ;;  %v706_v23 = vld [vmem:[#allocation8 + $0x998] sm:$0xff] }
  0x60   : > { %990 = vmatpush.msrb.mxu3 %v754_v36  ;;  %802 = vmatmul.f32.gmra.mxu0 %v2121_v51  ;;  %v418_v26 = vld [vmem:[#allocation8 + $0x98] sm:$0xff]  ;;  %v700_v29 = vld [vmem:[#allocation8 + $0x968] sm:$0xff] }
  0x61   : > { %831 = vmatmul.f32.gmra.mxu1 %v2164_v37  ;;  %903 = vmatpush.msrb.mxu0 %v466_v38  ;;  %v514_v27 = vld [vmem:[#allocation8 + $0x398] sm:$0xff]  ;;  %v412_v30 = vld [vmem:[#allocation8 + $0x68] sm:$0xff] }
  0x62   : > { %932 = vmatpush.msrb.mxu1 %v562_v40  ;;  %963 = vmatpush.msrb.mxu2 %v646_v41  ;;  %v598_v28 = vld [vmem:[#allocation8 + $0x638] sm:$0xff]  ;;  %v508_v32 = vld [vmem:[#allocation8 + $0x368] sm:$0xff]  ;;  %v683_v40 = vld [vmem:[#allocation8 + $0x8e0] sm:$0xff] }
  0x63   : > { %991 = vmatpush.msrb.mxu3 %v748_v42  ;;  %904 = vmatpush.msrb.mxu0 %v460_v43  ;;  %v592_v34 = vld [vmem:[#allocation8 + $0x608] sm:$0xff]  ;;  %v694_v35 = vld [vmem:[#allocation8 + $0x938] sm:$0xff]  ;;  %v677_v43 = vld [vmem:[#allocation8 + $0x8b0] sm:$0xff] }
  0x64   : > { %933 = vmatpush.msrb.mxu1 %v556_v44  ;;  %964 = vmatpush.msrb.mxu2 %v640_v45  ;;  %v406_v36 = vld [vmem:[#allocation8 + $0x38] sm:$0xff]  ;;  %v688_v39 = vld [vmem:[#allocation8 + $0x908] sm:$0xff]  ;;  %v779_v44 = vld [vmem:[#allocation8 + $0xbe0] sm:$0xff] }
  0x65   : > { %992 = vmatpush.msrb.mxu3 %v742_v47  ;;  %863 = vmatmul.f32.gmra.mxu2 %v2171_v48  ;;  %v502_v38 = vld [vmem:[#allocation8 + $0x338] sm:$0xff]  ;;  %v400_v41 = vld [vmem:[#allocation8 + $0x8] sm:$0xff]  ;;  %v491_v45 = vld [vmem:[#allocation8 + $0x2e0] sm:$0xff] }
  0x66   : > { %905 = vmatpush.msrb.mxu0 %v454_v49  ;;  %934 = vmatpush.msrb.mxu1 %v550_v52  ;;  %v496_v42 = vld [vmem:[#allocation8 + $0x308] sm:$0xff]  ;;  %v671_v47 = vld [vmem:[#allocation8 + $0x880] sm:$0xff]  ;;  %v773_v49 = vld [vmem:[#allocation8 + $0xbb0] sm:$0xff] }
  0x67   : > { %965 = vmatpush.msrb.mxu2 %v634_v53  ;;  %993 = vmatpush.msrb.mxu3 %v736_v54  ;;  %v485_v52 = vld [vmem:[#allocation8 + $0x2b0] sm:$0xff] }
  0x68   : > { %892 = vmatmul.f32.gmra.mxu3 %v2176_v56  ;;  %906 = vmatpush.msrb.mxu0 %v448_v57  ;;  %v581_v53 = vld [vmem:[#allocation8 + $0x5b0] sm:$0xff]  ;;  %v479_v57 = vld [vmem:[#allocation8 + $0x280] sm:$0xff] }
  0x69   : > { %935 = vmatpush.msrb.mxu1 %v544_v59  ;;  %966 = vmatpush.msrb.mxu2 %v628_v60  ;;  %v665_v54 = vld [vmem:[#allocation8 + $0x850] sm:$0xff]  ;;  %v659_v59 = vld [vmem:[#allocation8 + $0x820] sm:$0xff] }
  0x6a   : > { %994 = vmatpush.msrb.mxu3 %v730_v61  ;;  %805 = vmatmul.f32.gmra.mxu0 %v2138_v10  ;;  %v761_v60 = vld [vmem:[#allocation8 + $0xb50] sm:$0xff] }
  0x6b   : > { %834 = vmatmul.f32.gmra.mxu1 %v2181_v62  ;;  %907 = vmatpush.msrb.mxu0 %v442_v63  ;;  %v473_v61 = vld [vmem:[#allocation8 + $0x250] sm:$0xff] }
  0x6c   : > { %936 = vmatpush.msrb.mxu1 %v538_v1  ;;  %967 = vmatpush.msrb.mxu2 %v622_v2  ;;  %v569_v63 = vld [vmem:[#allocation8 + $0x550] sm:$0xff]  ;;  %v755_v1 = vld [vmem:[#allocation8 + $0xb20] sm:$0xff] }
  0x6d   : > { %995 = vmatpush.msrb.mxu3 %v724_v3  ;;  %908 = vmatpush.msrb.mxu0 %v436_v6  ;;  %v467_v2 = vld [vmem:[#allocation8 + $0x220] sm:$0xff] }
  0x6e   : > { %937 = vmatpush.msrb.mxu1 %v532_v7  ;;  %968 = vmatpush.msrb.mxu2 %v616_v8  ;;  %v563_v3 = vld [vmem:[#allocation8 + $0x520] sm:$0xff]  ;;  %v749_v7 = vld [vmem:[#allocation8 + $0xaf0] sm:$0xff] }
  0x6f   : > { %996 = vmatpush.msrb.mxu3 %v718_v11  ;;  %866 = vmatmul.f32.gmra.mxu2 %v2186_v12  ;;  %v647_v6 = vld [vmem:[#allocation8 + $0x7c0] sm:$0xff]  ;;  %v461_v8 = vld [vmem:[#allocation8 + $0x1f0] sm:$0xff] }
  0x70   : > { %909 = vmatpush.msrb.mxu0 %v430_v13  ;;  %938 = vmatpush.msrb.mxu1 %v526_v15  ;;  %v641_v11 = vld [vmem:[#allocation8 + $0x790] sm:$0xff]  ;;  %v743_v13 = vld [vmem:[#allocation8 + $0xac0] sm:$0xff] }
  0x71   : > { %969 = vmatpush.msrb.mxu2 %v610_v16  ;;  %997 = vmatpush.msrb.mxu3 %v712_v17  ;;  %v455_v15 = vld [vmem:[#allocation8 + $0x1c0] sm:$0xff] }
  0x72   : > { %895 = vmatmul.f32.gmra.mxu3 %v2190_v19  ;;  %910 = vmatpush.msrb.mxu0 %v424_v20  ;;  %v551_v16 = vld [vmem:[#allocation8 + $0x4c0] sm:$0xff]  ;;  %v449_v20 = vld [vmem:[#allocation8 + $0x190] sm:$0xff] }
  0x73   : > { %939 = vmatpush.msrb.mxu1 %v520_v21  ;;  %970 = vmatpush.msrb.mxu2 %v604_v22  ;;  %v635_v17 = vld [vmem:[#allocation8 + $0x760] sm:$0xff]  ;;  %v545_v21 = vld [vmem:[#allocation8 + $0x490] sm:$0xff] }
  0x74   : > { %998 = vmatpush.msrb.mxu3 %v706_v23  ;;  %808 = vmatmul.f32.gmra.mxu0 %v2160_v33  ;;  %v629_v22 = vld [vmem:[#allocation8 + $0x730] sm:$0xff]  ;;  %v731_v23 = vld [vmem:[#allocation8 + $0xa60] sm:$0xff] }
  0x75   : > { %837 = vmatmul.f32.gmra.mxu1 %v2194_v24  ;;  %911 = vmatpush.msrb.mxu0 %v418_v26  ;;  %v443_v26 = vld [vmem:[#allocation8 + $0x160] sm:$0xff] }
  0x76   : > { %940 = vmatpush.msrb.mxu1 %v514_v27  ;;  %971 = vmatpush.msrb.mxu2 %v598_v28  ;;  %v539_v27 = vld [vmem:[#allocation8 + $0x460] sm:$0xff] }
  0x77   : > { %999 = vmatpush.msrb.mxu3 %v700_v29  ;;  %912 = vmatpush.msrb.mxu0 %v412_v30  ;;  %v623_v28 = vld [vmem:[#allocation8 + $0x700] sm:$0xff]  ;;  %v725_v29 = vld [vmem:[#allocation8 + $0xa30] sm:$0xff] }
  0x78   : > { %941 = vmatpush.msrb.mxu1 %v508_v32  ;;  %972 = vmatpush.msrb.mxu2 %v592_v34  ;;  %v437_v30 = vld [vmem:[#allocation8 + $0x130] sm:$0xff] }
  0x79   : > { %1000 = vmatpush.msrb.mxu3 %v694_v35  ;;  %913 = vmatpush.msrb.mxu0 %v406_v36  ;;  %v533_v32 = vld [vmem:[#allocation8 + $0x430] sm:$0xff]  ;;  %v719_v35 = vld [vmem:[#allocation8 + $0xa00] sm:$0xff] }
  0x7a   : > { %942 = vmatpush.msrb.mxu1 %v502_v38  ;;  %973 = vmatmul.f32.vlgmr.msrb.gmra.mxu2 %v2128_v4  ;;  %v617_v34 = vld [vmem:[#allocation8 + $0x6d0] sm:$0xff]  ;;  %v431_v36 = vld [vmem:[#allocation8 + $0x100] sm:$0xff] }
  0x7b   : > { %1001 = vmatpush.msrb.mxu3 %v688_v39  ;;  %1073 = vmatpush.msra.mxu2 %v683_v40  ;;  %v527_v38 = vld [vmem:[#allocation8 + $0x400] sm:$0xff]  ;;  %v713_v40 = vld [vmem:[#allocation8 + $0x9d0] sm:$0xff] }
  0x7c   : > { %914 = vmatpush.msrb.mxu0 %v400_v41  ;;  %943 = vmatpush.msrb.mxu1 %v496_v42  ;;  %v611_v39 = vld [vmem:[#allocation8 + $0x6a0] sm:$0xff]  ;;  %v425_v41 = vld [vmem:[#allocation8 + $0xd0] sm:$0xff] }
  0x7d   : > { %1002 = vmatmul.f32.vlgmr.msrb.gmra.mxu3 %v2133_v5  ;;  %1074 = vmatpush.msra.mxu2 %v677_v43  ;;  %v521_v42 = vld [vmem:[#allocation8 + $0x3d0] sm:$0xff] }
  0x7e   : > { %1102 = vmatpush.msra.mxu3 %v779_v44  ;;  %915 = vmatmul.f32.vlgmr.msrb.gmra.mxu0 %v2118_v50  ;;  %v605_v43 = vld [vmem:[#allocation8 + $0x670] sm:$0xff]  ;;  %v707_v44 = vld [vmem:[#allocation8 + $0x9a0] sm:$0xff] }
  0x7f   : > { %944 = vmatmul.f32.vlgmr.msrb.gmra.mxu1 %v2143_v14  ;;  %1015 = vmatpush.msra.mxu0 %v491_v45  ;;  %v419_v45 = vld [vmem:[#allocation8 + $0xa0] sm:$0xff] }
  0x80   : > { %1044 = vmatpush.msra.mxu1 %v587_v46  ;;  %1075 = vmatpush.msra.mxu2 %v671_v47  ;;  %v515_v46 = vld [vmem:[#allocation8 + $0x3a0] sm:$0xff] }
  0x81   : > { %1103 = vmatpush.msra.mxu3 %v773_v49  ;;  %1016 = vmatpush.msra.mxu0 %v485_v52  ;;  %v599_v47 = vld [vmem:[#allocation8 + $0x640] sm:$0xff]  ;;  %v701_v49 = vld [vmem:[#allocation8 + $0x970] sm:$0xff] }
  0x82   : > { %1045 = vmatpush.msra.mxu1 %v581_v53  ;;  %1076 = vmatpush.msra.mxu2 %v665_v54  ;;  %v413_v52 = vld [vmem:[#allocation8 + $0x70] sm:$0xff] }
  0x83   : > { %1104 = vmatpush.msra.mxu3 %v767_v55  ;;  %976 = vmatmul.f32.gmra.mxu2 %v2150_v25  ;;  %v509_v53 = vld [vmem:[#allocation8 + $0x370] sm:$0xff]  ;;  %v695_v55 = vld [vmem:[#allocation8 + $0x940] sm:$0xff] }
  0x84   : > { %1017 = vmatpush.msra.mxu0 %v479_v57  ;;  %1046 = vmatpush.msra.mxu1 %v575_v58  ;;  %v593_v54 = vld [vmem:[#allocation8 + $0x610] sm:$0xff]  ;;  %v407_v57 = vld [vmem:[#allocation8 + $0x40] sm:$0xff] }
  0x85   : > { %1077 = vmatpush.msra.mxu2 %v659_v59  ;;  %1105 = vmatpush.msra.mxu3 %v761_v60  ;;  %v503_v58 = vld [vmem:[#allocation8 + $0x340] sm:$0xff]  ;;  %v689_v59 = vld [vmem:[#allocation8 + $0x910] sm:$0xff]  ;;  %v684_v60 = vld [vmem:[#allocation8 + $0x8e8] sm:$0xff] }
  0x86   : > { %1005 = vmatmul.f32.gmra.mxu3 %v2157_v31  ;;  %1018 = vmatpush.msra.mxu0 %v473_v61  ;;  %v401_v61 = vld [vmem:[#allocation8 + $0x10] sm:$0xff] }
  0x87   : > { %1047 = vmatpush.msra.mxu1 %v569_v63  ;;  %1078 = vmatpush.msra.mxu2 %v653_v0  ;;  %v497_v63 = vld [vmem:[#allocation8 + $0x310] sm:$0xff]  ;;  %v678_v0 = vld [vmem:[#allocation8 + $0x8b8] sm:$0xff] }
  0x88   : > { %1106 = vmatpush.msra.mxu3 %v755_v1  ;;  %918 = vmatmul.f32.gmra.mxu0 %v2121_v51  ;;  %v780_v1 = vld [vmem:[#allocation8 + $0xbe8] sm:$0xff] }
  0x89   : > { %947 = vmatmul.f32.gmra.mxu1 %v2164_v37  ;;  %1019 = vmatpush.msra.mxu0 %v467_v2  ;;  %v492_v2 = vld [vmem:[#allocation8 + $0x2e8] sm:$0xff] }
  0x8a   : > { %1048 = vmatpush.msra.mxu1 %v563_v3  ;;  %1079 = vmatpush.msra.mxu2 %v647_v6  ;;  %v588_v3 = vld [vmem:[#allocation8 + $0x5e8] sm:$0xff] }
  0x8b   : > { %1107 = vmatpush.msra.mxu3 %v749_v7  ;;  %1020 = vmatpush.msra.mxu0 %v461_v8  ;;  %v672_v6 = vld [vmem:[#allocation8 + $0x888] sm:$0xff]  ;;  %v774_v7 = vld [vmem:[#allocation8 + $0xbb8] sm:$0xff] }
  0x8c   : > { %1049 = vmatpush.msra.mxu1 %v557_v9  ;;  %1080 = vmatpush.msra.mxu2 %v641_v11  ;;  %v486_v8 = vld [vmem:[#allocation8 + $0x2b8] sm:$0xff] }
  0x8d   : > { %1108 = vmatpush.msra.mxu3 %v743_v13  ;;  %979 = vmatmul.f32.gmra.mxu2 %v2171_v48  ;;  %v582_v9 = vld [vmem:[#allocation8 + $0x5b8] sm:$0xff]  ;;  %v768_v13 = vld [vmem:[#allocation8 + $0xb88] sm:$0xff] }
  0x8e   : > { %1021 = vmatpush.msra.mxu0 %v455_v15  ;;  %1050 = vmatpush.msra.mxu1 %v551_v16  ;;  %v666_v11 = vld [vmem:[#allocation8 + $0x858] sm:$0xff]  ;;  %v480_v15 = vld [vmem:[#allocation8 + $0x288] sm:$0xff] }
  0x8f   : > { %1081 = vmatpush.msra.mxu2 %v635_v17  ;;  %1109 = vmatpush.msra.mxu3 %v737_v18  ;;  %v576_v16 = vld [vmem:[#allocation8 + $0x588] sm:$0xff]  ;;  %v762_v18 = vld [vmem:[#allocation8 + $0xb58] sm:$0xff] }
  0x90   : > { %1008 = vmatmul.f32.gmra.mxu3 %v2176_v56  ;;  %1022 = vmatpush.msra.mxu0 %v449_v20  ;;  %v660_v17 = vld [vmem:[#allocation8 + $0x828] sm:$0xff]  ;;  %v570_v20 = vld [vmem:[#allocation8 + $0x558] sm:$0xff] }
  0x91   : > { %1051 = vmatpush.msra.mxu1 %v545_v21  ;;  %1082 = vmatpush.msra.mxu2 %v629_v22  ;;  %v654_v21 = vld [vmem:[#allocation8 + $0x7f8] sm:$0xff]  ;;  %v756_v22 = vld [vmem:[#allocation8 + $0xb28] sm:$0xff] }
  0x92   : > { %1110 = vmatpush.msra.mxu3 %v731_v23  ;;  %921 = vmatmul.f32.gmra.mxu0 %v2138_v10  ;;  %v468_v23 = vld [vmem:[#allocation8 + $0x228] sm:$0xff] }
  0x93   : > { %950 = vmatmul.f32.gmra.mxu1 %v2181_v62  ;;  %1023 = vmatpush.msra.mxu0 %v443_v26  ;;  %v564_v26 = vld [vmem:[#allocation8 + $0x528] sm:$0xff] }
  0x94   : > { %1052 = vmatpush.msra.mxu1 %v539_v27  ;;  %1083 = vmatpush.msra.mxu2 %v623_v28  ;;  %v648_v27 = vld [vmem:[#allocation8 + $0x7c8] sm:$0xff]  ;;  %v750_v28 = vld [vmem:[#allocation8 + $0xaf8] sm:$0xff] }
  0x95   : > { %1111 = vmatpush.msra.mxu3 %v725_v29  ;;  %1024 = vmatpush.msra.mxu0 %v437_v30  ;;  %v462_v29 = vld [vmem:[#allocation8 + $0x1f8] sm:$0xff] }
  0x96   : > { %1053 = vmatpush.msra.mxu1 %v533_v32  ;;  %1084 = vmatpush.msra.mxu2 %v617_v34  ;;  %v558_v30 = vld [vmem:[#allocation8 + $0x4f8] sm:$0xff]  ;;  %v744_v34 = vld [vmem:[#allocation8 + $0xac8] sm:$0xff] }
  0x97   : > { %1112 = vmatpush.msra.mxu3 %v719_v35  ;;  %982 = vmatmul.f32.gmra.mxu2 %v2186_v12  ;;  %v642_v32 = vld [vmem:[#allocation8 + $0x798] sm:$0xff]  ;;  %v456_v35 = vld [vmem:[#allocation8 + $0x1c8] sm:$0xff] }
  0x98   : > { %1025 = vmatpush.msra.mxu0 %v431_v36  ;;  %1054 = vmatpush.msra.mxu1 %v527_v38  ;;  %v552_v36 = vld [vmem:[#allocation8 + $0x4c8] sm:$0xff] }
  0x99   : > { %1085 = vmatpush.msra.mxu2 %v611_v39  ;;  %1113 = vmatpush.msra.mxu3 %v713_v40  ;;  %v636_v38 = vld [vmem:[#allocation8 + $0x768] sm:$0xff]  ;;  %v738_v39 = vld [vmem:[#allocation8 + $0xa98] sm:$0xff] }
  0x9a   : > { %1011 = vmatmul.f32.gmra.mxu3 %v2190_v19  ;;  %1026 = vmatpush.msra.mxu0 %v425_v41  ;;  %v546_v40 = vld [vmem:[#allocation8 + $0x498] sm:$0xff] }
  0x9b   : > { %1055 = vmatpush.msra.mxu1 %v521_v42  ;;  %1086 = vmatpush.msra.mxu2 %v605_v43  ;;  %v630_v41 = vld [vmem:[#allocation8 + $0x738] sm:$0xff]  ;;  %v732_v42 = vld [vmem:[#allocation8 + $0xa68] sm:$0xff] }
  0x9c   : > { %1114 = vmatpush.msra.mxu3 %v707_v44  ;;  %924 = vmatmul.f32.gmra.mxu0 %v2160_v33  ;;  %v444_v43 = vld [vmem:[#allocation8 + $0x168] sm:$0xff] }
  0x9d   : > { %953 = vmatmul.f32.gmra.mxu1 %v2194_v24  ;;  %1027 = vmatpush.msra.mxu0 %v419_v45  ;;  %v540_v44 = vld [vmem:[#allocation8 + $0x468] sm:$0xff] }
  0x9e   : > { %1056 = vmatpush.msra.mxu1 %v515_v46  ;;  %1087 = vmatpush.msra.mxu2 %v599_v47  ;;  %v624_v45 = vld [vmem:[#allocation8 + $0x708] sm:$0xff]  ;;  %v726_v46 = vld [vmem:[#allocation8 + $0xa38] sm:$0xff] }
  0x9f   : > { %1115 = vmatpush.msra.mxu3 %v701_v49  ;;  %1028 = vmatpush.msra.mxu0 %v413_v52  ;;  %v438_v47 = vld [vmem:[#allocation8 + $0x138] sm:$0xff] }
  0xa0   : > { %1057 = vmatpush.msra.mxu1 %v509_v53  ;;  %1088 = vmatpush.msra.mxu2 %v593_v54  ;;  %v534_v49 = vld [vmem:[#allocation8 + $0x438] sm:$0xff]  ;;  %v720_v53 = vld [vmem:[#allocation8 + $0xa08] sm:$0xff] }
  0xa1   : > { %1116 = vmatpush.msra.mxu3 %v695_v55  ;;  %1029 = vmatpush.msra.mxu0 %v407_v57  ;;  %v618_v52 = vld [vmem:[#allocation8 + $0x6d8] sm:$0xff]  ;;  %v432_v54 = vld [vmem:[#allocation8 + $0x108] sm:$0xff] }
  0xa2   : > { %1058 = vmatpush.msra.mxu1 %v503_v58  ;;  %1089 = vmatmul.f32.vlgmr.msra.gmra.mxu2 %v2128_v4  ;;  %v528_v55 = vld [vmem:[#allocation8 + $0x408] sm:$0xff]  ;;  %v714_v58 = vld [vmem:[#allocation8 + $0x9d8] sm:$0xff] }
  0xa3   : > { %1117 = vmatpush.msra.mxu3 %v689_v59  ;;  %1189 = vmatpush.msrb.mxu2 %v684_v60  ;;  %v612_v57 = vld [vmem:[#allocation8 + $0x6a8] sm:$0xff]  ;;  %v522_v59 = vld [vmem:[#allocation8 + $0x3d8] sm:$0xff] }
  0xa4   : > { %1030 = vmatpush.msra.mxu0 %v401_v61  ;;  %1059 = vmatpush.msra.mxu1 %v497_v63  ;;  %v606_v60 = vld [vmem:[#allocation8 + $0x678] sm:$0xff]  ;;  %v708_v61 = vld [vmem:[#allocation8 + $0x9a8] sm:$0xff] }
  0xa5   : > { %1118 = vmatmul.f32.vlgmr.msra.gmra.mxu3 %v2133_v5  ;;  %1190 = vmatpush.msrb.mxu2 %v678_v0  ;;  %v420_v63 = vld [vmem:[#allocation8 + $0xa8] sm:$0xff] }
  0xa6   : > { %1218 = vmatpush.msrb.mxu3 %v780_v1  ;;  %1031 = vmatmul.f32.vlgmr.msra.gmra.mxu0 %v2118_v50  ;;  %v474_v50 = vld [vmem:[#allocation8 + $0x258] sm:$0xff]  ;;  %v516_v0 = vld [vmem:[#allocation8 + $0x3a8] sm:$0xff] }
  0xa7   : > { %1060 = vmatmul.f32.vlgmr.msra.gmra.mxu1 %v2143_v14  ;;  %1131 = vmatpush.msrb.mxu0 %v492_v2  ;;  %v600_v1 = vld [vmem:[#allocation8 + $0x648] sm:$0xff]  ;;  %v702_v2 = vld [vmem:[#allocation8 + $0x978] sm:$0xff] }
  0xa8   : > { %1160 = vmatpush.msrb.mxu1 %v588_v3  ;;  %1191 = vmatpush.msrb.mxu2 %v672_v6  ;;  %v414_v3 = vld [vmem:[#allocation8 + $0x78] sm:$0xff] }
  0xa9   : > { %1219 = vmatpush.msrb.mxu3 %v774_v7  ;;  %1132 = vmatpush.msrb.mxu0 %v486_v8  ;;  %v510_v6 = vld [vmem:[#allocation8 + $0x378] sm:$0xff]  ;;  %v696_v8 = vld [vmem:[#allocation8 + $0x948] sm:$0xff] }
  0xaa   : > { %1161 = vmatpush.msrb.mxu1 %v582_v9  ;;  %1192 = vmatpush.msrb.mxu2 %v666_v11  ;;  %v594_v7 = vld [vmem:[#allocation8 + $0x618] sm:$0xff]  ;;  %v408_v9 = vld [vmem:[#allocation8 + $0x48] sm:$0xff] }
  0xab   : > { %1220 = vmatpush.msrb.mxu3 %v768_v13  ;;  %1092 = vmatmul.f32.gmra.mxu2 %v2150_v25  ;;  %v504_v11 = vld [vmem:[#allocation8 + $0x348] sm:$0xff]  ;;  %v690_v13 = vld [vmem:[#allocation8 + $0x918] sm:$0xff] }
  0xac   : > { %1133 = vmatpush.msrb.mxu0 %v480_v15  ;;  %1162 = vmatpush.msrb.mxu1 %v576_v16  ;;  %v685_v15 = vld [vmem:[#allocation8 + $0x8f0] sm:$0xff]  ;;  %v498_v16 = vld [vmem:[#allocation8 + $0x318] sm:$0xff] }
  0xad   : > { %1193 = vmatpush.msrb.mxu2 %v660_v17  ;;  %1221 = vmatpush.msrb.mxu3 %v762_v18  ;;  %v679_v17 = vld [vmem:[#allocation8 + $0x8c0] sm:$0xff]  ;;  %v781_v18 = vld [vmem:[#allocation8 + $0xbf0] sm:$0xff] }
  0xae   : > { %1121 = vmatmul.f32.gmra.mxu3 %v2157_v31  ;;  %1134 = vmatpush.msrb.mxu0 %v474_v50  ;;  %v493_v50 = vld [vmem:[#allocation8 + $0x2f0] sm:$0xff] }
  0xaf   : > { %1163 = vmatpush.msrb.mxu1 %v570_v20  ;;  %1194 = vmatpush.msrb.mxu2 %v654_v21  ;;  %v589_v20 = vld [vmem:[#allocation8 + $0x5f0] sm:$0xff] }
  0xb0   : > { %1222 = vmatpush.msrb.mxu3 %v756_v22  ;;  %1034 = vmatmul.f32.gmra.mxu0 %v2121_v51  ;;  %v450_v51 = vld [vmem:[#allocation8 + $0x198] sm:$0xff]  ;;  %v673_v21 = vld [vmem:[#allocation8 + $0x890] sm:$0xff]  ;;  %v2233_v22 = vld [vmem:[%s2099_s30] sm:$0xff] }
  0xb1   : > { %1063 = vmatmul.f32.gmra.mxu1 %v2164_v37  ;;  %1135 = vmatpush.msrb.mxu0 %v468_v23  ;;  %v775_v23 = vld [vmem:[#allocation8 + $0xbc0] sm:$0xff] }
  0xb2   : > { %1164 = vmatpush.msrb.mxu1 %v564_v26  ;;  %1195 = vmatpush.msrb.mxu2 %v648_v27  ;;  %v487_v26 = vld [vmem:[#allocation8 + $0x2c0] sm:$0xff] }
  0xb3   : > { %1223 = vmatpush.msrb.mxu3 %v750_v28  ;;  %1136 = vmatpush.msrb.mxu0 %v462_v29  ;;  %v583_v27 = vld [vmem:[#allocation8 + $0x5c0] sm:$0xff]  ;;  %v769_v29 = vld [vmem:[#allocation8 + $0xb90] sm:$0xff] }
  0xb4   : > { %1165 = vmatpush.msrb.mxu1 %v558_v30  ;;  %1196 = vmatpush.msrb.mxu2 %v642_v32  ;;  %v667_v28 = vld [vmem:[#allocation8 + $0x860] sm:$0xff]  ;;  %v481_v30 = vld [vmem:[#allocation8 + $0x290] sm:$0xff] }
  0xb5   : > { %1224 = vmatpush.msrb.mxu3 %v744_v34  ;;  %1095 = vmatmul.f32.gmra.mxu2 %v2171_v48  ;;  %v577_v32 = vld [vmem:[#allocation8 + $0x590] sm:$0xff] }
  0xb6   : > { %1137 = vmatpush.msrb.mxu0 %v456_v35  ;;  %1166 = vmatpush.msrb.mxu1 %v552_v36  ;;  %v661_v34 = vld [vmem:[#allocation8 + $0x830] sm:$0xff]  ;;  %v763_v35 = vld [vmem:[#allocation8 + $0xb60] sm:$0xff] }
  0xb7   : > { %1197 = vmatpush.msrb.mxu2 %v636_v38  ;;  %1225 = vmatpush.msrb.mxu3 %v738_v39  ;;  %v475_v36 = vld [vmem:[#allocation8 + $0x260] sm:$0xff] }
  0xb8   : > { %1124 = vmatmul.f32.gmra.mxu3 %v2176_v56  ;;  %1138 = vmatpush.msrb.mxu0 %v450_v51  ;;  %v571_v39 = vld [vmem:[#allocation8 + $0x560] sm:$0xff] }
  0xb9   : > { %1167 = vmatpush.msrb.mxu1 %v546_v40  ;;  %1198 = vmatpush.msrb.mxu2 %v630_v41  ;;  %v655_v51 = vld [vmem:[#allocation8 + $0x800] sm:$0xff]  ;;  %v757_v41 = vld [vmem:[#allocation8 + $0xb30] sm:$0xff] }
  0xba   : > { %1226 = vmatpush.msrb.mxu3 %v732_v42  ;;  %1037 = vmatmul.f32.gmra.mxu0 %v2138_v10  ;;  %v426_v10 = vld [vmem:[#allocation8 + $0xd8] sm:$0xff] }
  0xbb   : > { %1066 = vmatmul.f32.gmra.mxu1 %v2181_v62  ;;  %1139 = vmatpush.msrb.mxu0 %v444_v43  ;;  %v469_v43 = vld [vmem:[#allocation8 + $0x230] sm:$0xff] }
  0xbc   : > { %1168 = vmatpush.msrb.mxu1 %v540_v44  ;;  %1199 = vmatpush.msrb.mxu2 %v624_v45  ;;  %v565_v45 = vld [vmem:[#allocation8 + $0x530] sm:$0xff] }
  0xbd   : > { %1227 = vmatpush.msrb.mxu3 %v726_v46  ;;  %1140 = vmatpush.msrb.mxu0 %v438_v47  ;;  %v649_v46 = vld [vmem:[#allocation8 + $0x7d0] sm:$0xff] }
  0xbe   : > { %1169 = vmatpush.msrb.mxu1 %v534_v49  ;;  %1200 = vmatpush.msrb.mxu2 %v618_v52  ;;  %v2240_v49 = vld [vmem:[%s2099_s30 + $0x8] sm:$0xff]  ;;  %v751_v52 = vld [vmem:[#allocation8 + $0xb00] sm:$0xff] }
  0xbf   : > { %1228 = vmatpush.msrb.mxu3 %v720_v53  ;;  %1098 = vmatmul.f32.gmra.mxu2 %v2186_v12  ;;  %v463_v53 = vld [vmem:[#allocation8 + $0x200] sm:$0xff] }
  0xc0   : > { %1141 = vmatpush.msrb.mxu0 %v432_v54  ;;  %1170 = vmatpush.msrb.mxu1 %v528_v55  ;;  %v559_v54 = vld [vmem:[#allocation8 + $0x500] sm:$0xff] }
  0xc1   : > { %1201 = vmatpush.msrb.mxu2 %v612_v57  ;;  %1229 = vmatpush.msrb.mxu3 %v714_v58  ;;  %v643_v55 = vld [vmem:[#allocation8 + $0x7a0] sm:$0xff]  ;;  %v745_v58 = vld [vmem:[#allocation8 + $0xad0] sm:$0xff] }
  0xc2   : > { %1127 = vmatmul.f32.gmra.mxu3 %v2190_v19  ;;  %1142 = vmatpush.msrb.mxu0 %v426_v10 }
  0xc3   : > { %1171 = vmatpush.msrb.mxu1 %v522_v59  ;;  %1202 = vmatpush.msrb.mxu2 %v606_v60  ;;  %v457_v59 = vld [vmem:[#allocation8 + $0x1d0] sm:$0xff] }
  0xc4   : > { %1230 = vmatpush.msrb.mxu3 %v708_v61  ;;  %1040 = vmatmul.f32.gmra.mxu0 %v2160_v33  ;;  %v402_v33 = vld [vmem:[#allocation8 + $0x18] sm:$0xff]  ;;  %v553_v60 = vld [vmem:[#allocation8 + $0x4d0] sm:$0xff] }
  0xc5   : > { %1069 = vmatmul.f32.gmra.mxu1 %v2194_v24  ;;  %1143 = vmatpush.msrb.mxu0 %v420_v63  ;;  %v637_v61 = vld [vmem:[#allocation8 + $0x770] sm:$0xff]  ;;  %v739_v63 = vld [vmem:[#allocation8 + $0xaa0] sm:$0xff] }
  0xc6   : > { %1172 = vmatpush.msrb.mxu1 %v516_v0  ;;  %1203 = vmatpush.msrb.mxu2 %v600_v1  ;;  %v451_v0 = vld [vmem:[#allocation8 + $0x1a0] sm:$0xff] }
  0xc7   : > { %1231 = vmatpush.msrb.mxu3 %v702_v2  ;;  %1144 = vmatpush.msrb.mxu0 %v414_v3  ;;  %v547_v2 = vld [vmem:[#allocation8 + $0x4a0] sm:$0xff] }
  0xc8   : > { %1173 = vmatpush.msrb.mxu1 %v510_v6  ;;  %1204 = vmatpush.msrb.mxu2 %v594_v7  ;;  %v631_v3 = vld [vmem:[#allocation8 + $0x740] sm:$0xff]  ;;  %v733_v7 = vld [vmem:[#allocation8 + $0xa70] sm:$0xff] }
  0xc9   : > { %1232 = vmatpush.msrb.mxu3 %v696_v8  ;;  %1145 = vmatpush.msrb.mxu0 %v408_v9  ;;  %v445_v9 = vld [vmem:[#allocation8 + $0x170] sm:$0xff] }
  0xca   : > { %1174 = vmatpush.msrb.mxu1 %v504_v11  ;;  %1205 = vmatmul.f32.vlgmr.msrb.gmra.mxu2 %v2128_v4 }
  0xcb   : > { %1233 = vmatpush.msrb.mxu3 %v690_v13  ;;  %1305 = vmatpush.msra.mxu2 %v685_v15  ;;  %v541_v13 = vld [vmem:[#allocation8 + $0x470] sm:$0xff] }
  0xcc   : > { %1146 = vmatpush.msrb.mxu0 %v402_v33  ;;  %1175 = vmatpush.msrb.mxu1 %v498_v16  ;;  %v625_v15 = vld [vmem:[#allocation8 + $0x710] sm:$0xff] }
  0xcd   : > { %1234 = vmatmul.f32.vlgmr.msrb.gmra.mxu3 %v2133_v5  ;;  %1306 = vmatpush.msra.mxu2 %v679_v17  ;;  %v2249_v16 = vld [vmem:[%s2099_s30 + $0x10] sm:$0xff]  ;;  %v727_v17 = vld [vmem:[#allocation8 + $0xa40] sm:$0xff] }
  0xce   : > { %1334 = vmatpush.msra.mxu3 %v781_v18  ;;  %1147 = vmatmul.f32.vlgmr.msrb.gmra.mxu0 %v2233_v22  ;;  %v439_v18 = vld [vmem:[#allocation8 + $0x140] sm:$0xff] }
  0xcf   : > { %1176 = vmatmul.f32.vlgmr.msrb.gmra.mxu1 %v2143_v14  ;;  %1247 = vmatpush.msra.mxu0 %v493_v50  ;;  %v535_v50 = vld [vmem:[#allocation8 + $0x440] sm:$0xff] }
  0xd0   : > { %1276 = vmatpush.msra.mxu1 %v589_v20  ;;  %1307 = vmatpush.msra.mxu2 %v673_v21  ;;  %v619_v20 = vld [vmem:[#allocation8 + $0x6e0] sm:$0xff] }
  0xd1   : > { %1335 = vmatpush.msra.mxu3 %v775_v23  ;;  %1248 = vmatpush.msra.mxu0 %v487_v26  ;;  %v721_v23 = vld [vmem:[#allocation8 + $0xa10] sm:$0xff] }
  0xd2   : > { %1277 = vmatpush.msra.mxu1 %v583_v27  ;;  %1308 = vmatpush.msra.mxu2 %v667_v28  ;;  %v433_v27 = vld [vmem:[#allocation8 + $0x110] sm:$0xff] }
  0xd3   : > { %1336 = vmatpush.msra.mxu3 %v769_v29  ;;  %1208 = vmatmul.f32.gmra.mxu2 %v2150_v25  ;;  %v800_v38 = vpop.f32.mrf.mxu0  ;;  %v529_v28 = vld [vmem:[#allocation8 + $0x410] sm:$0xff] }
  0xd4   : > { %1249 = vmatpush.msra.mxu0 %v481_v30  ;;  %1278 = vmatpush.msra.mxu1 %v577_v32  ;;  %v829_v40 = vpop.f32.mrf.mxu1  ;;  %v613_v29 = vld [vmem:[#allocation8 + $0x6b0] sm:$0xff]  ;;  %v715_v30 = vld [vmem:[#allocation8 + $0x9e0] sm:$0xff] }
  0xd5   : > { %1309 = vmatpush.msra.mxu2 %v661_v34  ;;  %1337 = vmatpush.msra.mxu3 %v763_v35  ;;  %v830_v42 = vadd.f32 %v829_v40, %v800_v38  ;;  %v427_v32 = vld [vmem:[#allocation8 + $0xe0] sm:$0xff]  ;;  %v421_v40 = vld [vmem:[#allocation8 + $0xb0] sm:$0xff] }
  0xd6   : > { %1237 = vmatmul.f32.gmra.mxu3 %v2157_v31  ;;  %1250 = vmatpush.msra.mxu0 %v475_v36  ;;  %v858_v44 = vpop.f32.mrf.mxu2  ;;  %v887_v57 = vpop.f32.mrf.mxu3  ;;  %v523_v35 = vld [vmem:[#allocation8 + $0x3e0] sm:$0xff] }
  0xd7   : > { %1279 = vmatpush.msra.mxu1 %v571_v39  ;;  %1310 = vmatpush.msra.mxu2 %v655_v51  ;;  %v859_v47 = vadd.f32 %v858_v44, %v830_v42  ;;  %v607_v36 = vld [vmem:[#allocation8 + $0x680] sm:$0xff]  ;;  %v709_v39 = vld [vmem:[#allocation8 + $0x9b0] sm:$0xff] }
  0xd8   : > { %1338 = vmatpush.msra.mxu3 %v757_v41  ;;  %1150 = vmatmul.f32.gmra.mxu0 %v2240_v49  ;;  %v517_v42 = vld [vmem:[#allocation8 + $0x3b0] sm:$0xff] }
  0xd9   : > { %1179 = vmatmul.f32.gmra.mxu1 %v2164_v37  ;;  %1251 = vmatpush.msra.mxu0 %v469_v43  ;;  %v2244_v10 = vadd.f32 %v887_v57, %v859_v47  ;;  %v601_v43 = vld [vmem:[#allocation8 + $0x650] sm:$0xff]  ;;  %v415_v47 = vld [vmem:[#allocation8 + $0x80] sm:$0xff] }
  0xda   : > { %1280 = vmatpush.msra.mxu1 %v565_v45  ;;  %1311 = vmatpush.msra.mxu2 %v649_v46  ;;  %v2258_v45 = vld [vmem:[%s2099_s30 + $0x18] sm:$0xff]  ;;  %v703_v46 = vld [vmem:[#allocation8 + $0x980] sm:$0xff]  ;;  %v409_v57 = vld [vmem:[#allocation8 + $0x50] sm:$0xff] }
  0xdb   : > { %1339 = vmatpush.msra.mxu3 %v751_v52  ;;  %1252 = vmatpush.msra.mxu0 %v463_v53  ;;  %v511_v52 = vld [vmem:[#allocation8 + $0x380] sm:$0xff] }
  0xdc   : > { %1281 = vmatpush.msra.mxu1 %v559_v54  ;;  %1312 = vmatpush.msra.mxu2 %v643_v55  ;;  %v595_v53 = vld [vmem:[#allocation8 + $0x620] sm:$0xff]  ;;  %v697_v55 = vld [vmem:[#allocation8 + $0x950] sm:$0xff] }
  0xdd   : > { %1340 = vmatpush.msra.mxu3 %v745_v58  ;;  %1211 = vmatmul.f32.gmra.mxu2 %v2171_v48  ;;  %v803_v1 = vpop.f32.mrf.mxu0 }
  0xde   : > { %1253 = vmatpush.msra.mxu0 %v457_v59  ;;  %1282 = vmatpush.msra.mxu1 %v553_v60  ;;  %v832_v6 = vpop.f32.mrf.mxu1  ;;  %v861_v11 = vpop.f32.mrf.mxu2  ;;  %v505_v59 = vld [vmem:[#allocation8 + $0x350] sm:$0xff]  ;;  %v691_v60 = vld [vmem:[#allocation8 + $0x920] sm:$0xff] }
  0xdf   : > { %1313 = vmatpush.msra.mxu2 %v637_v61  ;;  %1341 = vmatpush.msra.mxu3 %v739_v63  ;;  %v833_v8 = vadd.f32 %v832_v6, %v803_v1  ;;  %v686_v61 = vld [vmem:[#allocation8 + $0x8f8] sm:$0xff]  ;;  %v403_v63 = vld [vmem:[#allocation8 + $0x20] sm:$0xff] }
  0xe0   : > { %1240 = vmatmul.f32.gmra.mxu3 %v2176_v56  ;;  %1254 = vmatpush.msra.mxu0 %v451_v0  ;;  %v499_v0 = vld [vmem:[#allocation8 + $0x320] sm:$0xff]  ;;  %v782_v6 = vld [vmem:[#allocation8 + $0xbf8] sm:$0xff] }
  0xe1   : > { %1283 = vmatpush.msra.mxu1 %v547_v2  ;;  %1314 = vmatpush.msra.mxu2 %v631_v3  ;;  %v862_v33 = vadd.f32 %v861_v11, %v833_v8  ;;  %v890_v21 = vpop.f32.mrf.mxu3  ;;  %v680_v2 = vld [vmem:[#allocation8 + $0x8c8] sm:$0xff]  ;;  %v494_v8 = vld [vmem:[#allocation8 + $0x2f8] sm:$0xff] }
  0xe2   : > { %1342 = vmatpush.msra.mxu3 %v733_v7  ;;  %1153 = vmatmul.f32.gmra.mxu0 %v2249_v16  ;;  %v590_v11 = vld [vmem:[#allocation8 + $0x5f8] sm:$0xff] }
  0xe3   : > { %1182 = vmatmul.f32.gmra.mxu1 %v2181_v62  ;;  %1255 = vmatpush.msra.mxu0 %v445_v9  ;;  %v2253_v26 = vadd.f32 %v890_v21, %v862_v33  ;;  %v776_v33 = vld [vmem:[#allocation8 + $0xbc8] sm:$0xff]  ;;  %v770_v21 = vld [vmem:[#allocation8 + $0xb98] sm:$0xff] }
  0xe4   : > { %1284 = vmatpush.msra.mxu1 %v541_v13  ;;  %1315 = vmatpush.msra.mxu2 %v625_v15  ;;  %v674_v13 = vld [vmem:[#allocation8 + $0x898] sm:$0xff] }
  0xe5   : > { %1343 = vmatpush.msra.mxu3 %v727_v17  ;;  %1256 = vmatpush.msra.mxu0 %v439_v18  ;;  %v488_v17 = vld [vmem:[#allocation8 + $0x2c8] sm:$0xff] }
  0xe6   : > { %1285 = vmatpush.msra.mxu1 %v535_v50  ;;  %1316 = vmatpush.msra.mxu2 %v619_v20  ;;  %v584_v18 = vld [vmem:[#allocation8 + $0x5c8] sm:$0xff] }
  0xe7   : > { %1344 = vmatpush.msra.mxu3 %v721_v23  ;;  %1214 = vmatmul.f32.gmra.mxu2 %v2186_v12  ;;  %v806_v34 = vpop.f32.mrf.mxu0  ;;  %v668_v50 = vld [vmem:[#allocation8 + $0x868] sm:$0xff] }
  0xe8   : > { %1257 = vmatpush.msra.mxu0 %v433_v27  ;;  %1286 = vmatpush.msra.mxu1 %v529_v28  ;;  %v835_v38 = vpop.f32.mrf.mxu1  ;;  %v864_v41 = vpop.f32.mrf.mxu2  ;;  %v482_v27 = vld [vmem:[#allocation8 + $0x298] sm:$0xff] }
  0xe9   : > { %1317 = vmatpush.msra.mxu2 %v613_v29  ;;  %1345 = vmatpush.msra.mxu3 %v715_v30  ;;  %v836_v51 = vadd.f32 %v835_v38, %v806_v34  ;;  %v578_v28 = vld [vmem:[#allocation8 + $0x598] sm:$0xff]  ;;  %v764_v30 = vld [vmem:[#allocation8 + $0xb68] sm:$0xff] }
  0xea   : > { %1243 = vmatmul.f32.gmra.mxu3 %v2190_v19  ;;  %1258 = vmatpush.msra.mxu0 %v427_v32  ;;  %v662_v29 = vld [vmem:[#allocation8 + $0x838] sm:$0xff]  ;;  %v476_v32 = vld [vmem:[#allocation8 + $0x268] sm:$0xff] }
  0xeb   : > { %1287 = vmatpush.msra.mxu1 %v523_v35  ;;  %1318 = vmatpush.msra.mxu2 %v607_v36  ;;  %v865_v44 = vadd.f32 %v864_v41, %v836_v51  ;;  %v893_v54 = vpop.f32.mrf.mxu3  ;;  %v572_v35 = vld [vmem:[#allocation8 + $0x568] sm:$0xff]  ;;  %v470_v41 = vld [vmem:[#allocation8 + $0x238] sm:$0xff] }
  0xec   : > { %1346 = vmatpush.msra.mxu3 %v709_v39  ;;  %1156 = vmatmul.f32.gmra.mxu0 %v2258_v45  ;;  %v656_v36 = vld [vmem:[#allocation8 + $0x808] sm:$0xff]  ;;  %v758_v39 = vld [vmem:[#allocation8 + $0xb38] sm:$0xff] }
  0xed   : > { %1185 = vmatmul.f32.gmra.mxu1 %v2194_v24  ;;  %1259 = vmatpush.msra.mxu0 %v421_v40  ;;  %v2262_v58 = vadd.f32 %v893_v54, %v865_v44  ;;  %v644_v54 = vld [vmem:[#allocation8 + $0x7a8] sm:$0xff] }
  0xee   : > { %1288 = vmatpush.msra.mxu1 %v517_v42  ;;  %1319 = vmatpush.msra.mxu2 %v601_v43  ;;  %v566_v42 = vld [vmem:[#allocation8 + $0x538] sm:$0xff] }
  0xef   : > { %1347 = vmatpush.msra.mxu3 %v703_v46  ;;  %1260 = vmatpush.msra.mxu0 %v415_v47  ;;  %v650_v43 = vld [vmem:[#allocation8 + $0x7d8] sm:$0xff]  ;;  %v752_v46 = vld [vmem:[#allocation8 + $0xb08] sm:$0xff] }
  0xf0   : > { %1289 = vmatpush.msra.mxu1 %v511_v52  ;;  %1320 = vmatpush.msra.mxu2 %v595_v53  ;;  %v464_v47 = vld [vmem:[#allocation8 + $0x208] sm:$0xff] }
  0xf1   : > { %1348 = vmatpush.msra.mxu3 %v697_v55  ;;  %1261 = vmatpush.msra.mxu0 %v409_v57  ;;  %v809_v1 = vpop.f32.mrf.mxu0  ;;  %v560_v53 = vld [vmem:[#allocation8 + $0x508] sm:$0xff]  ;;  %v746_v57 = vld [vmem:[#allocation8 + $0xad8] sm:$0xff] }
  0xf2   : > { %1290 = vmatpush.msra.mxu1 %v505_v59  ;;  %1321 = vmatmul.f32.vlgmr.msra.gmra.mxu2 %v2128_v4  ;;  %v838_v3 = vpop.f32.mrf.mxu1  ;;  %v867_v9 = vpop.f32.mrf.mxu2  ;;  %v458_v59 = vld [vmem:[#allocation8 + $0x1d8] sm:$0xff] }
  0xf3   : > { %1349 = vmatpush.msra.mxu3 %v691_v60  ;;  %1421 = vmatpush.msrb.mxu2 %v686_v61  ;;  %v839_v7 = vadd.f32 %v838_v3, %v809_v1  ;;  %v554_v60 = vld [vmem:[#allocation8 + $0x4d8] sm:$0xff]  ;;  %v632_v3 = vld [vmem:[#allocation8 + $0x748] sm:$0xff] }
  0xf4   : > { %1262 = vmatpush.msra.mxu0 %v403_v63  ;;  %1291 = vmatpush.msra.mxu1 %v499_v0  ;;  %v638_v61 = vld [vmem:[#allocation8 + $0x778] sm:$0xff]  ;;  %v740_v63 = vld [vmem:[#allocation8 + $0xaa8] sm:$0xff] }
  0xf5   : > { %1350 = vmatmul.f32.vlgmr.msra.gmra.mxu3 %v2133_v5  ;;  %1422 = vmatpush.msrb.mxu2 %v680_v2  ;;  %v868_v15 = vadd.f32 %v867_v9, %v839_v7  ;;  %v896_v20 = vpop.f32.mrf.mxu3  ;;  %v452_v0 = vld [vmem:[#allocation8 + $0x1a8] sm:$0xff] }
  0xf6   : > { %1450 = vmatpush.msrb.mxu3 %v782_v6  ;;  %1263 = vmatmul.f32.vlgmr.msra.gmra.mxu0 %v2233_v22  ;;  %v548_v2 = vld [vmem:[#allocation8 + $0x4a8] sm:$0xff] }
  0xf7   : > { %1292 = vmatmul.f32.vlgmr.msra.gmra.mxu1 %v2143_v14  ;;  %1363 = vmatpush.msrb.mxu0 %v494_v8  ;;  %v2268_v23 = vadd.f32 %v896_v20, %v868_v15  ;;  %v734_v8 = vld [vmem:[#allocation8 + $0xa78] sm:$0xff]  ;;  %v536_v20 = vld [vmem:[#allocation8 + $0x448] sm:$0xff] }
  0xf8   : > { %1392 = vmatpush.msrb.mxu1 %v590_v11  ;;  %1423 = vmatpush.msrb.mxu2 %v674_v13  ;;  %v446_v11 = vld [vmem:[#allocation8 + $0x178] sm:$0xff] }
  0xf9   : > { %1451 = vmatpush.msrb.mxu3 %v776_v33  ;;  %1364 = vmatpush.msrb.mxu0 %v488_v17  ;;  %v542_v13 = vld [vmem:[#allocation8 + $0x478] sm:$0xff] }
  0xfa   : > { %1393 = vmatpush.msrb.mxu1 %v584_v18  ;;  %1424 = vmatpush.msrb.mxu2 %v668_v50  ;;  %v626_v15 = vld [vmem:[#allocation8 + $0x718] sm:$0xff]  ;;  %v728_v18 = vld [vmem:[#allocation8 + $0xa48] sm:$0xff] }
  0xfb   : > { %1452 = vmatpush.msrb.mxu3 %v770_v21  ;;  %1324 = vmatmul.f32.gmra.mxu2 %v2150_v25  ;;  %v916_v34 = vpop.f32.mrf.mxu0  ;;  %v440_v50 = vld [vmem:[#allocation8 + $0x148] sm:$0xff] }
  0xfc   : > { %1365 = vmatpush.msrb.mxu0 %v482_v27  ;;  %1394 = vmatpush.msrb.mxu1 %v578_v28  ;;  %v945_v38 = vpop.f32.mrf.mxu1  ;;  %v620_v21 = vld [vmem:[#allocation8 + $0x6e8] sm:$0xff]  ;;  %v722_v28 = vld [vmem:[#allocation8 + $0xa18] sm:$0xff] }
  0xfd   : > { %1425 = vmatpush.msrb.mxu2 %v662_v29  ;;  %1453 = vmatpush.msrb.mxu3 %v764_v30  ;;  %v946_v51 = vadd.f32 %v945_v38, %v916_v34  ;;  %v974_v40 = vpop.f32.mrf.mxu2  ;;  %v434_v29 = vld [vmem:[#allocation8 + $0x118] sm:$0xff]  ;;  %v716_v34 = vld [vmem:[#allocation8 + $0x9e8] sm:$0xff] }
  0xfe   : > { %1353 = vmatmul.f32.gmra.mxu3 %v2157_v31  ;;  %1366 = vmatpush.msrb.mxu0 %v476_v32  ;;  %v530_v30 = vld [vmem:[#allocation8 + $0x418] sm:$0xff]  ;;  %v524_v38 = vld [vmem:[#allocation8 + $0x3e8] sm:$0xff] }
  0xff   : > { %1395 = vmatpush.msrb.mxu1 %v572_v35  ;;  %1426 = vmatpush.msrb.mxu2 %v656_v36  ;;  %v975_v44 = vadd.f32 %v974_v40, %v946_v51  ;;  %v614_v32 = vld [vmem:[#allocation8 + $0x6b8] sm:$0xff]  ;;  %v428_v35 = vld [vmem:[#allocation8 + $0xe8] sm:$0xff] }
 0x100   : > { %1454 = vmatpush.msrb.mxu3 %v758_v39  ;;  %1266 = vmatmul.f32.gmra.mxu0 %v2240_v49  ;;  %v1003_v52 = vpop.f32.mrf.mxu3  ;;  %v608_v39 = vld [vmem:[#allocation8 + $0x688] sm:$0xff] }
 0x101   : > { %1295 = vmatmul.f32.gmra.mxu1 %v2164_v37  ;;  %1367 = vmatpush.msrb.mxu0 %v470_v41  ;;  %v2274_v55 = vadd.f32 %v1003_v52, %v975_v44  ;;  %v710_v41 = vld [vmem:[#allocation8 + $0x9b8] sm:$0xff] }
 0x102   : > { %1396 = vmatpush.msrb.mxu1 %v566_v42  ;;  %1427 = vmatpush.msrb.mxu2 %v650_v43  ;;  %v422_v43 = vld [vmem:[#allocation8 + $0xb8] sm:$0xff] }
 0x103   : > { %1455 = vmatpush.msrb.mxu3 %v752_v46  ;;  %1368 = vmatpush.msrb.mxu0 %v464_v47  ;;  %v518_v44 = vld [vmem:[#allocation8 + $0x3b8] sm:$0xff] }
 0x104   : > { %1397 = vmatpush.msrb.mxu1 %v560_v53  ;;  %1428 = vmatpush.msrb.mxu2 %v644_v54  ;;  %v602_v46 = vld [vmem:[#allocation8 + $0x658] sm:$0xff]  ;;  %v704_v53 = vld [vmem:[#allocation8 + $0x988] sm:$0xff] }
 0x105   : > { %1456 = vmatpush.msrb.mxu3 %v746_v57  ;;  %1327 = vmatmul.f32.gmra.mxu2 %v2171_v48  ;;  %v919_v1 = vpop.f32.mrf.mxu0  ;;  %v416_v54 = vld [vmem:[#allocation8 + $0x88] sm:$0xff] }
 0x106   : > { %1369 = vmatpush.msrb.mxu0 %v458_v59  ;;  %1398 = vmatpush.msrb.mxu1 %v554_v60  ;;  %v948_v6 = vpop.f32.mrf.mxu1  ;;  %v977_v7 = vpop.f32.mrf.mxu2  ;;  %v512_v57 = vld [vmem:[#allocation8 + $0x388] sm:$0xff] }
 0x107   : > { %1429 = vmatpush.msrb.mxu2 %v638_v61  ;;  %1457 = vmatpush.msrb.mxu3 %v740_v63  ;;  %v949_v9 = vadd.f32 %v948_v6, %v919_v1  ;;  %v596_v59 = vld [vmem:[#allocation8 + $0x628] sm:$0xff]  ;;  %v698_v61 = vld [vmem:[#allocation8 + $0x958] sm:$0xff] }
 0x108   : > { %1356 = vmatmul.f32.gmra.mxu3 %v2176_v56  ;;  %1370 = vmatpush.msrb.mxu0 %v452_v0  ;;  %v410_v63 = vld [vmem:[#allocation8 + $0x58] sm:$0xff]  ;;  %v692_v1 = vld [vmem:[#allocation8 + $0x928] sm:$0xff] }
 0x109   : > { %1399 = vmatpush.msrb.mxu1 %v548_v2  ;;  %1430 = vmatpush.msrb.mxu2 %v632_v3  ;;  %v978_v33 = vadd.f32 %v977_v7, %v949_v9  ;;  %v1006_v17 = vpop.f32.mrf.mxu3  ;;  %v506_v0 = vld [vmem:[#allocation8 + $0x358] sm:$0xff]  ;;  %v404_v2 = vld [vmem:[#allocation8 + $0x28] sm:$0xff] }
 0x10a   : > { %1458 = vmatpush.msrb.mxu3 %v734_v8  ;;  %1269 = vmatmul.f32.gmra.mxu0 %v2249_v16  ;;  %v500_v3 = vld [vmem:[#allocation8 + $0x328] sm:$0xff] }
 0x10b   : > { %1298 = vmatmul.f32.gmra.mxu1 %v2181_v62  ;;  %1371 = vmatpush.msrb.mxu0 %v446_v11  ;;  %v2280_v27 = vadd.f32 %v1006_v17, %v978_v33 }
 0x10c   : > { %1400 = vmatpush.msrb.mxu1 %v542_v13  ;;  %1431 = vmatpush.msrb.mxu2 %v626_v15 }
 0x10d   : > { %1459 = vmatpush.msrb.mxu3 %v728_v18  ;;  %1372 = vmatpush.msrb.mxu0 %v440_v50 }
 0x10e   : > { %1401 = vmatpush.msrb.mxu1 %v536_v20  ;;  %1432 = vmatpush.msrb.mxu2 %v620_v21 }
 0x10f   : > { %1460 = vmatpush.msrb.mxu3 %v722_v28  ;;  %1330 = vmatmul.f32.gmra.mxu2 %v2186_v12  ;;  %v922_v36 = vpop.f32.mrf.mxu0 }
 0x110   : > { %1373 = vmatpush.msrb.mxu0 %v434_v29  ;;  %1402 = vmatpush.msrb.mxu1 %v530_v30  ;;  %v951_v51 = vpop.f32.mrf.mxu1  ;;  %v980_v40 = vpop.f32.mrf.mxu2 }
 0x111   : > { %1433 = vmatpush.msrb.mxu2 %v614_v32  ;;  %1461 = vmatpush.msrb.mxu3 %v716_v34  ;;  %v952_v42 = vadd.f32 %v951_v51, %v922_v36 }
 0x112   : > { %1359 = vmatmul.f32.gmra.mxu3 %v2190_v19  ;;  %1374 = vmatpush.msrb.mxu0 %v428_v35 }
 0x113   : > { %1403 = vmatpush.msrb.mxu1 %v524_v38  ;;  %1434 = vmatpush.msrb.mxu2 %v608_v39  ;;  %v981_v47 = vadd.f32 %v980_v40, %v952_v42  ;;  %v1009_v52 = vpop.f32.mrf.mxu3 }
 0x114   : > { %1462 = vmatpush.msrb.mxu3 %v710_v41  ;;  %1272 = vmatmul.f32.gmra.mxu0 %v2258_v45 }
 0x115   : > { %1301 = vmatmul.f32.gmra.mxu1 %v2194_v24  ;;  %1375 = vmatpush.msrb.mxu0 %v422_v43  ;;  %v2286_v60 = vadd.f32 %v1009_v52, %v981_v47  ;;  %v1479_v43 = vmul.f32 %v2244_v10, %v2244_v10 }
 0x116   : > { %1404 = vmatpush.msrb.mxu1 %v518_v44  ;;  %1435 = vmatpush.msrb.mxu2 %v602_v46 }
 0x117   : > { %1463 = vmatpush.msrb.mxu3 %v704_v53  ;;  %1376 = vmatpush.msrb.mxu0 %v416_v54 }
 0x118   : > { %1405 = vmatpush.msrb.mxu1 %v512_v57  ;;  %1436 = vmatpush.msrb.mxu2 %v596_v59 }
 0x119   : > { %1464 = vmatpush.msrb.mxu3 %v698_v61  ;;  %1377 = vmatpush.msrb.mxu0 %v410_v63  ;;  %v925_v6 = vpop.f32.mrf.mxu0  ;;  %v1482_v63 = vmul.f32 %v2253_v26, %v2253_v26 }
 0x11a   : > { %1406 = vmatpush.msrb.mxu1 %v506_v0  ;;  %1437 = vmatmul.f32.vlgmr.msrb.gmra.mxu2 %v2128_v4  ;;  %v954_v7 = vpop.f32.mrf.mxu1  ;;  %v983_v8 = vpop.f32.mrf.mxu2 }
 0x11b   : > { %1465 = vmatpush.msrb.mxu3 %v692_v1  ;;  %1378 = vmatpush.msrb.mxu0 %v404_v2  ;;  %v955_v9 = vadd.f32 %v954_v7, %v925_v6 }
 0x11c   : > { %1407 = vmatpush.msrb.mxu1 %v500_v3  ;;  %1466 = vmatmul.f32.vlgmr.msrb.gmra.mxu3 %v2133_v5 }
 0x11d   : > { %1379 = vmatmul.f32.vlgmr.msrb.gmra.mxu0 %v2233_v22  ;;  %1408 = vmatmul.f32.vlgmr.msrb.gmra.mxu1 %v2143_v14  ;;  %v984_v11 = vadd.f32 %v983_v8, %v955_v9  ;;  %v1012_v13 = vpop.f32.mrf.mxu3 }
 0x11f   : > { %v2292_v15 = vadd.f32 %v1012_v13, %v984_v11  ;;  %v1485_v11 = vmul.f32 %v2262_v58, %v2262_v58 }
 0x122   : > { %1440 = vmatmul.f32.gmra.mxu2 %v2150_v25 }
 0x123   : > { %v1032_v33 = vpop.f32.mrf.mxu0 }
 0x124   : > { %1469 = vmatmul.f32.gmra.mxu3 %v2157_v31  ;;  %v1061_v4 = vpop.f32.mrf.mxu1 }
 0x125   : > { %1382 = vmatmul.f32.gmra.mxu0 %v2240_v49  ;;  %1411 = vmatmul.f32.gmra.mxu1 %v2164_v37  ;;  %v1062_v17 = vadd.f32 %v1061_v4, %v1032_v33  ;;  %v1090_v5 = vpop.f32.mrf.mxu2 }
 0x127   : > { %v1091_v18 = vadd.f32 %v1090_v5, %v1062_v17 }
 0x128   : > { %v1119_v22 = vpop.f32.mrf.mxu3 }
 0x129   : > { %v2298_v50 = vadd.f32 %v1119_v22, %v1091_v18 }
 0x12a   : > { %1443 = vmatmul.f32.gmra.mxu2 %v2171_v48 }
 0x12c   : > { %1472 = vmatmul.f32.gmra.mxu3 %v2176_v56 }
 0x12d   : > { %1385 = vmatmul.f32.gmra.mxu0 %v2249_v16  ;;  %1414 = vmatmul.f32.gmra.mxu1 %v2181_v62  ;;  %v1035_v14 = vpop.f32.mrf.mxu0 }
 0x12e   : > { %v1064_v25 = vpop.f32.mrf.mxu1  ;;  %v1093_v31 = vpop.f32.mrf.mxu2 }
 0x12f   : > { %v1065_v49 = vadd.f32 %v1064_v25, %v1035_v14  ;;  %v1488_v25 = vmul.f32 %v2268_v23, %v2268_v23 }
 0x131   : > { %v1094_v20 = vadd.f32 %v1093_v31, %v1065_v49  ;;  %v1122_v37 = vpop.f32.mrf.mxu3 }
 0x132   : > { %1446 = vmatmul.f32.gmra.mxu2 %v2186_v12 }
 0x133   : > { %v2305_v21 = vadd.f32 %v1122_v37, %v1094_v20 }
 0x134   : > { %1475 = vmatmul.f32.gmra.mxu3 %v2190_v19 }
 0x135   : > { %1388 = vmatmul.f32.gmra.mxu0 %v2258_v45  ;;  %1417 = vmatmul.f32.gmra.mxu1 %v2194_v24 }
 0x137   : > { %v1038_v48 = vpop.f32.mrf.mxu0 }
 0x138   : > { %v1067_v56 = vpop.f32.mrf.mxu1  ;;  %v1096_v16 = vpop.f32.mrf.mxu2 }
 0x139   : > { %v1068_v62 = vadd.f32 %v1067_v56, %v1038_v48 }
 0x13b   : > { %v1097_v28 = vadd.f32 %v1096_v16, %v1068_v62  ;;  %v1125_v29 = vpop.f32.mrf.mxu3 }
 0x13d   : > { %v2310_v30 = vadd.f32 %v1125_v29, %v1097_v28  ;;  %v1480_v28 = vmul.f32 %v2274_v55, %v2274_v55 }
 0x141   : > { %v1041_v32 = vpop.f32.mrf.mxu0 }
 0x142   : > { %v1070_v34 = vpop.f32.mrf.mxu1  ;;  %v1099_v12 = vpop.f32.mrf.mxu2 }
 0x143   : > { %v1071_v35 = vadd.f32 %v1070_v34, %v1041_v32 }
 0x145   : > { %v1100_v36 = vadd.f32 %v1099_v12, %v1071_v35  ;;  %v1128_v38 = vpop.f32.mrf.mxu3 }
 0x147   : > { %v2312_v19 = vadd.f32 %v1128_v38, %v1100_v36 }
 0x14b   : > { %v1148_v45 = vpop.f32.mrf.mxu0 }
 0x14c   : > { %v1177_v39 = vpop.f32.mrf.mxu1 }
 0x14d   : > { %v1178_v24 = vadd.f32 %v1177_v39, %v1148_v45  ;;  %v1206_v51 = vpop.f32.mrf.mxu2  ;;  %v1483_v39 = vmul.f32 %v2280_v27, %v2280_v27 }
 0x14f   : > { %v1207_v40 = vadd.f32 %v1206_v51, %v1178_v24 }
 0x150   : > { %v1235_v41 = vpop.f32.mrf.mxu3 }
 0x151   : > { %v1236_v42 = vadd.f32 %v1235_v41, %v1207_v40 }
 0x153   : > { %v1491_v44 = vmul.f32 %v1236_v42, %v1236_v42 }
 0x155   : > { %v1503_v46 = vadd.f32 %v1491_v44, %v1479_v43  ;;  %v1151_v47 = vpop.f32.mrf.mxu0 }
 0x156   : > { %v1180_v52 = vpop.f32.mrf.mxu1  ;;  %v1209_v53 = vpop.f32.mrf.mxu2 }
 0x157   : > { %1515 = vst [vmem:[%s2317_s20] sm:$0xff] %v1503_v46  ;;  %v1181_v54 = vadd.f32 %v1180_v52, %v1151_v47  ;;  %v1486_v47 = vmul.f32 %v2286_v60, %v2286_v60 }
 0x159   : > { %v1210_v57 = vadd.f32 %v1209_v53, %v1181_v54  ;;  %v1238_v59 = vpop.f32.mrf.mxu3 }
 0x15b   : > { %v1239_v61 = vadd.f32 %v1238_v59, %v1210_v57 }
 0x15d   : > { %v1494_v0 = vmul.f32 %v1239_v61, %v1239_v61 }
 0x15f   : > { %v1506_v10 = vadd.f32 %v1494_v0, %v1482_v63  ;;  %v1154_v1 = vpop.f32.mrf.mxu0 }
 0x160   : > { %v1183_v2 = vpop.f32.mrf.mxu1  ;;  %v1212_v3 = vpop.f32.mrf.mxu2 }
 0x161   : > { %1518 = vst [vmem:[%s2317_s20 + $0x18] sm:$0xff] %v1506_v10  ;;  %v1184_v6 = vadd.f32 %v1183_v2, %v1154_v1  ;;  %v1489_v10 = vmul.f32 %v2292_v15, %v2292_v15 }
 0x163   : > { %v1213_v7 = vadd.f32 %v1212_v3, %v1184_v6  ;;  %v1241_v8 = vpop.f32.mrf.mxu3 }
 0x165   : > { %v1242_v9 = vadd.f32 %v1241_v8, %v1213_v7 }
 0x167   : > { %v1497_v13 = vmul.f32 %v1242_v9, %v1242_v9 }
 0x169   : > { %v1509_v33 = vadd.f32 %v1497_v13, %v1485_v11  ;;  %v1157_v4 = vpop.f32.mrf.mxu0  ;;  %v1481_v13 = vmul.f32 %v2298_v50, %v2298_v50 }
 0x16a   : > { %v1186_v17 = vpop.f32.mrf.mxu1  ;;  %v1215_v26 = vpop.f32.mrf.mxu2 }
 0x16b   : > { %1521 = vst [vmem:[%s2317_s20 + $0x30] sm:$0xff] %v1509_v33  ;;  %v1187_v5 = vadd.f32 %v1186_v17, %v1157_v4 }
 0x16d   : > { %v1216_v18 = vadd.f32 %v1215_v26, %v1187_v5  ;;  %v1244_v22 = vpop.f32.mrf.mxu3 }
 0x16f   : > { %v1245_v14 = vadd.f32 %v1244_v22, %v1216_v18 }
 0x171   : > { %v1500_v31 = vmul.f32 %v1245_v14, %v1245_v14 }
 0x173   : > { %v1512_v49 = vadd.f32 %v1500_v31, %v1488_v25  ;;  %v1264_v20 = vpop.f32.mrf.mxu0  ;;  %v1484_v25 = vmul.f32 %v2305_v21, %v2305_v21 }
 0x174   : > { %v1293_v37 = vpop.f32.mrf.mxu1 }
 0x175   : > { %1524 = vst [vmem:[%s2317_s20 + $0x48] sm:$0xff] %v1512_v49  ;;  %v1294_v58 = vadd.f32 %v1293_v37, %v1264_v20  ;;  %v1322_v48 = vpop.f32.mrf.mxu2 }
 0x177   : > { %v1323_v56 = vadd.f32 %v1322_v48, %v1294_v58 }
 0x178   : > { %v1351_v16 = vpop.f32.mrf.mxu3 }
 0x179   : > { %v1352_v62 = vadd.f32 %v1351_v16, %v1323_v56 }
 0x17b   : > { %v1492_v29 = vmul.f32 %v1352_v62, %v1352_v62  ;;  %v1487_v62 = vmul.f32 %v2310_v30, %v2310_v30  ;;  %v1490_v30 = vmul.f32 %v2312_v19, %v2312_v19 }
 0x17d   : > { %v1504_v32 = vadd.f32 %v1492_v29, %v1480_v28  ;;  %v1267_v34 = vpop.f32.mrf.mxu0 }
 0x17e   : > { %v1296_v12 = vpop.f32.mrf.mxu1  ;;  %v1325_v23 = vpop.f32.mrf.mxu2 }
 0x17f   : > { %1516 = vst [vmem:[%s2317_s20 + $0x8] sm:$0xff] %v1504_v32  ;;  %v1297_v35 = vadd.f32 %v1296_v12, %v1267_v34 }
 0x181   : > { %v1326_v36 = vadd.f32 %v1325_v23, %v1297_v35  ;;  %v1354_v38 = vpop.f32.mrf.mxu3 }
 0x183   : > { %v1355_v45 = vadd.f32 %v1354_v38, %v1326_v36 }
 0x185   : > { %v1495_v24 = vmul.f32 %v1355_v45, %v1355_v45 }
 0x187   : > { %v1507_v51 = vadd.f32 %v1495_v24, %v1483_v39  ;;  %v1270_v40 = vpop.f32.mrf.mxu0 }
 0x188   : > { %v1299_v41 = vpop.f32.mrf.mxu1  ;;  %v1328_v55 = vpop.f32.mrf.mxu2 }
 0x189   : > { %1519 = vst [vmem:[%s2317_s20 + $0x20] sm:$0xff] %v1507_v51  ;;  %v1300_v42 = vadd.f32 %v1299_v41, %v1270_v40 }
 0x18b   : > { %v1329_v43 = vadd.f32 %v1328_v55, %v1300_v42  ;;  %v1357_v44 = vpop.f32.mrf.mxu3 }
 0x18d   : > { %v1358_v46 = vadd.f32 %v1357_v44, %v1329_v43 }
 0x18f   : > { %v1498_v52 = vmul.f32 %v1358_v46, %v1358_v46 }
 0x191   : > { %v1510_v53 = vadd.f32 %v1498_v52, %v1486_v47  ;;  %v1273_v54 = vpop.f32.mrf.mxu0 }
 0x192   : > { %v1302_v57 = vpop.f32.mrf.mxu1  ;;  %v1331_v27 = vpop.f32.mrf.mxu2 }
 0x193   : > { %1522 = vst [vmem:[%s2317_s20 + $0x38] sm:$0xff] %v1510_v53  ;;  %v1303_v59 = vadd.f32 %v1302_v57, %v1273_v54 }
 0x195   : > { %v1332_v61 = vadd.f32 %v1331_v27, %v1303_v59  ;;  %v1360_v63 = vpop.f32.mrf.mxu3 }
 0x197   : > { %v1361_v0 = vadd.f32 %v1360_v63, %v1332_v61 }
 0x199   : > { %v1501_v1 = vmul.f32 %v1361_v0, %v1361_v0 }
 0x19a   : > { %v1380_v2 = vpop.f32.mrf.mxu0  ;;  %v1409_v3 = vpop.f32.mrf.mxu1 }
 0x19b   : > { %v1513_v6 = vadd.f32 %v1501_v1, %v1489_v10  ;;  %v1410_v60 = vadd.f32 %v1409_v3, %v1380_v2 }
 0x19d   : > { %1525 = vst [vmem:[%s2317_s20 + $0x50] sm:$0xff] %v1513_v6  ;;  %v1438_v7 = vpop.f32.mrf.mxu2 }
 0x19e   : > { %v1439_v8 = vadd.f32 %v1438_v7, %v1410_v60 }
 0x19f   : > { %v1467_v9 = vpop.f32.mrf.mxu3 }
 0x1a0   : > { %v1468_v11 = vadd.f32 %v1467_v9, %v1439_v8 }
 0x1a2   : > { %v1493_v33 = vmul.f32 %v1468_v11, %v1468_v11  ;;  %v1383_v4 = vpop.f32.mrf.mxu0  ;;  %v1412_v17 = vpop.f32.mrf.mxu1 }
 0x1a3   : > { %v1413_v26 = vadd.f32 %v1412_v17, %v1383_v4 }
 0x1a4   : > { %v1505_v15 = vadd.f32 %v1493_v33, %v1481_v13 }
 0x1a5   : > { %v1441_v5 = vpop.f32.mrf.mxu2 }
 0x1a6   : > { %1517 = vst [vmem:[%s2317_s20 + $0x10] sm:$0xff] %v1505_v15  ;;  %v1442_v18 = vadd.f32 %v1441_v5, %v1413_v26 }
 0x1a7   : > { %v1470_v22 = vpop.f32.mrf.mxu3 }
 0x1a8   : > { %v1471_v14 = vadd.f32 %v1470_v22, %v1442_v18 }
 0x1aa   : > { %v1496_v31 = vmul.f32 %v1471_v14, %v1471_v14  ;;  %v1386_v49 = vpop.f32.mrf.mxu0  ;;  %v1415_v20 = vpop.f32.mrf.mxu1 }
 0x1ab   : > { %v1416_v37 = vadd.f32 %v1415_v20, %v1386_v49 }
 0x1ac   : > { %v1508_v50 = vadd.f32 %v1496_v31, %v1484_v25 }
 0x1ad   : > { %v1444_v58 = vpop.f32.mrf.mxu2 }
 0x1ae   : > { %1520 = vst [vmem:[%s2317_s20 + $0x28] sm:$0xff] %v1508_v50  ;;  %v1445_v48 = vadd.f32 %v1444_v58, %v1416_v37 }
 0x1af   : > { %v1473_v56 = vpop.f32.mrf.mxu3 }
 0x1b0   : > { %v1474_v16 = vadd.f32 %v1473_v56, %v1445_v48 }
 0x1b2   : > { %v1499_v28 = vmul.f32 %v1474_v16, %v1474_v16  ;;  %v1389_v29 = vpop.f32.mrf.mxu0  ;;  %v1418_v32 = vpop.f32.mrf.mxu1 }
 0x1b3   : > { %v1419_v21 = vadd.f32 %v1418_v32, %v1389_v29 }
 0x1b4   : > { %v1511_v34 = vadd.f32 %v1499_v28, %v1487_v62 }
 0x1b5   : > { %v1447_v12 = vpop.f32.mrf.mxu2 }
 0x1b6   : > { %1523 = vst [vmem:[%s2317_s20 + $0x40] sm:$0xff] %v1511_v34  ;;  %v1448_v23 = vadd.f32 %v1447_v12, %v1419_v21 }
 0x1b7   : > { %v1476_v35 = vpop.f32.mrf.mxu3 }
 0x1b8   : > { %v1477_v36 = vadd.f32 %v1476_v35, %v1448_v23 }
 0x1ba   : > { %v1502_v38 = vmul.f32 %v1477_v36, %v1477_v36 }
 0x1bc   : > { %v1514_v45 = vadd.f32 %v1502_v38, %v1490_v30 }
 0x1be   : > { %1526 = vst [vmem:[%s2317_s20 + $0x58] sm:$0xff] %v1514_v45 }
 0x1bf   : > { %1902 = shalt.err (!%p1899_p0)
}
 0x1c0   : > { %s1972_s19 = smov 384   ;;  %s1973_s30 = smov 24  }
 0x1c1   : > { %1705 = dma.vmem_to_hbm [thread:$0]  (%p2065_p5), %s1546_s15, 1536, %s1548_s4, %s1528_s6, %s1972_s19, %s1972_s19, %s1973_s30  }
 0x1c2 PF: > { %s1562_s16 = sand.u32 1, %s1945_s12   ;;  %p1719_p3 = pnand %p1682_p11, %p2039_p6 }
 0x1c3   : > { %s1563_s25 = scalar_lea.sflag [#allocation5], %s1562_s16 }
 0x1c4   : > { %p1720_p7 = pneg %p1719_p3 }
 0x1c6   : > { %1940 = dma.done.wait (%p1720_p7), %s1563_s25, 1536  }
 0x1c7   : > { %1942 = vsyncadd (%p1720_p7), %s1563_s25, 4294965760  ;;  %s22_s17 = sadd.s32 1, %s1965_s17   ;;  %s2408_s9 = sld [smem:[#allocation16_spill]] }
 0x1c8   : > { %p19_p9 = scmp.ge.s32.totalorder %s22_s17, 4   ;;  %s2409_s15 = sld [smem:[#allocation14_spill]] }
 0x1c9   : > { %s2410_s16 = sld [smem:[#allocation15_spill]]  ;;  %s2411_s12 = smov %s1949_s13 }
 0x1ca   : > { %s2412_s13 = smov %s1953_s14  ;;  %21 = sbr.rel (!%p19_p9) target bundleno = 10 (0xa), region = 95 }
 0x1cd   : > { %s2413_s14 = smov %s2408_s9 }
 0x1cf   :  { %1569 = vsyncpa [#allocation4], 1 }
 0x1d0   :  { %1571 = vsyncpa [#allocation4 + $0x1], 1 }
 0x1d1   :  { %1572 = vsyncpa [#allocation7], 1 }
 0x1d2   :  { %1574 = vsyncpa [#allocation7 + $0x1], 1 }
 0x1d3   :  { %1575 = vsyncpa [#allocation5], 1 }
 0x1d4   :  { %1577 = vsyncpa [#allocation5 + $0x1], 1 }

// kernel: tpu_custom_call.1
= control target key start
LH: loop header
LB: loop body
LE: loop exit
PB: predicated region body
PF: predicated region fallthrough
CT: control target
= control target key end

     0   :  { %s2392_s0 = inlined_call_operand.hbm [shape: f32[2,48,128], index: 0, kind: input, shape index: {}]   ;;  %s2393_s1 = inlined_call_operand.hbm [shape: f32[2,48,128], index: 1, kind: input, shape index: {}]   ;;  %s2394_s2 = inlined_call_operand.hbm [shape: f32[512,768], index: 2, kind: input, shape index: {}]   ;;  %s2395_s3 = inlined_call_operand.hbm [shape: f32[2,32,384], index: 3, kind: output, shape index: {}]  }
   0x1   :  { %2398 = sst [smem:[#allocation17_spill]] %s2394_s2 }
   0x2   :  { %8 = vsyncpa [#allocation4], 0 }
   0x3   :  { %10 = vsyncpa [#allocation4 + $0x1], 0 }
   0x4   :  { %11 = vsyncpa [#allocation7], 0 }
   0x5   :  { %13 = vsyncpa [#allocation7 + $0x1], 0 }
   0x6   :  { %14 = vsyncpa [#allocation5], 0 }
   0x7   :  { %16 = vsyncpa [#allocation5 + $0x1], 0  ;;  %s1994_s12 = smov 0   ;;  %s1996_s13 = smov 0  }
   0x8   :  { %s1998_s14 = smov 0   ;;  %s2000_s15 = smov 0  }
   0x9   :  { %s2002_s16 = smov 0   ;;  %s2004_s17 = smov 0  }
   0xa LB: > { %2399 = sst [smem:[#allocation14_spill]] %s1961_s16  ;;  %s2025_s18 = sadd.s32 4294967295, %s1965_s17   ;;  %s1965_s17 = sphi %s2004_s17, %s22_s17   ;;  %s1961_s16 = sphi %s2002_s16, %s2410_s16   ;;  %s1957_s15 = sphi %s2000_s15, %s2409_s15   ;;  %s1953_s14 = sphi %s1998_s14, %s2413_s14   ;;  %s1949_s13 = sphi %s1996_s13, %s2412_s13   ;;  %s1945_s12 = sphi %s1994_s12, %s2411_s12  }
   0xb   : > { %s1679_s19 = sadd.s32 4294967294, %s1965_s17   ;;  %p63_p0 = scmp.ne.s32.totalorder %s1949_s13, %s1945_s12 }
   0xc   : > { %p64_p1 = scmp.eq.s32.totalorder %s2025_s18, 0  ;;  %p149_p2 = scmp.eq.s32.totalorder %s2025_s18, 1 }
   0xd   : > { %p155_p3 = scmp.eq.s32.totalorder %s1679_s19, 1  ;;  %p1680_p5 = scmp.ge.s32.totalorder %s1965_s17, 1 }
   0xe   : > { %p2034_p4 = por %p64_p1, %p63_p0  ;;  %p162_p7 = scmp.lt.s32.totalorder %s1965_s17, 3 }
   0xf   : > { %p2039_p6 = por %p155_p3, %p63_p0  ;;  %s2402_s2 = sld [smem:[#allocation17_spill]] }
  0x10   : > { %p2047_p8 = pnand %p1680_p5, %p162_p7  ;;  %s1967_s26 = smov [#allocation8]  }
  0x11   : > { %s178_s27 = sshll.u32 %s1967_s26, 4  ;;  %p1682_p11 = scmp.ge.s32.totalorder %s1965_s17, 2  ;;  %s179_s27 = int_to_ptr.vmem [resolvable:$true] %s178_s27 }
  0x12   : > { %p1707_p9 = pneg %p2047_p8  ;;  %s1968_s28 = smov 768  }
  0x13   : > { %s1969_s29 = smov 48   ;;  %s37_s30 = sadd.s32 1, %s1961_s16 }
  0x14   : > { %p1708_p10 = pnand %p1707_p9, %p64_p1  ;;  %p39_p12 = scmp.ge.s32.totalorder %s37_s30, 2 }
  0x15   : > { %s176_s24 = sshll.u32 %s2402_s2, 4  ;;  %s50_s4 = sadd.s32 1, %s1953_s14  ;;  %s177_s24 = int_to_ptr.hbm [resolvable:$true] %s176_s24 }
  0x16   : > { %1710 = dma.hbm_to_vmem [thread:$0]  (!%p1708_p10), %s177_s24, 49152, %s179_s27, [#allocation7], %s1968_s28, %s1968_s28, %s1969_s29  }
  0x17   : > { %p57_p13 = scmp.ne.s32.totalorder %s1953_s14, %s1949_s13  ;;  %p58_p0 = scmp.eq.s32.totalorder %s1965_s17, 0 }
  0x18   : > { %s2415_s30 = smov (%p39_p12, %s37_s30), 0  ;;  %p1723_p7 = scmp.lt.s32.totalorder %s1965_s17, 2 }
  0x19   : > { %2404 = sst [smem:[#allocation15_spill]] %s2415_s30  ;;  %p59_p3 = por %p58_p0, %p57_p13 }
  0x1a   : > { %p2065_p5 = por %p149_p2, %p57_p13  ;;  %s45_s6 = ssub.s32 %s1961_s16, %s2415_s30 }
  0x1b   : > { %p48_p9 = scmp.eq.s32.totalorder %s45_s6, 0  ;;  %s192_s7 = sand.u32 1, %s1953_s14  }
  0x1c   : > { %s1683_s8 = sshll.u32 %s192_s7, 5  ;;  %s1694_s10 = smul.u32 48, %s1961_s16 }
  0x1d   : > { %s2074_s9 = scalar_select %p48_p9, %s1953_s14, %s50_s4  }
  0x1e   : > { %s196_s11 = scalar_lea.vmem [#allocation3], %s1683_s8  ;;  %p2077_p10 = pnand %p1723_p7, %p59_p3 }
  0x1f   : > { %2406 = sst [smem:[#allocation16_spill]] %s2074_s9  ;;  %s213_s19 = sshll.u32 %s196_s11, 4  ;;  %s214_s19 = int_to_ptr.vmem [resolvable:$true] %s213_s19 }
  0x20   : > { %s209_s26 = scalar_lea.hbm %s2392_s0, %s1694_s10  ;;  %s223_s28 = sand.u32 1, %s1965_s17  }
  0x21   : > { %s211_s27 = sshll.u32 %s209_s26, 4  ;;  %s193_s29 = scalar_lea.sflag [#allocation4], %s192_s7  ;;  %s212_s27 = int_to_ptr.hbm [resolvable:$true] %s211_s27 }
  0x22   : > { %s1970_s4 = smov 128   ;;  %s1971_s6 = smov 8  }
  0x23   : > { %1714 = dma.hbm_to_vmem [thread:$0]  (!%p2077_p10), %s212_s27, 512, %s214_s19, %s193_s29, %s1970_s4, %s1970_s4, %s1971_s6  }
  0x24   : > { %s1685_s8 = sshll.u32 %s192_s7, 4  ;;  %s1595_s30 = scalar_lea.hbm %s2393_s1, %s1694_s10 }
  0x25   : > { %s1596_s16 = scalar_lea.hbm %s1595_s30, 32  ;;  %s227_s9 = scalar_lea.vmem [#allocation6], %s1685_s8 }
  0x26   : > { %s239_s23 = sshll.u32 %s227_s9, 4  ;;  %s237_s24 = sshll.u32 %s1596_s16, 4  ;;  %s240_s23 = int_to_ptr.vmem [resolvable:$true] %s239_s23  ;;  %s238_s24 = int_to_ptr.hbm [resolvable:$true] %s237_s24 }
  0x27   : > { %s224_s26 = scalar_lea.sflag [#allocation7], %s223_s28  ;;  %251 = sbr.rel (%p2047_p8) target bundleno = 450 (0x1c2), region = 32 }
  0x28   : > { %1717 = dma.hbm_to_vmem [thread:$0]  (!%p2077_p10), %s238_s24, 256, %s240_s23, %s224_s26, %s1970_s4, %s1970_s4, %s1971_s6  }
  0x29   : > { %s2095_s19 = sand.u32 (!%p2047_p8), 1, %s1949_s13  }
  0x2a   : > { %s1688_s2 = sshll.u32 (!%p2047_p8), %s2095_s19, 5  ;;  %s254_s7 = scalar_lea.sflag (!%p2047_p8), [#allocation4], %s2095_s19 }
  0x2b   : > { %s2099_s30 = scalar_lea.vmem (!%p2047_p8), [#allocation3], %s1688_s2 }
  0x2c   : > { %1928 = dma.done.wait (%p2034_p4), %s254_s7, 512  }
  0x2d   : > { %1930 = vsyncadd (%p2034_p4), %s254_s7, 4294966784  ;;  %s263_s16 = sand.u32 1, %s2025_s18   ;;  %s1689_s25 = sshll.u32 %s2095_s19, 4 }
  0x2e   : > { %s264_s9 = scalar_lea.sflag [#allocation7], %s263_s16  ;;  %s2107_s10 = scalar_lea.vmem [#allocation6], %s1689_s25 }
  0x2f   : > { %1932 = dma.done.wait (%p2034_p4), %s264_s9, 256  }
  0x30   : > { %1934 = vsyncadd (%p2034_p4), %s264_s9, 4294967040 }
  0x31   : > { %1936 = dma.done.wait (%p64_p1), [#allocation7], 49152  }
  0x32   : > { %1938 = vsyncadd (%p64_p1), [#allocation7], 4294918144  ;;  %v681_v0 = vld [vmem:[#allocation8 + $0x8d0] sm:$0xff]  ;;  %v675_v1 = vld [vmem:[#allocation8 + $0x8a0] sm:$0xff]  ;;  %vm345_vm0 = vcmask 1045504   ;;  %vm364_vm1 = vcmask 1044480  }
  0x33   : > { %v777_v2 = vld [vmem:[#allocation8 + $0xbd0] sm:$0xff]  ;;  %841 = vmatpush.msra.mxu2 %v681_v0  ;;  %v771_v6 = vld [vmem:[#allocation8 + $0xba0] sm:$0xff]  ;;  %v2121_v51 = vld [vmem:[%s2099_s30 + $0x8] sm:$0xff]  ;;  %vm325_vm2 = vcmask 1046528   ;;  %s1695_s18 = smul.u32 96, %s2095_s19  ;;  %s1528_s6 = scalar_lea.sflag [#allocation5], %s2095_s19 }
  0x34   : > { %870 = vmatpush.msra.mxu3 %v777_v2  ;;  %v489_v3 = vld [vmem:[#allocation8 + $0x2d0] sm:$0xff]  ;;  %v483_v7 = vld [vmem:[#allocation8 + $0x2a0] sm:$0xff]  ;;  %v347_v59 = vrot.slane %v2121_v51, 2  ;;  %v366_v61 = vrot.slane %v2121_v51, 3  ;;  %s1696_s22 = smul.u32 96, %s1957_s15  ;;  %s1895_s26 = scalar_lea.hbm %s2395_s3, 192 }
  0x35   : > { %v585_v4 = vld [vmem:[#allocation8 + $0x5d0] sm:$0xff]  ;;  %783 = vmatpush.msra.mxu0 %v489_v3  ;;  %v579_v8 = vld [vmem:[#allocation8 + $0x5a0] sm:$0xff]  ;;  %842 = vmatpush.msra.mxu2 %v675_v1  ;;  %s2317_s20 = scalar_lea.vmem [#allocation9], %s1695_s18 }
  0x36   : > { %v669_v5 = vld [vmem:[#allocation8 + $0x870] sm:$0xff]  ;;  %812 = vmatpush.msra.mxu1 %v585_v4  ;;  %871 = vmatpush.msra.mxu3 %v771_v6  ;;  %v663_v11 = vld [vmem:[#allocation8 + $0x840] sm:$0xff]  ;;  %s1544_s29 = scalar_lea.hbm %s2395_s3, %s1696_s22  ;;  %s1545_s15 = sshll.u32 %s2317_s20, 4  ;;  %s1546_s15 = int_to_ptr.vmem [resolvable:$true] %s1545_s15 }
  0x37   : > { %v765_v9 = vld [vmem:[#allocation8 + $0xb70] sm:$0xff]  ;;  %784 = vmatpush.msra.mxu0 %v483_v7  ;;  %v759_v13 = vld [vmem:[#allocation8 + $0xb40] sm:$0xff]  ;;  %843 = vmatpush.msra.mxu2 %v669_v5  ;;  %v327_v7 = vrot.slane %v2121_v51, 1  ;;  %s1547_s4 = sshll.u32 %s1544_s29, 4  ;;  %s1548_s4 = int_to_ptr.hbm [resolvable:$true] %s1547_s4 }
  0x38   : > { %v477_v10 = vld [vmem:[#allocation8 + $0x270] sm:$0xff]  ;;  %813 = vmatpush.msra.mxu1 %v579_v8  ;;  %872 = vmatpush.msra.mxu3 %v765_v9  ;;  %v471_v14 = vld [vmem:[#allocation8 + $0x240] sm:$0xff]  ;;  %v682_v8 = vld [vmem:[#allocation8 + $0x8d8] sm:$0xff]  ;;  %s1889_s8 = sshra.s32 %s1548_s4, 4  ;;  %s1890_s8 = int_to_ptr.hbm [resolvable:$true] %s1889_s8 }
  0x39   : > { %v573_v12 = vld [vmem:[#allocation8 + $0x570] sm:$0xff]  ;;  %v567_v15 = vld [vmem:[#allocation8 + $0x540] sm:$0xff]  ;;  %785 = vmatpush.msra.mxu0 %v477_v10  ;;  %844 = vmatpush.msra.mxu2 %v663_v11  ;;  %v778_v9 = vld [vmem:[#allocation8 + $0xbd8] sm:$0xff]  ;;  %s1891_s11 = scalar_lea.hbm %s1890_s8, 96  ;;  %p1896_p8 = scmp.lt.s32.totalorder %s1890_s8, %s2395_s3 }
  0x3a   : > { %814 = vmatpush.msra.mxu1 %v573_v12  ;;  %v657_v16 = vld [vmem:[#allocation8 + $0x810] sm:$0xff]  ;;  %873 = vmatpush.msra.mxu3 %v759_v13  ;;  %v651_v20 = vld [vmem:[#allocation8 + $0x7e0] sm:$0xff]  ;;  %v676_v13 = vld [vmem:[#allocation8 + $0x8a8] sm:$0xff]  ;;  %p1892_p1 = scmp.ne.s32.totalorder %s1890_s8, %s1891_s11  ;;  %p1897_p12 = scmp.lt.s32.totalorder %s1895_s26, %s1891_s11 }
  0x3b   : > { %v753_v17 = vld [vmem:[#allocation8 + $0xb10] sm:$0xff]  ;;  %786 = vmatpush.msra.mxu0 %v471_v14  ;;  %v747_v21 = vld [vmem:[#allocation8 + $0xae0] sm:$0xff]  ;;  %845 = vmatpush.msra.mxu2 %v657_v16 }
  0x3c   : > { %v465_v18 = vld [vmem:[#allocation8 + $0x210] sm:$0xff]  ;;  %815 = vmatpush.msra.mxu1 %v567_v15  ;;  %874 = vmatpush.msra.mxu3 %v753_v17  ;;  %v459_v22 = vld [vmem:[#allocation8 + $0x1e0] sm:$0xff]  ;;  %v490_v15 = vld [vmem:[#allocation8 + $0x2d8] sm:$0xff]  ;;  %p1893_p2 = pnand %p1892_p1, %p2065_p5  ;;  %p1898_p13 = por %p1897_p12, %p1896_p8 }
  0x3d   : > { %v561_v19 = vld [vmem:[#allocation8 + $0x510] sm:$0xff]  ;;  %v555_v23 = vld [vmem:[#allocation8 + $0x4e0] sm:$0xff]  ;;  %787 = vmatpush.msra.mxu0 %v465_v18  ;;  %846 = vmatpush.msra.mxu2 %v651_v20  ;;  %v586_v17 = vld [vmem:[#allocation8 + $0x5d8] sm:$0xff] }
  0x3e   : > { %816 = vmatpush.msra.mxu1 %v561_v19  ;;  %v645_v24 = vld [vmem:[#allocation8 + $0x7b0] sm:$0xff]  ;;  %875 = vmatpush.msra.mxu3 %v747_v21  ;;  %v639_v28 = vld [vmem:[#allocation8 + $0x780] sm:$0xff]  ;;  %v670_v18 = vld [vmem:[#allocation8 + $0x878] sm:$0xff]  ;;  %p1894_p4 = pneg %p1893_p2 }
  0x3f   : > { %v741_v25 = vld [vmem:[#allocation8 + $0xab0] sm:$0xff]  ;;  %788 = vmatpush.msra.mxu0 %v459_v22  ;;  %v735_v29 = vld [vmem:[#allocation8 + $0xa80] sm:$0xff]  ;;  %847 = vmatpush.msra.mxu2 %v645_v24  ;;  %v772_v19 = vld [vmem:[#allocation8 + $0xba8] sm:$0xff] }
  0x40   : > { %v453_v26 = vld [vmem:[#allocation8 + $0x1b0] sm:$0xff]  ;;  %817 = vmatpush.msra.mxu1 %v555_v23  ;;  %876 = vmatpush.msra.mxu3 %v741_v25  ;;  %v447_v30 = vld [vmem:[#allocation8 + $0x180] sm:$0xff]  ;;  %v484_v20 = vld [vmem:[#allocation8 + $0x2a8] sm:$0xff]  ;;  %p1899_p0 = pnand %p1898_p13, %p1894_p4 }
  0x41   : > { %v549_v27 = vld [vmem:[#allocation8 + $0x4b0] sm:$0xff]  ;;  %v543_v31 = vld [vmem:[#allocation8 + $0x480] sm:$0xff]  ;;  %789 = vmatpush.msra.mxu0 %v453_v26  ;;  %848 = vmatpush.msra.mxu2 %v639_v28  ;;  %v580_v21 = vld [vmem:[#allocation8 + $0x5a8] sm:$0xff] }
  0x42   : > { %818 = vmatpush.msra.mxu1 %v549_v27  ;;  %v633_v32 = vld [vmem:[#allocation8 + $0x750] sm:$0xff]  ;;  %877 = vmatpush.msra.mxu3 %v735_v29  ;;  %v627_v36 = vld [vmem:[#allocation8 + $0x720] sm:$0xff]  ;;  %v664_v22 = vld [vmem:[#allocation8 + $0x848] sm:$0xff] }
  0x43   : > { %v729_v33 = vld [vmem:[#allocation8 + $0xa50] sm:$0xff]  ;;  %790 = vmatpush.msra.mxu0 %v447_v30  ;;  %v723_v37 = vld [vmem:[#allocation8 + $0xa20] sm:$0xff]  ;;  %849 = vmatpush.msra.mxu2 %v633_v32  ;;  %v766_v24 = vld [vmem:[#allocation8 + $0xb78] sm:$0xff] }
  0x44   : > { %v441_v34 = vld [vmem:[#allocation8 + $0x150] sm:$0xff]  ;;  %819 = vmatpush.msra.mxu1 %v543_v31  ;;  %878 = vmatpush.msra.mxu3 %v729_v33  ;;  %v435_v38 = vld [vmem:[#allocation8 + $0x120] sm:$0xff]  ;;  %v478_v26 = vld [vmem:[#allocation8 + $0x278] sm:$0xff] }
  0x45   : > { %v537_v35 = vld [vmem:[#allocation8 + $0x450] sm:$0xff]  ;;  %v531_v39 = vld [vmem:[#allocation8 + $0x420] sm:$0xff]  ;;  %791 = vmatpush.msra.mxu0 %v441_v34  ;;  %850 = vmatpush.msra.mxu2 %v627_v36  ;;  %v574_v27 = vld [vmem:[#allocation8 + $0x578] sm:$0xff] }
  0x46   : > { %820 = vmatpush.msra.mxu1 %v537_v35  ;;  %v621_v40 = vld [vmem:[#allocation8 + $0x6f0] sm:$0xff]  ;;  %879 = vmatpush.msra.mxu3 %v723_v37  ;;  %v615_v44 = vld [vmem:[#allocation8 + $0x6c0] sm:$0xff]  ;;  %v658_v28 = vld [vmem:[#allocation8 + $0x818] sm:$0xff] }
  0x47   : > { %v717_v41 = vld [vmem:[#allocation8 + $0x9f0] sm:$0xff]  ;;  %792 = vmatpush.msra.mxu0 %v435_v38  ;;  %v711_v45 = vld [vmem:[#allocation8 + $0x9c0] sm:$0xff]  ;;  %851 = vmatpush.msra.mxu2 %v621_v40  ;;  %v760_v29 = vld [vmem:[#allocation8 + $0xb48] sm:$0xff] }
  0x48   : > { %v429_v42 = vld [vmem:[#allocation8 + $0xf0] sm:$0xff]  ;;  %821 = vmatpush.msra.mxu1 %v531_v39  ;;  %880 = vmatpush.msra.mxu3 %v717_v41  ;;  %v423_v47 = vld [vmem:[#allocation8 + $0xc0] sm:$0xff]  ;;  %v472_v32 = vld [vmem:[#allocation8 + $0x248] sm:$0xff] }
  0x49   : > { %v525_v43 = vld [vmem:[#allocation8 + $0x3f0] sm:$0xff]  ;;  %v519_v48 = vld [vmem:[#allocation8 + $0x3c0] sm:$0xff]  ;;  %793 = vmatpush.msra.mxu0 %v429_v42  ;;  %852 = vmatpush.msra.mxu2 %v615_v44  ;;  %v2160_v33 = vld [vmem:[%s2099_s30 + $0x18] sm:$0xff] }
  0x4a   : > { %v609_v46 = vld [vmem:[#allocation8 + $0x690] sm:$0xff]  ;;  %822 = vmatpush.msra.mxu1 %v525_v43  ;;  %v2118_v50 = vld [vmem:[%s2099_s30] sm:$0xff]  ;;  %881 = vmatpush.msra.mxu3 %v711_v45  ;;  %v568_v34 = vld [vmem:[#allocation8 + $0x548] sm:$0xff]  ;;  %v351_v39 = vrot.slane %v2160_v33, 2 }
  0x4b   : > { %v705_v49 = vld [vmem:[#allocation8 + $0x990] sm:$0xff]  ;;  %794 = vmatpush.msra.mxu0 %v423_v47  ;;  %v603_v54 = vld [vmem:[#allocation8 + $0x660] sm:$0xff]  ;;  %853 = vmatpush.msra.mxu2 %v609_v46  ;;  %v346_v58 = vrot.slane %v2118_v50, 2  ;;  %v365_v60 = vrot.slane %v2118_v50, 3  ;;  %v326_v6 = vrot.slane %v2118_v50, 1  ;;  %v652_v35 = vld [vmem:[#allocation8 + $0x7e8] sm:$0xff] }
  0x4c   : > { %v417_v52 = vld [vmem:[#allocation8 + $0x90] sm:$0xff]  ;;  %823 = vmatpush.msra.mxu1 %v519_v48  ;;  %v699_v55 = vld [vmem:[#allocation8 + $0x960] sm:$0xff]  ;;  %882 = vmatpush.msra.mxu3 %v705_v49  ;;  %v754_v36 = vld [vmem:[#allocation8 + $0xb18] sm:$0xff]  ;;  %v370_v46 = vrot.slane %v2160_v33, 3 }
  0x4d   : > { %v513_v53 = vld [vmem:[#allocation8 + $0x390] sm:$0xff]  ;;  %v411_v56 = vld [vmem:[#allocation8 + $0x60] sm:$0xff]  ;;  %795 = vmatpush.msra.mxu0 %v417_v52  ;;  %854 = vmatpush.msra.mxu2 %v603_v54  ;;  %v2128_v4 = vsel %vm345_vm0, %v346_v58, %v347_v59  ;;  %v2133_v5 = vsel %vm364_vm1, %v365_v60, %v366_v61  ;;  %v2143_v14 = vsel %vm325_vm2, %v326_v6, %v327_v7  ;;  %v466_v38 = vld [vmem:[#allocation8 + $0x218] sm:$0xff] }
  0x4e   : > { %v507_v57 = vld [vmem:[#allocation8 + $0x360] sm:$0xff]  ;;  %824 = vmatpush.msra.mxu1 %v513_v53  ;;  %v597_v62 = vld [vmem:[#allocation8 + $0x630] sm:$0xff]  ;;  %883 = vmatpush.msra.mxu3 %v699_v55  ;;  %v562_v40 = vld [vmem:[#allocation8 + $0x518] sm:$0xff]  ;;  %v331_v55 = vrot.slane %v2160_v33, 1 }
  0x4f   : > { %v693_v63 = vld [vmem:[#allocation8 + $0x930] sm:$0xff]  ;;  %796 = vmatpush.msra.mxu0 %v411_v56  ;;  %v591_v2 = vld [vmem:[#allocation8 + $0x600] sm:$0xff]  ;;  %855 = vmatpush.msra.mxu2 %v597_v62  ;;  %v646_v41 = vld [vmem:[#allocation8 + $0x7b8] sm:$0xff] }
  0x50   : > { %v405_v0 = vld [vmem:[#allocation8 + $0x30] sm:$0xff]  ;;  %825 = vmatpush.msra.mxu1 %v507_v57  ;;  %v687_v3 = vld [vmem:[#allocation8 + $0x900] sm:$0xff]  ;;  %884 = vmatpush.msra.mxu3 %v693_v63  ;;  %v748_v42 = vld [vmem:[#allocation8 + $0xae8] sm:$0xff] }
  0x51   : > { %v501_v1 = vld [vmem:[#allocation8 + $0x330] sm:$0xff]  ;;  %797 = vmatpush.msra.mxu0 %v405_v0  ;;  %856 = vmatpush.msra.mxu2 %v591_v2  ;;  %v399_v11 = vld [vmem:[#allocation8] sm:$0xff]  ;;  %v460_v43 = vld [vmem:[#allocation8 + $0x1e8] sm:$0xff] }
  0x52   : > { %826 = vmatpush.msra.mxu1 %v501_v1  ;;  %v2138_v10 = vld [vmem:[%s2099_s30 + $0x10] sm:$0xff]  ;;  %885 = vmatpush.msra.mxu3 %v687_v3  ;;  %v495_v12 = vld [vmem:[#allocation8 + $0x300] sm:$0xff]  ;;  %v556_v44 = vld [vmem:[#allocation8 + $0x4e8] sm:$0xff] }
  0x53   : > { %857 = vmatmul.f32.vlgmr.msra.gmra.mxu2 %v2128_v4  ;;  %886 = vmatmul.f32.vlgmr.msra.gmra.mxu3 %v2133_v5  ;;  %v349_v16 = vrot.slane %v2138_v10, 2  ;;  %v368_v23 = vrot.slane %v2138_v10, 3  ;;  %v329_v30 = vrot.slane %v2138_v10, 1  ;;  %v640_v45 = vld [vmem:[#allocation8 + $0x788] sm:$0xff]  ;;  %v742_v47 = vld [vmem:[#allocation8 + $0xab8] sm:$0xff]  ;;  %v320_v58 = vld [vmem:[%s2107_s10] sm:$0xff] }
  0x54   : > { %957 = vmatpush.msrb.mxu2 %v682_v8  ;;  %986 = vmatpush.msrb.mxu3 %v778_v9  ;;  %v454_v49 = vld [vmem:[#allocation8 + $0x1b8] sm:$0xff]  ;;  %v736_v54 = vld [vmem:[#allocation8 + $0xa88] sm:$0xff]  ;;  %v357_v0 = vrot.slane %v320_v58, 2  ;;  %v376_v9 = vrot.slane %v320_v58, 3 }
  0x55   : > { %798 = vmatpush.msra.mxu0 %v399_v11  ;;  %827 = vmatpush.msra.mxu1 %v495_v12  ;;  %v2150_v25 = vsel %vm345_vm0, %v347_v59, %v349_v16  ;;  %v2157_v31 = vsel %vm364_vm1, %v366_v61, %v368_v23  ;;  %v2164_v37 = vsel %vm325_vm2, %v327_v7, %v329_v30  ;;  %v550_v52 = vld [vmem:[#allocation8 + $0x4b8] sm:$0xff]  ;;  %v448_v57 = vld [vmem:[#allocation8 + $0x188] sm:$0xff] }
  0x56   : > { %958 = vmatpush.msrb.mxu2 %v676_v13  ;;  %799 = vmatmul.f32.vlgmr.msra.gmra.mxu0 %v2118_v50  ;;  %v2171_v48 = vsel %vm345_vm0, %v349_v16, %v351_v39  ;;  %v634_v53 = vld [vmem:[#allocation8 + $0x758] sm:$0xff]  ;;  %v2176_v56 = vsel %vm364_vm1, %v368_v23, %v370_v46  ;;  %v544_v59 = vld [vmem:[#allocation8 + $0x488] sm:$0xff]  ;;  %v2181_v62 = vsel %vm325_vm2, %v329_v30, %v331_v55 }
  0x57   : > { %828 = vmatmul.f32.vlgmr.msra.gmra.mxu1 %v2143_v14  ;;  %899 = vmatpush.msrb.mxu0 %v490_v15  ;;  %v628_v60 = vld [vmem:[#allocation8 + $0x728] sm:$0xff]  ;;  %v730_v61 = vld [vmem:[#allocation8 + $0xa58] sm:$0xff]  ;;  %v2186_v12 = vsel %vm345_vm0, %v351_v39, %v357_v0  ;;  %v653_v0 = vld [vmem:[#allocation8 + $0x7f0] sm:$0xff] }
  0x58   : > { %928 = vmatpush.msrb.mxu1 %v586_v17  ;;  %959 = vmatpush.msrb.mxu2 %v670_v18  ;;  %v442_v63 = vld [vmem:[#allocation8 + $0x158] sm:$0xff]  ;;  %v724_v3 = vld [vmem:[#allocation8 + $0xa28] sm:$0xff]  ;;  %v338_v18 = vrot.slane %v320_v58, 1  ;;  %v575_v58 = vld [vmem:[#allocation8 + $0x580] sm:$0xff] }
  0x59   : > { %987 = vmatpush.msrb.mxu3 %v772_v19  ;;  %900 = vmatpush.msrb.mxu0 %v484_v20  ;;  %v538_v1 = vld [vmem:[#allocation8 + $0x458] sm:$0xff]  ;;  %v436_v6 = vld [vmem:[#allocation8 + $0x128] sm:$0xff]  ;;  %v2190_v19 = vsel %vm364_vm1, %v370_v46, %v376_v9  ;;  %v587_v46 = vld [vmem:[#allocation8 + $0x5e0] sm:$0xff] }
  0x5a   : > { %929 = vmatpush.msrb.mxu1 %v580_v21  ;;  %960 = vmatpush.msrb.mxu2 %v664_v22  ;;  %v622_v2 = vld [vmem:[#allocation8 + $0x6f8] sm:$0xff]  ;;  %v532_v7 = vld [vmem:[#allocation8 + $0x428] sm:$0xff]  ;;  %v557_v9 = vld [vmem:[#allocation8 + $0x4f0] sm:$0xff] }
  0x5b   : > { %988 = vmatpush.msrb.mxu3 %v766_v24  ;;  %860 = vmatmul.f32.gmra.mxu2 %v2150_v25  ;;  %v616_v8 = vld [vmem:[#allocation8 + $0x6c8] sm:$0xff]  ;;  %v718_v11 = vld [vmem:[#allocation8 + $0x9f8] sm:$0xff]  ;;  %v2194_v24 = vsel %vm325_vm2, %v331_v55, %v338_v18  ;;  %v767_v55 = vld [vmem:[#allocation8 + $0xb80] sm:$0xff] }
  0x5c   : > { %901 = vmatpush.msrb.mxu0 %v478_v26  ;;  %930 = vmatpush.msrb.mxu1 %v574_v27  ;;  %v430_v13 = vld [vmem:[#allocation8 + $0xf8] sm:$0xff]  ;;  %v712_v17 = vld [vmem:[#allocation8 + $0x9c8] sm:$0xff]  ;;  %v737_v18 = vld [vmem:[#allocation8 + $0xa90] sm:$0xff] }
  0x5d   : > { %961 = vmatpush.msrb.mxu2 %v658_v28  ;;  %989 = vmatpush.msrb.mxu3 %v760_v29  ;;  %v526_v15 = vld [vmem:[#allocation8 + $0x3f8] sm:$0xff]  ;;  %v424_v20 = vld [vmem:[#allocation8 + $0xc8] sm:$0xff] }
  0x5e   : > { %889 = vmatmul.f32.gmra.mxu3 %v2157_v31  ;;  %902 = vmatpush.msrb.mxu0 %v472_v32  ;;  %v610_v16 = vld [vmem:[#allocation8 + $0x698] sm:$0xff]  ;;  %v520_v21 = vld [vmem:[#allocation8 + $0x3c8] sm:$0xff] }
  0x5f   : > { %931 = vmatpush.msrb.mxu1 %v568_v34  ;;  %962 = vmatpush.msrb.mxu2 %v652_v35  ;;  %v604_v22 = vld [vmem:[#allocation8 + $0x668] sm:$0xff]  ;;  %v706_v23 = vld [vmem:[#allocation8 + $0x998] sm:$0xff] }
  0x60   : > { %990 = vmatpush.msrb.mxu3 %v754_v36  ;;  %802 = vmatmul.f32.gmra.mxu0 %v2121_v51  ;;  %v418_v26 = vld [vmem:[#allocation8 + $0x98] sm:$0xff]  ;;  %v700_v29 = vld [vmem:[#allocation8 + $0x968] sm:$0xff] }
  0x61   : > { %831 = vmatmul.f32.gmra.mxu1 %v2164_v37  ;;  %903 = vmatpush.msrb.mxu0 %v466_v38  ;;  %v514_v27 = vld [vmem:[#allocation8 + $0x398] sm:$0xff]  ;;  %v412_v30 = vld [vmem:[#allocation8 + $0x68] sm:$0xff] }
  0x62   : > { %932 = vmatpush.msrb.mxu1 %v562_v40  ;;  %963 = vmatpush.msrb.mxu2 %v646_v41  ;;  %v598_v28 = vld [vmem:[#allocation8 + $0x638] sm:$0xff]  ;;  %v508_v32 = vld [vmem:[#allocation8 + $0x368] sm:$0xff]  ;;  %v683_v40 = vld [vmem:[#allocation8 + $0x8e0] sm:$0xff] }
  0x63   : > { %991 = vmatpush.msrb.mxu3 %v748_v42  ;;  %904 = vmatpush.msrb.mxu0 %v460_v43  ;;  %v592_v34 = vld [vmem:[#allocation8 + $0x608] sm:$0xff]  ;;  %v694_v35 = vld [vmem:[#allocation8 + $0x938] sm:$0xff]  ;;  %v677_v43 = vld [vmem:[#allocation8 + $0x8b0] sm:$0xff] }
  0x64   : > { %933 = vmatpush.msrb.mxu1 %v556_v44  ;;  %964 = vmatpush.msrb.mxu2 %v640_v45  ;;  %v406_v36 = vld [vmem:[#allocation8 + $0x38] sm:$0xff]  ;;  %v688_v39 = vld [vmem:[#allocation8 + $0x908] sm:$0xff]  ;;  %v779_v44 = vld [vmem:[#allocation8 + $0xbe0] sm:$0xff] }
  0x65   : > { %992 = vmatpush.msrb.mxu3 %v742_v47  ;;  %863 = vmatmul.f32.gmra.mxu2 %v2171_v48  ;;  %v502_v38 = vld [vmem:[#allocation8 + $0x338] sm:$0xff]  ;;  %v400_v41 = vld [vmem:[#allocation8 + $0x8] sm:$0xff]  ;;  %v491_v45 = vld [vmem:[#allocation8 + $0x2e0] sm:$0xff] }
  0x66   : > { %905 = vmatpush.msrb.mxu0 %v454_v49  ;;  %934 = vmatpush.msrb.mxu1 %v550_v52  ;;  %v496_v42 = vld [vmem:[#allocation8 + $0x308] sm:$0xff]  ;;  %v671_v47 = vld [vmem:[#allocation8 + $0x880] sm:$0xff]  ;;  %v773_v49 = vld [vmem:[#allocation8 + $0xbb0] sm:$0xff] }
  0x67   : > { %965 = vmatpush.msrb.mxu2 %v634_v53  ;;  %993 = vmatpush.msrb.mxu3 %v736_v54  ;;  %v485_v52 = vld [vmem:[#allocation8 + $0x2b0] sm:$0xff] }
  0x68   : > { %892 = vmatmul.f32.gmra.mxu3 %v2176_v56  ;;  %906 = vmatpush.msrb.mxu0 %v448_v57  ;;  %v581_v53 = vld [vmem:[#allocation8 + $0x5b0] sm:$0xff]  ;;  %v479_v57 = vld [vmem:[#allocation8 + $0x280] sm:$0xff] }
  0x69   : > { %935 = vmatpush.msrb.mxu1 %v544_v59  ;;  %966 = vmatpush.msrb.mxu2 %v628_v60  ;;  %v665_v54 = vld [vmem:[#allocation8 + $0x850] sm:$0xff]  ;;  %v659_v59 = vld [vmem:[#allocation8 + $0x820] sm:$0xff] }
  0x6a   : > { %994 = vmatpush.msrb.mxu3 %v730_v61  ;;  %805 = vmatmul.f32.gmra.mxu0 %v2138_v10  ;;  %v761_v60 = vld [vmem:[#allocation8 + $0xb50] sm:$0xff] }
  0x6b   : > { %834 = vmatmul.f32.gmra.mxu1 %v2181_v62  ;;  %907 = vmatpush.msrb.mxu0 %v442_v63  ;;  %v473_v61 = vld [vmem:[#allocation8 + $0x250] sm:$0xff] }
  0x6c   : > { %936 = vmatpush.msrb.mxu1 %v538_v1  ;;  %967 = vmatpush.msrb.mxu2 %v622_v2  ;;  %v569_v63 = vld [vmem:[#allocation8 + $0x550] sm:$0xff]  ;;  %v755_v1 = vld [vmem:[#allocation8 + $0xb20] sm:$0xff] }
  0x6d   : > { %995 = vmatpush.msrb.mxu3 %v724_v3  ;;  %908 = vmatpush.msrb.mxu0 %v436_v6  ;;  %v467_v2 = vld [vmem:[#allocation8 + $0x220] sm:$0xff] }
  0x6e   : > { %937 = vmatpush.msrb.mxu1 %v532_v7  ;;  %968 = vmatpush.msrb.mxu2 %v616_v8  ;;  %v563_v3 = vld [vmem:[#allocation8 + $0x520] sm:$0xff]  ;;  %v749_v7 = vld [vmem:[#allocation8 + $0xaf0] sm:$0xff] }
  0x6f   : > { %996 = vmatpush.msrb.mxu3 %v718_v11  ;;  %866 = vmatmul.f32.gmra.mxu2 %v2186_v12  ;;  %v647_v6 = vld [vmem:[#allocation8 + $0x7c0] sm:$0xff]  ;;  %v461_v8 = vld [vmem:[#allocation8 + $0x1f0] sm:$0xff] }
  0x70   : > { %909 = vmatpush.msrb.mxu0 %v430_v13  ;;  %938 = vmatpush.msrb.mxu1 %v526_v15  ;;  %v641_v11 = vld [vmem:[#allocation8 + $0x790] sm:$0xff]  ;;  %v743_v13 = vld [vmem:[#allocation8 + $0xac0] sm:$0xff] }
  0x71   : > { %969 = vmatpush.msrb.mxu2 %v610_v16  ;;  %997 = vmatpush.msrb.mxu3 %v712_v17  ;;  %v455_v15 = vld [vmem:[#allocation8 + $0x1c0] sm:$0xff] }
  0x72   : > { %895 = vmatmul.f32.gmra.mxu3 %v2190_v19  ;;  %910 = vmatpush.msrb.mxu0 %v424_v20  ;;  %v551_v16 = vld [vmem:[#allocation8 + $0x4c0] sm:$0xff]  ;;  %v449_v20 = vld [vmem:[#allocation8 + $0x190] sm:$0xff] }
  0x73   : > { %939 = vmatpush.msrb.mxu1 %v520_v21  ;;  %970 = vmatpush.msrb.mxu2 %v604_v22  ;;  %v635_v17 = vld [vmem:[#allocation8 + $0x760] sm:$0xff]  ;;  %v545_v21 = vld [vmem:[#allocation8 + $0x490] sm:$0xff] }
  0x74   : > { %998 = vmatpush.msrb.mxu3 %v706_v23  ;;  %808 = vmatmul.f32.gmra.mxu0 %v2160_v33  ;;  %v629_v22 = vld [vmem:[#allocation8 + $0x730] sm:$0xff]  ;;  %v731_v23 = vld [vmem:[#allocation8 + $0xa60] sm:$0xff] }
  0x75   : > { %837 = vmatmul.f32.gmra.mxu1 %v2194_v24  ;;  %911 = vmatpush.msrb.mxu0 %v418_v26  ;;  %v443_v26 = vld [vmem:[#allocation8 + $0x160] sm:$0xff] }
  0x76   : > { %940 = vmatpush.msrb.mxu1 %v514_v27  ;;  %971 = vmatpush.msrb.mxu2 %v598_v28  ;;  %v539_v27 = vld [vmem:[#allocation8 + $0x460] sm:$0xff] }
  0x77   : > { %999 = vmatpush.msrb.mxu3 %v700_v29  ;;  %912 = vmatpush.msrb.mxu0 %v412_v30  ;;  %v623_v28 = vld [vmem:[#allocation8 + $0x700] sm:$0xff]  ;;  %v725_v29 = vld [vmem:[#allocation8 + $0xa30] sm:$0xff] }
  0x78   : > { %941 = vmatpush.msrb.mxu1 %v508_v32  ;;  %972 = vmatpush.msrb.mxu2 %v592_v34  ;;  %v437_v30 = vld [vmem:[#allocation8 + $0x130] sm:$0xff] }
  0x79   : > { %1000 = vmatpush.msrb.mxu3 %v694_v35  ;;  %913 = vmatpush.msrb.mxu0 %v406_v36  ;;  %v533_v32 = vld [vmem:[#allocation8 + $0x430] sm:$0xff]  ;;  %v719_v35 = vld [vmem:[#allocation8 + $0xa00] sm:$0xff] }
  0x7a   : > { %942 = vmatpush.msrb.mxu1 %v502_v38  ;;  %973 = vmatmul.f32.vlgmr.msrb.gmra.mxu2 %v2128_v4  ;;  %v617_v34 = vld [vmem:[#allocation8 + $0x6d0] sm:$0xff]  ;;  %v431_v36 = vld [vmem:[#allocation8 + $0x100] sm:$0xff] }
  0x7b   : > { %1001 = vmatpush.msrb.mxu3 %v688_v39  ;;  %1073 = vmatpush.msra.mxu2 %v683_v40  ;;  %v527_v38 = vld [vmem:[#allocation8 + $0x400] sm:$0xff]  ;;  %v713_v40 = vld [vmem:[#allocation8 + $0x9d0] sm:$0xff] }
  0x7c   : > { %914 = vmatpush.msrb.mxu0 %v400_v41  ;;  %943 = vmatpush.msrb.mxu1 %v496_v42  ;;  %v611_v39 = vld [vmem:[#allocation8 + $0x6a0] sm:$0xff]  ;;  %v425_v41 = vld [vmem:[#allocation8 + $0xd0] sm:$0xff] }
  0x7d   : > { %1002 = vmatmul.f32.vlgmr.msrb.gmra.mxu3 %v2133_v5  ;;  %1074 = vmatpush.msra.mxu2 %v677_v43  ;;  %v521_v42 = vld [vmem:[#allocation8 + $0x3d0] sm:$0xff] }
  0x7e   : > { %1102 = vmatpush.msra.mxu3 %v779_v44  ;;  %915 = vmatmul.f32.vlgmr.msrb.gmra.mxu0 %v2118_v50  ;;  %v605_v43 = vld [vmem:[#allocation8 + $0x670] sm:$0xff]  ;;  %v707_v44 = vld [vmem:[#allocation8 + $0x9a0] sm:$0xff] }
  0x7f   : > { %944 = vmatmul.f32.vlgmr.msrb.gmra.mxu1 %v2143_v14  ;;  %1015 = vmatpush.msra.mxu0 %v491_v45  ;;  %v419_v45 = vld [vmem:[#allocation8 + $0xa0] sm:$0xff] }
  0x80   : > { %1044 = vmatpush.msra.mxu1 %v587_v46  ;;  %1075 = vmatpush.msra.mxu2 %v671_v47  ;;  %v515_v46 = vld [vmem:[#allocation8 + $0x3a0] sm:$0xff] }
  0x81   : > { %1103 = vmatpush.msra.mxu3 %v773_v49  ;;  %1016 = vmatpush.msra.mxu0 %v485_v52  ;;  %v599_v47 = vld [vmem:[#allocation8 + $0x640] sm:$0xff]  ;;  %v701_v49 = vld [vmem:[#allocation8 + $0x970] sm:$0xff] }
  0x82   : > { %1045 = vmatpush.msra.mxu1 %v581_v53  ;;  %1076 = vmatpush.msra.mxu2 %v665_v54  ;;  %v413_v52 = vld [vmem:[#allocation8 + $0x70] sm:$0xff] }
  0x83   : > { %1104 = vmatpush.msra.mxu3 %v767_v55  ;;  %976 = vmatmul.f32.gmra.mxu2 %v2150_v25  ;;  %v509_v53 = vld [vmem:[#allocation8 + $0x370] sm:$0xff]  ;;  %v695_v55 = vld [vmem:[#allocation8 + $0x940] sm:$0xff] }
  0x84   : > { %1017 = vmatpush.msra.mxu0 %v479_v57  ;;  %1046 = vmatpush.msra.mxu1 %v575_v58  ;;  %v593_v54 = vld [vmem:[#allocation8 + $0x610] sm:$0xff]  ;;  %v407_v57 = vld [vmem:[#allocation8 + $0x40] sm:$0xff] }
  0x85   : > { %1077 = vmatpush.msra.mxu2 %v659_v59  ;;  %1105 = vmatpush.msra.mxu3 %v761_v60  ;;  %v503_v58 = vld [vmem:[#allocation8 + $0x340] sm:$0xff]  ;;  %v689_v59 = vld [vmem:[#allocation8 + $0x910] sm:$0xff]  ;;  %v684_v60 = vld [vmem:[#allocation8 + $0x8e8] sm:$0xff] }
  0x86   : > { %1005 = vmatmul.f32.gmra.mxu3 %v2157_v31  ;;  %1018 = vmatpush.msra.mxu0 %v473_v61  ;;  %v401_v61 = vld [vmem:[#allocation8 + $0x10] sm:$0xff] }
  0x87   : > { %1047 = vmatpush.msra.mxu1 %v569_v63  ;;  %1078 = vmatpush.msra.mxu2 %v653_v0  ;;  %v497_v63 = vld [vmem:[#allocation8 + $0x310] sm:$0xff]  ;;  %v678_v0 = vld [vmem:[#allocation8 + $0x8b8] sm:$0xff] }
  0x88   : > { %1106 = vmatpush.msra.mxu3 %v755_v1  ;;  %918 = vmatmul.f32.gmra.mxu0 %v2121_v51  ;;  %v780_v1 = vld [vmem:[#allocation8 + $0xbe8] sm:$0xff] }
  0x89   : > { %947 = vmatmul.f32.gmra.mxu1 %v2164_v37  ;;  %1019 = vmatpush.msra.mxu0 %v467_v2  ;;  %v492_v2 = vld [vmem:[#allocation8 + $0x2e8] sm:$0xff] }
  0x8a   : > { %1048 = vmatpush.msra.mxu1 %v563_v3  ;;  %1079 = vmatpush.msra.mxu2 %v647_v6  ;;  %v588_v3 = vld [vmem:[#allocation8 + $0x5e8] sm:$0xff] }
  0x8b   : > { %1107 = vmatpush.msra.mxu3 %v749_v7  ;;  %1020 = vmatpush.msra.mxu0 %v461_v8  ;;  %v672_v6 = vld [vmem:[#allocation8 + $0x888] sm:$0xff]  ;;  %v774_v7 = vld [vmem:[#allocation8 + $0xbb8] sm:$0xff] }
  0x8c   : > { %1049 = vmatpush.msra.mxu1 %v557_v9  ;;  %1080 = vmatpush.msra.mxu2 %v641_v11  ;;  %v486_v8 = vld [vmem:[#allocation8 + $0x2b8] sm:$0xff] }
  0x8d   : > { %1108 = vmatpush.msra.mxu3 %v743_v13  ;;  %979 = vmatmul.f32.gmra.mxu2 %v2171_v48  ;;  %v582_v9 = vld [vmem:[#allocation8 + $0x5b8] sm:$0xff]  ;;  %v768_v13 = vld [vmem:[#allocation8 + $0xb88] sm:$0xff] }
  0x8e   : > { %1021 = vmatpush.msra.mxu0 %v455_v15  ;;  %1050 = vmatpush.msra.mxu1 %v551_v16  ;;  %v666_v11 = vld [vmem:[#allocation8 + $0x858] sm:$0xff]  ;;  %v480_v15 = vld [vmem:[#allocation8 + $0x288] sm:$0xff] }
  0x8f   : > { %1081 = vmatpush.msra.mxu2 %v635_v17  ;;  %1109 = vmatpush.msra.mxu3 %v737_v18  ;;  %v576_v16 = vld [vmem:[#allocation8 + $0x588] sm:$0xff]  ;;  %v762_v18 = vld [vmem:[#allocation8 + $0xb58] sm:$0xff] }
  0x90   : > { %1008 = vmatmul.f32.gmra.mxu3 %v2176_v56  ;;  %1022 = vmatpush.msra.mxu0 %v449_v20  ;;  %v660_v17 = vld [vmem:[#allocation8 + $0x828] sm:$0xff]  ;;  %v570_v20 = vld [vmem:[#allocation8 + $0x558] sm:$0xff] }
  0x91   : > { %1051 = vmatpush.msra.mxu1 %v545_v21  ;;  %1082 = vmatpush.msra.mxu2 %v629_v22  ;;  %v654_v21 = vld [vmem:[#allocation8 + $0x7f8] sm:$0xff]  ;;  %v756_v22 = vld [vmem:[#allocation8 + $0xb28] sm:$0xff] }
  0x92   : > { %1110 = vmatpush.msra.mxu3 %v731_v23  ;;  %921 = vmatmul.f32.gmra.mxu0 %v2138_v10  ;;  %v468_v23 = vld [vmem:[#allocation8 + $0x228] sm:$0xff] }
  0x93   : > { %950 = vmatmul.f32.gmra.mxu1 %v2181_v62  ;;  %1023 = vmatpush.msra.mxu0 %v443_v26  ;;  %v564_v26 = vld [vmem:[#allocation8 + $0x528] sm:$0xff] }
  0x94   : > { %1052 = vmatpush.msra.mxu1 %v539_v27  ;;  %1083 = vmatpush.msra.mxu2 %v623_v28  ;;  %v648_v27 = vld [vmem:[#allocation8 + $0x7c8] sm:$0xff]  ;;  %v750_v28 = vld [vmem:[#allocation8 + $0xaf8] sm:$0xff] }
  0x95   : > { %1111 = vmatpush.msra.mxu3 %v725_v29  ;;  %1024 = vmatpush.msra.mxu0 %v437_v30  ;;  %v462_v29 = vld [vmem:[#allocation8 + $0x1f8] sm:$0xff] }
  0x96   : > { %1053 = vmatpush.msra.mxu1 %v533_v32  ;;  %1084 = vmatpush.msra.mxu2 %v617_v34  ;;  %v558_v30 = vld [vmem:[#allocation8 + $0x4f8] sm:$0xff]  ;;  %v744_v34 = vld [vmem:[#allocation8 + $0xac8] sm:$0xff] }
  0x97   : > { %1112 = vmatpush.msra.mxu3 %v719_v35  ;;  %982 = vmatmul.f32.gmra.mxu2 %v2186_v12  ;;  %v642_v32 = vld [vmem:[#allocation8 + $0x798] sm:$0xff]  ;;  %v456_v35 = vld [vmem:[#allocation8 + $0x1c8] sm:$0xff] }
  0x98   : > { %1025 = vmatpush.msra.mxu0 %v431_v36  ;;  %1054 = vmatpush.msra.mxu1 %v527_v38  ;;  %v552_v36 = vld [vmem:[#allocation8 + $0x4c8] sm:$0xff] }
  0x99   : > { %1085 = vmatpush.msra.mxu2 %v611_v39  ;;  %1113 = vmatpush.msra.mxu3 %v713_v40  ;;  %v636_v38 = vld [vmem:[#allocation8 + $0x768] sm:$0xff]  ;;  %v738_v39 = vld [vmem:[#allocation8 + $0xa98] sm:$0xff] }
  0x9a   : > { %1011 = vmatmul.f32.gmra.mxu3 %v2190_v19  ;;  %1026 = vmatpush.msra.mxu0 %v425_v41  ;;  %v546_v40 = vld [vmem:[#allocation8 + $0x498] sm:$0xff] }
  0x9b   : > { %1055 = vmatpush.msra.mxu1 %v521_v42  ;;  %1086 = vmatpush.msra.mxu2 %v605_v43  ;;  %v630_v41 = vld [vmem:[#allocation8 + $0x738] sm:$0xff]  ;;  %v732_v42 = vld [vmem:[#allocation8 + $0xa68] sm:$0xff] }
  0x9c   : > { %1114 = vmatpush.msra.mxu3 %v707_v44  ;;  %924 = vmatmul.f32.gmra.mxu0 %v2160_v33  ;;  %v444_v43 = vld [vmem:[#allocation8 + $0x168] sm:$0xff] }
  0x9d   : > { %953 = vmatmul.f32.gmra.mxu1 %v2194_v24  ;;  %1027 = vmatpush.msra.mxu0 %v419_v45  ;;  %v540_v44 = vld [vmem:[#allocation8 + $0x468] sm:$0xff] }
  0x9e   : > { %1056 = vmatpush.msra.mxu1 %v515_v46  ;;  %1087 = vmatpush.msra.mxu2 %v599_v47  ;;  %v624_v45 = vld [vmem:[#allocation8 + $0x708] sm:$0xff]  ;;  %v726_v46 = vld [vmem:[#allocation8 + $0xa38] sm:$0xff] }
  0x9f   : > { %1115 = vmatpush.msra.mxu3 %v701_v49  ;;  %1028 = vmatpush.msra.mxu0 %v413_v52  ;;  %v438_v47 = vld [vmem:[#allocation8 + $0x138] sm:$0xff] }
  0xa0   : > { %1057 = vmatpush.msra.mxu1 %v509_v53  ;;  %1088 = vmatpush.msra.mxu2 %v593_v54  ;;  %v534_v49 = vld [vmem:[#allocation8 + $0x438] sm:$0xff]  ;;  %v720_v53 = vld [vmem:[#allocation8 + $0xa08] sm:$0xff] }
  0xa1   : > { %1116 = vmatpush.msra.mxu3 %v695_v55  ;;  %1029 = vmatpush.msra.mxu0 %v407_v57  ;;  %v618_v52 = vld [vmem:[#allocation8 + $0x6d8] sm:$0xff]  ;;  %v432_v54 = vld [vmem:[#allocation8 + $0x108] sm:$0xff] }
  0xa2   : > { %1058 = vmatpush.msra.mxu1 %v503_v58  ;;  %1089 = vmatmul.f32.vlgmr.msra.gmra.mxu2 %v2128_v4  ;;  %v528_v55 = vld [vmem:[#allocation8 + $0x408] sm:$0xff]  ;;  %v714_v58 = vld [vmem:[#allocation8 + $0x9d8] sm:$0xff] }
  0xa3   : > { %1117 = vmatpush.msra.mxu3 %v689_v59  ;;  %1189 = vmatpush.msrb.mxu2 %v684_v60  ;;  %v612_v57 = vld [vmem:[#allocation8 + $0x6a8] sm:$0xff]  ;;  %v522_v59 = vld [vmem:[#allocation8 + $0x3d8] sm:$0xff] }
  0xa4   : > { %1030 = vmatpush.msra.mxu0 %v401_v61  ;;  %1059 = vmatpush.msra.mxu1 %v497_v63  ;;  %v606_v60 = vld [vmem:[#allocation8 + $0x678] sm:$0xff]  ;;  %v708_v61 = vld [vmem:[#allocation8 + $0x9a8] sm:$0xff] }
  0xa5   : > { %1118 = vmatmul.f32.vlgmr.msra.gmra.mxu3 %v2133_v5  ;;  %1190 = vmatpush.msrb.mxu2 %v678_v0  ;;  %v420_v63 = vld [vmem:[#allocation8 + $0xa8] sm:$0xff] }
  0xa6   : > { %1218 = vmatpush.msrb.mxu3 %v780_v1  ;;  %1031 = vmatmul.f32.vlgmr.msra.gmra.mxu0 %v2118_v50  ;;  %v474_v50 = vld [vmem:[#allocation8 + $0x258] sm:$0xff]  ;;  %v516_v0 = vld [vmem:[#allocation8 + $0x3a8] sm:$0xff] }
  0xa7   : > { %1060 = vmatmul.f32.vlgmr.msra.gmra.mxu1 %v2143_v14  ;;  %1131 = vmatpush.msrb.mxu0 %v492_v2  ;;  %v600_v1 = vld [vmem:[#allocation8 + $0x648] sm:$0xff]  ;;  %v702_v2 = vld [vmem:[#allocation8 + $0x978] sm:$0xff] }
  0xa8   : > { %1160 = vmatpush.msrb.mxu1 %v588_v3  ;;  %1191 = vmatpush.msrb.mxu2 %v672_v6  ;;  %v414_v3 = vld [vmem:[#allocation8 + $0x78] sm:$0xff] }
  0xa9   : > { %1219 = vmatpush.msrb.mxu3 %v774_v7  ;;  %1132 = vmatpush.msrb.mxu0 %v486_v8  ;;  %v510_v6 = vld [vmem:[#allocation8 + $0x378] sm:$0xff]  ;;  %v696_v8 = vld [vmem:[#allocation8 + $0x948] sm:$0xff] }
  0xaa   : > { %1161 = vmatpush.msrb.mxu1 %v582_v9  ;;  %1192 = vmatpush.msrb.mxu2 %v666_v11  ;;  %v594_v7 = vld [vmem:[#allocation8 + $0x618] sm:$0xff]  ;;  %v408_v9 = vld [vmem:[#allocation8 + $0x48] sm:$0xff] }
  0xab   : > { %1220 = vmatpush.msrb.mxu3 %v768_v13  ;;  %1092 = vmatmul.f32.gmra.mxu2 %v2150_v25  ;;  %v504_v11 = vld [vmem:[#allocation8 + $0x348] sm:$0xff]  ;;  %v690_v13 = vld [vmem:[#allocation8 + $0x918] sm:$0xff] }
  0xac   : > { %1133 = vmatpush.msrb.mxu0 %v480_v15  ;;  %1162 = vmatpush.msrb.mxu1 %v576_v16  ;;  %v685_v15 = vld [vmem:[#allocation8 + $0x8f0] sm:$0xff]  ;;  %v498_v16 = vld [vmem:[#allocation8 + $0x318] sm:$0xff] }
  0xad   : > { %1193 = vmatpush.msrb.mxu2 %v660_v17  ;;  %1221 = vmatpush.msrb.mxu3 %v762_v18  ;;  %v679_v17 = vld [vmem:[#allocation8 + $0x8c0] sm:$0xff]  ;;  %v781_v18 = vld [vmem:[#allocation8 + $0xbf0] sm:$0xff] }
  0xae   : > { %1121 = vmatmul.f32.gmra.mxu3 %v2157_v31  ;;  %1134 = vmatpush.msrb.mxu0 %v474_v50  ;;  %v493_v50 = vld [vmem:[#allocation8 + $0x2f0] sm:$0xff] }
  0xaf   : > { %1163 = vmatpush.msrb.mxu1 %v570_v20  ;;  %1194 = vmatpush.msrb.mxu2 %v654_v21  ;;  %v589_v20 = vld [vmem:[#allocation8 + $0x5f0] sm:$0xff] }
  0xb0   : > { %1222 = vmatpush.msrb.mxu3 %v756_v22  ;;  %1034 = vmatmul.f32.gmra.mxu0 %v2121_v51  ;;  %v450_v51 = vld [vmem:[#allocation8 + $0x198] sm:$0xff]  ;;  %v673_v21 = vld [vmem:[#allocation8 + $0x890] sm:$0xff]  ;;  %v2233_v22 = vld [vmem:[%s2099_s30] sm:$0xff] }
  0xb1   : > { %1063 = vmatmul.f32.gmra.mxu1 %v2164_v37  ;;  %1135 = vmatpush.msrb.mxu0 %v468_v23  ;;  %v775_v23 = vld [vmem:[#allocation8 + $0xbc0] sm:$0xff] }
  0xb2   : > { %1164 = vmatpush.msrb.mxu1 %v564_v26  ;;  %1195 = vmatpush.msrb.mxu2 %v648_v27  ;;  %v487_v26 = vld [vmem:[#allocation8 + $0x2c0] sm:$0xff] }
  0xb3   : > { %1223 = vmatpush.msrb.mxu3 %v750_v28  ;;  %1136 = vmatpush.msrb.mxu0 %v462_v29  ;;  %v583_v27 = vld [vmem:[#allocation8 + $0x5c0] sm:$0xff]  ;;  %v769_v29 = vld [vmem:[#allocation8 + $0xb90] sm:$0xff] }
  0xb4   : > { %1165 = vmatpush.msrb.mxu1 %v558_v30  ;;  %1196 = vmatpush.msrb.mxu2 %v642_v32  ;;  %v667_v28 = vld [vmem:[#allocation8 + $0x860] sm:$0xff]  ;;  %v481_v30 = vld [vmem:[#allocation8 + $0x290] sm:$0xff] }
  0xb5   : > { %1224 = vmatpush.msrb.mxu3 %v744_v34  ;;  %1095 = vmatmul.f32.gmra.mxu2 %v2171_v48  ;;  %v577_v32 = vld [vmem:[#allocation8 + $0x590] sm:$0xff] }
  0xb6   : > { %1137 = vmatpush.msrb.mxu0 %v456_v35  ;;  %1166 = vmatpush.msrb.mxu1 %v552_v36  ;;  %v661_v34 = vld [vmem:[#allocation8 + $0x830] sm:$0xff]  ;;  %v763_v35 = vld [vmem:[#allocation8 + $0xb60] sm:$0xff] }
  0xb7   : > { %1197 = vmatpush.msrb.mxu2 %v636_v38  ;;  %1225 = vmatpush.msrb.mxu3 %v738_v39  ;;  %v475_v36 = vld [vmem:[#allocation8 + $0x260] sm:$0xff] }
  0xb8   : > { %1124 = vmatmul.f32.gmra.mxu3 %v2176_v56  ;;  %1138 = vmatpush.msrb.mxu0 %v450_v51  ;;  %v571_v39 = vld [vmem:[#allocation8 + $0x560] sm:$0xff] }
  0xb9   : > { %1167 = vmatpush.msrb.mxu1 %v546_v40  ;;  %1198 = vmatpush.msrb.mxu2 %v630_v41  ;;  %v655_v51 = vld [vmem:[#allocation8 + $0x800] sm:$0xff]  ;;  %v757_v41 = vld [vmem:[#allocation8 + $0xb30] sm:$0xff] }
  0xba   : > { %1226 = vmatpush.msrb.mxu3 %v732_v42  ;;  %1037 = vmatmul.f32.gmra.mxu0 %v2138_v10  ;;  %v426_v10 = vld [vmem:[#allocation8 + $0xd8] sm:$0xff] }
  0xbb   : > { %1066 = vmatmul.f32.gmra.mxu1 %v2181_v62  ;;  %1139 = vmatpush.msrb.mxu0 %v444_v43  ;;  %v469_v43 = vld [vmem:[#allocation8 + $0x230] sm:$0xff] }
  0xbc   : > { %1168 = vmatpush.msrb.mxu1 %v540_v44  ;;  %1199 = vmatpush.msrb.mxu2 %v624_v45  ;;  %v565_v45 = vld [vmem:[#allocation8 + $0x530] sm:$0xff] }
  0xbd   : > { %1227 = vmatpush.msrb.mxu3 %v726_v46  ;;  %1140 = vmatpush.msrb.mxu0 %v438_v47  ;;  %v649_v46 = vld [vmem:[#allocation8 + $0x7d0] sm:$0xff] }
  0xbe   : > { %1169 = vmatpush.msrb.mxu1 %v534_v49  ;;  %1200 = vmatpush.msrb.mxu2 %v618_v52  ;;  %v2240_v49 = vld [vmem:[%s2099_s30 + $0x8] sm:$0xff]  ;;  %v751_v52 = vld [vmem:[#allocation8 + $0xb00] sm:$0xff] }
  0xbf   : > { %1228 = vmatpush.msrb.mxu3 %v720_v53  ;;  %1098 = vmatmul.f32.gmra.mxu2 %v2186_v12  ;;  %v463_v53 = vld [vmem:[#allocation8 + $0x200] sm:$0xff] }
  0xc0   : > { %1141 = vmatpush.msrb.mxu0 %v432_v54  ;;  %1170 = vmatpush.msrb.mxu1 %v528_v55  ;;  %v559_v54 = vld [vmem:[#allocation8 + $0x500] sm:$0xff] }
  0xc1   : > { %1201 = vmatpush.msrb.mxu2 %v612_v57  ;;  %1229 = vmatpush.msrb.mxu3 %v714_v58  ;;  %v643_v55 = vld [vmem:[#allocation8 + $0x7a0] sm:$0xff]  ;;  %v745_v58 = vld [vmem:[#allocation8 + $0xad0] sm:$0xff] }
  0xc2   : > { %1127 = vmatmul.f32.gmra.mxu3 %v2190_v19  ;;  %1142 = vmatpush.msrb.mxu0 %v426_v10 }
  0xc3   : > { %1171 = vmatpush.msrb.mxu1 %v522_v59  ;;  %1202 = vmatpush.msrb.mxu2 %v606_v60  ;;  %v457_v59 = vld [vmem:[#allocation8 + $0x1d0] sm:$0xff] }
  0xc4   : > { %1230 = vmatpush.msrb.mxu3 %v708_v61  ;;  %1040 = vmatmul.f32.gmra.mxu0 %v2160_v33  ;;  %v402_v33 = vld [vmem:[#allocation8 + $0x18] sm:$0xff]  ;;  %v553_v60 = vld [vmem:[#allocation8 + $0x4d0] sm:$0xff] }
  0xc5   : > { %1069 = vmatmul.f32.gmra.mxu1 %v2194_v24  ;;  %1143 = vmatpush.msrb.mxu0 %v420_v63  ;;  %v637_v61 = vld [vmem:[#allocation8 + $0x770] sm:$0xff]  ;;  %v739_v63 = vld [vmem:[#allocation8 + $0xaa0] sm:$0xff] }
  0xc6   : > { %1172 = vmatpush.msrb.mxu1 %v516_v0  ;;  %1203 = vmatpush.msrb.mxu2 %v600_v1  ;;  %v451_v0 = vld [vmem:[#allocation8 + $0x1a0] sm:$0xff] }
  0xc7   : > { %1231 = vmatpush.msrb.mxu3 %v702_v2  ;;  %1144 = vmatpush.msrb.mxu0 %v414_v3  ;;  %v547_v2 = vld [vmem:[#allocation8 + $0x4a0] sm:$0xff] }
  0xc8   : > { %1173 = vmatpush.msrb.mxu1 %v510_v6  ;;  %1204 = vmatpush.msrb.mxu2 %v594_v7  ;;  %v631_v3 = vld [vmem:[#allocation8 + $0x740] sm:$0xff]  ;;  %v733_v7 = vld [vmem:[#allocation8 + $0xa70] sm:$0xff] }
  0xc9   : > { %1232 = vmatpush.msrb.mxu3 %v696_v8  ;;  %1145 = vmatpush.msrb.mxu0 %v408_v9  ;;  %v445_v9 = vld [vmem:[#allocation8 + $0x170] sm:$0xff] }
  0xca   : > { %1174 = vmatpush.msrb.mxu1 %v504_v11  ;;  %1205 = vmatmul.f32.vlgmr.msrb.gmra.mxu2 %v2128_v4 }
  0xcb   : > { %1233 = vmatpush.msrb.mxu3 %v690_v13  ;;  %1305 = vmatpush.msra.mxu2 %v685_v15  ;;  %v541_v13 = vld [vmem:[#allocation8 + $0x470] sm:$0xff] }
  0xcc   : > { %1146 = vmatpush.msrb.mxu0 %v402_v33  ;;  %1175 = vmatpush.msrb.mxu1 %v498_v16  ;;  %v625_v15 = vld [vmem:[#allocation8 + $0x710] sm:$0xff] }
  0xcd   : > { %1234 = vmatmul.f32.vlgmr.msrb.gmra.mxu3 %v2133_v5  ;;  %1306 = vmatpush.msra.mxu2 %v679_v17  ;;  %v2249_v16 = vld [vmem:[%s2099_s30 + $0x10] sm:$0xff]  ;;  %v727_v17 = vld [vmem:[#allocation8 + $0xa40] sm:$0xff] }
  0xce   : > { %1334 = vmatpush.msra.mxu3 %v781_v18  ;;  %1147 = vmatmul.f32.vlgmr.msrb.gmra.mxu0 %v2233_v22  ;;  %v439_v18 = vld [vmem:[#allocation8 + $0x140] sm:$0xff] }
  0xcf   : > { %1176 = vmatmul.f32.vlgmr.msrb.gmra.mxu1 %v2143_v14  ;;  %1247 = vmatpush.msra.mxu0 %v493_v50  ;;  %v535_v50 = vld [vmem:[#allocation8 + $0x440] sm:$0xff] }
  0xd0   : > { %1276 = vmatpush.msra.mxu1 %v589_v20  ;;  %1307 = vmatpush.msra.mxu2 %v673_v21  ;;  %v619_v20 = vld [vmem:[#allocation8 + $0x6e0] sm:$0xff] }
  0xd1   : > { %1335 = vmatpush.msra.mxu3 %v775_v23  ;;  %1248 = vmatpush.msra.mxu0 %v487_v26  ;;  %v721_v23 = vld [vmem:[#allocation8 + $0xa10] sm:$0xff] }
  0xd2   : > { %1277 = vmatpush.msra.mxu1 %v583_v27  ;;  %1308 = vmatpush.msra.mxu2 %v667_v28  ;;  %v433_v27 = vld [vmem:[#allocation8 + $0x110] sm:$0xff] }
  0xd3   : > { %1336 = vmatpush.msra.mxu3 %v769_v29  ;;  %1208 = vmatmul.f32.gmra.mxu2 %v2150_v25  ;;  %v800_v38 = vpop.f32.mrf.mxu0  ;;  %v529_v28 = vld [vmem:[#allocation8 + $0x410] sm:$0xff] }
  0xd4   : > { %1249 = vmatpush.msra.mxu0 %v481_v30  ;;  %1278 = vmatpush.msra.mxu1 %v577_v32  ;;  %v829_v40 = vpop.f32.mrf.mxu1  ;;  %v613_v29 = vld [vmem:[#allocation8 + $0x6b0] sm:$0xff]  ;;  %v715_v30 = vld [vmem:[#allocation8 + $0x9e0] sm:$0xff] }
  0xd5   : > { %1309 = vmatpush.msra.mxu2 %v661_v34  ;;  %1337 = vmatpush.msra.mxu3 %v763_v35  ;;  %v830_v42 = vadd.f32 %v829_v40, %v800_v38  ;;  %v427_v32 = vld [vmem:[#allocation8 + $0xe0] sm:$0xff]  ;;  %v421_v40 = vld [vmem:[#allocation8 + $0xb0] sm:$0xff] }
  0xd6   : > { %1237 = vmatmul.f32.gmra.mxu3 %v2157_v31  ;;  %1250 = vmatpush.msra.mxu0 %v475_v36  ;;  %v858_v44 = vpop.f32.mrf.mxu2  ;;  %v887_v57 = vpop.f32.mrf.mxu3  ;;  %v523_v35 = vld [vmem:[#allocation8 + $0x3e0] sm:$0xff] }
  0xd7   : > { %1279 = vmatpush.msra.mxu1 %v571_v39  ;;  %1310 = vmatpush.msra.mxu2 %v655_v51  ;;  %v859_v47 = vadd.f32 %v858_v44, %v830_v42  ;;  %v607_v36 = vld [vmem:[#allocation8 + $0x680] sm:$0xff]  ;;  %v709_v39 = vld [vmem:[#allocation8 + $0x9b0] sm:$0xff] }
  0xd8   : > { %1338 = vmatpush.msra.mxu3 %v757_v41  ;;  %1150 = vmatmul.f32.gmra.mxu0 %v2240_v49  ;;  %v517_v42 = vld [vmem:[#allocation8 + $0x3b0] sm:$0xff] }
  0xd9   : > { %1179 = vmatmul.f32.gmra.mxu1 %v2164_v37  ;;  %1251 = vmatpush.msra.mxu0 %v469_v43  ;;  %v2244_v10 = vadd.f32 %v887_v57, %v859_v47  ;;  %v601_v43 = vld [vmem:[#allocation8 + $0x650] sm:$0xff]  ;;  %v415_v47 = vld [vmem:[#allocation8 + $0x80] sm:$0xff] }
  0xda   : > { %1280 = vmatpush.msra.mxu1 %v565_v45  ;;  %1311 = vmatpush.msra.mxu2 %v649_v46  ;;  %v2258_v45 = vld [vmem:[%s2099_s30 + $0x18] sm:$0xff]  ;;  %v703_v46 = vld [vmem:[#allocation8 + $0x980] sm:$0xff]  ;;  %v409_v57 = vld [vmem:[#allocation8 + $0x50] sm:$0xff] }
  0xdb   : > { %1339 = vmatpush.msra.mxu3 %v751_v52  ;;  %1252 = vmatpush.msra.mxu0 %v463_v53  ;;  %v511_v52 = vld [vmem:[#allocation8 + $0x380] sm:$0xff] }
  0xdc   : > { %1281 = vmatpush.msra.mxu1 %v559_v54  ;;  %1312 = vmatpush.msra.mxu2 %v643_v55  ;;  %v595_v53 = vld [vmem:[#allocation8 + $0x620] sm:$0xff]  ;;  %v697_v55 = vld [vmem:[#allocation8 + $0x950] sm:$0xff] }
  0xdd   : > { %1340 = vmatpush.msra.mxu3 %v745_v58  ;;  %1211 = vmatmul.f32.gmra.mxu2 %v2171_v48  ;;  %v803_v1 = vpop.f32.mrf.mxu0 }
  0xde   : > { %1253 = vmatpush.msra.mxu0 %v457_v59  ;;  %1282 = vmatpush.msra.mxu1 %v553_v60  ;;  %v832_v6 = vpop.f32.mrf.mxu1  ;;  %v861_v11 = vpop.f32.mrf.mxu2  ;;  %v505_v59 = vld [vmem:[#allocation8 + $0x350] sm:$0xff]  ;;  %v691_v60 = vld [vmem:[#allocation8 + $0x920] sm:$0xff] }
  0xdf   : > { %1313 = vmatpush.msra.mxu2 %v637_v61  ;;  %1341 = vmatpush.msra.mxu3 %v739_v63  ;;  %v833_v8 = vadd.f32 %v832_v6, %v803_v1  ;;  %v686_v61 = vld [vmem:[#allocation8 + $0x8f8] sm:$0xff]  ;;  %v403_v63 = vld [vmem:[#allocation8 + $0x20] sm:$0xff] }
  0xe0   : > { %1240 = vmatmul.f32.gmra.mxu3 %v2176_v56  ;;  %1254 = vmatpush.msra.mxu0 %v451_v0  ;;  %v499_v0 = vld [vmem:[#allocation8 + $0x320] sm:$0xff]  ;;  %v782_v6 = vld [vmem:[#allocation8 + $0xbf8] sm:$0xff] }
  0xe1   : > { %1283 = vmatpush.msra.mxu1 %v547_v2  ;;  %1314 = vmatpush.msra.mxu2 %v631_v3  ;;  %v862_v33 = vadd.f32 %v861_v11, %v833_v8  ;;  %v890_v21 = vpop.f32.mrf.mxu3  ;;  %v680_v2 = vld [vmem:[#allocation8 + $0x8c8] sm:$0xff]  ;;  %v494_v8 = vld [vmem:[#allocation8 + $0x2f8] sm:$0xff] }
  0xe2   : > { %1342 = vmatpush.msra.mxu3 %v733_v7  ;;  %1153 = vmatmul.f32.gmra.mxu0 %v2249_v16  ;;  %v590_v11 = vld [vmem:[#allocation8 + $0x5f8] sm:$0xff] }
  0xe3   : > { %1182 = vmatmul.f32.gmra.mxu1 %v2181_v62  ;;  %1255 = vmatpush.msra.mxu0 %v445_v9  ;;  %v2253_v26 = vadd.f32 %v890_v21, %v862_v33  ;;  %v776_v33 = vld [vmem:[#allocation8 + $0xbc8] sm:$0xff]  ;;  %v770_v21 = vld [vmem:[#allocation8 + $0xb98] sm:$0xff] }
  0xe4   : > { %1284 = vmatpush.msra.mxu1 %v541_v13  ;;  %1315 = vmatpush.msra.mxu2 %v625_v15  ;;  %v674_v13 = vld [vmem:[#allocation8 + $0x898] sm:$0xff] }
  0xe5   : > { %1343 = vmatpush.msra.mxu3 %v727_v17  ;;  %1256 = vmatpush.msra.mxu0 %v439_v18  ;;  %v488_v17 = vld [vmem:[#allocation8 + $0x2c8] sm:$0xff] }
  0xe6   : > { %1285 = vmatpush.msra.mxu1 %v535_v50  ;;  %1316 = vmatpush.msra.mxu2 %v619_v20  ;;  %v584_v18 = vld [vmem:[#allocation8 + $0x5c8] sm:$0xff] }
  0xe7   : > { %1344 = vmatpush.msra.mxu3 %v721_v23  ;;  %1214 = vmatmul.f32.gmra.mxu2 %v2186_v12  ;;  %v806_v34 = vpop.f32.mrf.mxu0  ;;  %v668_v50 = vld [vmem:[#allocation8 + $0x868] sm:$0xff] }
  0xe8   : > { %1257 = vmatpush.msra.mxu0 %v433_v27  ;;  %1286 = vmatpush.msra.mxu1 %v529_v28  ;;  %v835_v38 = vpop.f32.mrf.mxu1  ;;  %v864_v41 = vpop.f32.mrf.mxu2  ;;  %v482_v27 = vld [vmem:[#allocation8 + $0x298] sm:$0xff] }
  0xe9   : > { %1317 = vmatpush.msra.mxu2 %v613_v29  ;;  %1345 = vmatpush.msra.mxu3 %v715_v30  ;;  %v836_v51 = vadd.f32 %v835_v38, %v806_v34  ;;  %v578_v28 = vld [vmem:[#allocation8 + $0x598] sm:$0xff]  ;;  %v764_v30 = vld [vmem:[#allocation8 + $0xb68] sm:$0xff] }
  0xea   : > { %1243 = vmatmul.f32.gmra.mxu3 %v2190_v19  ;;  %1258 = vmatpush.msra.mxu0 %v427_v32  ;;  %v662_v29 = vld [vmem:[#allocation8 + $0x838] sm:$0xff]  ;;  %v476_v32 = vld [vmem:[#allocation8 + $0x268] sm:$0xff] }
  0xeb   : > { %1287 = vmatpush.msra.mxu1 %v523_v35  ;;  %1318 = vmatpush.msra.mxu2 %v607_v36  ;;  %v865_v44 = vadd.f32 %v864_v41, %v836_v51  ;;  %v893_v54 = vpop.f32.mrf.mxu3  ;;  %v572_v35 = vld [vmem:[#allocation8 + $0x568] sm:$0xff]  ;;  %v470_v41 = vld [vmem:[#allocation8 + $0x238] sm:$0xff] }
  0xec   : > { %1346 = vmatpush.msra.mxu3 %v709_v39  ;;  %1156 = vmatmul.f32.gmra.mxu0 %v2258_v45  ;;  %v656_v36 = vld [vmem:[#allocation8 + $0x808] sm:$0xff]  ;;  %v758_v39 = vld [vmem:[#allocation8 + $0xb38] sm:$0xff] }
  0xed   : > { %1185 = vmatmul.f32.gmra.mxu1 %v2194_v24  ;;  %1259 = vmatpush.msra.mxu0 %v421_v40  ;;  %v2262_v58 = vadd.f32 %v893_v54, %v865_v44  ;;  %v644_v54 = vld [vmem:[#allocation8 + $0x7a8] sm:$0xff] }
  0xee   : > { %1288 = vmatpush.msra.mxu1 %v517_v42  ;;  %1319 = vmatpush.msra.mxu2 %v601_v43  ;;  %v566_v42 = vld [vmem:[#allocation8 + $0x538] sm:$0xff] }
  0xef   : > { %1347 = vmatpush.msra.mxu3 %v703_v46  ;;  %1260 = vmatpush.msra.mxu0 %v415_v47  ;;  %v650_v43 = vld [vmem:[#allocation8 + $0x7d8] sm:$0xff]  ;;  %v752_v46 = vld [vmem:[#allocation8 + $0xb08] sm:$0xff] }
  0xf0   : > { %1289 = vmatpush.msra.mxu1 %v511_v52  ;;  %1320 = vmatpush.msra.mxu2 %v595_v53  ;;  %v464_v47 = vld [vmem:[#allocation8 + $0x208] sm:$0xff] }
  0xf1   : > { %1348 = vmatpush.msra.mxu3 %v697_v55  ;;  %1261 = vmatpush.msra.mxu0 %v409_v57  ;;  %v809_v1 = vpop.f32.mrf.mxu0  ;;  %v560_v53 = vld [vmem:[#allocation8 + $0x508] sm:$0xff]  ;;  %v746_v57 = vld [vmem:[#allocation8 + $0xad8] sm:$0xff] }
  0xf2   : > { %1290 = vmatpush.msra.mxu1 %v505_v59  ;;  %1321 = vmatmul.f32.vlgmr.msra.gmra.mxu2 %v2128_v4  ;;  %v838_v3 = vpop.f32.mrf.mxu1  ;;  %v867_v9 = vpop.f32.mrf.mxu2  ;;  %v458_v59 = vld [vmem:[#allocation8 + $0x1d8] sm:$0xff] }
  0xf3   : > { %1349 = vmatpush.msra.mxu3 %v691_v60  ;;  %1421 = vmatpush.msrb.mxu2 %v686_v61  ;;  %v839_v7 = vadd.f32 %v838_v3, %v809_v1  ;;  %v554_v60 = vld [vmem:[#allocation8 + $0x4d8] sm:$0xff]  ;;  %v632_v3 = vld [vmem:[#allocation8 + $0x748] sm:$0xff] }
  0xf4   : > { %1262 = vmatpush.msra.mxu0 %v403_v63  ;;  %1291 = vmatpush.msra.mxu1 %v499_v0  ;;  %v638_v61 = vld [vmem:[#allocation8 + $0x778] sm:$0xff]  ;;  %v740_v63 = vld [vmem:[#allocation8 + $0xaa8] sm:$0xff] }
  0xf5   : > { %1350 = vmatmul.f32.vlgmr.msra.gmra.mxu3 %v2133_v5  ;;  %1422 = vmatpush.msrb.mxu2 %v680_v2  ;;  %v868_v15 = vadd.f32 %v867_v9, %v839_v7  ;;  %v896_v20 = vpop.f32.mrf.mxu3  ;;  %v452_v0 = vld [vmem:[#allocation8 + $0x1a8] sm:$0xff] }
  0xf6   : > { %1450 = vmatpush.msrb.mxu3 %v782_v6  ;;  %1263 = vmatmul.f32.vlgmr.msra.gmra.mxu0 %v2233_v22  ;;  %v548_v2 = vld [vmem:[#allocation8 + $0x4a8] sm:$0xff] }
  0xf7   : > { %1292 = vmatmul.f32.vlgmr.msra.gmra.mxu1 %v2143_v14  ;;  %1363 = vmatpush.msrb.mxu0 %v494_v8  ;;  %v2268_v23 = vadd.f32 %v896_v20, %v868_v15  ;;  %v734_v8 = vld [vmem:[#allocation8 + $0xa78] sm:$0xff]  ;;  %v536_v20 = vld [vmem:[#allocation8 + $0x448] sm:$0xff] }
  0xf8   : > { %1392 = vmatpush.msrb.mxu1 %v590_v11  ;;  %1423 = vmatpush.msrb.mxu2 %v674_v13  ;;  %v446_v11 = vld [vmem:[#allocation8 + $0x178] sm:$0xff] }
  0xf9   : > { %1451 = vmatpush.msrb.mxu3 %v776_v33  ;;  %1364 = vmatpush.msrb.mxu0 %v488_v17  ;;  %v542_v13 = vld [vmem:[#allocation8 + $0x478] sm:$0xff] }
  0xfa   : > { %1393 = vmatpush.msrb.mxu1 %v584_v18  ;;  %1424 = vmatpush.msrb.mxu2 %v668_v50  ;;  %v626_v15 = vld [vmem:[#allocation8 + $0x718] sm:$0xff]  ;;  %v728_v18 = vld [vmem:[#allocation8 + $0xa48] sm:$0xff] }
  0xfb   : > { %1452 = vmatpush.msrb.mxu3 %v770_v21  ;;  %1324 = vmatmul.f32.gmra.mxu2 %v2150_v25  ;;  %v916_v34 = vpop.f32.mrf.mxu0  ;;  %v440_v50 = vld [vmem:[#allocation8 + $0x148] sm:$0xff] }
  0xfc   : > { %1365 = vmatpush.msrb.mxu0 %v482_v27  ;;  %1394 = vmatpush.msrb.mxu1 %v578_v28  ;;  %v945_v38 = vpop.f32.mrf.mxu1  ;;  %v620_v21 = vld [vmem:[#allocation8 + $0x6e8] sm:$0xff]  ;;  %v722_v28 = vld [vmem:[#allocation8 + $0xa18] sm:$0xff] }
  0xfd   : > { %1425 = vmatpush.msrb.mxu2 %v662_v29  ;;  %1453 = vmatpush.msrb.mxu3 %v764_v30  ;;  %v946_v51 = vadd.f32 %v945_v38, %v916_v34  ;;  %v974_v40 = vpop.f32.mrf.mxu2  ;;  %v434_v29 = vld [vmem:[#allocation8 + $0x118] sm:$0xff]  ;;  %v716_v34 = vld [vmem:[#allocation8 + $0x9e8] sm:$0xff] }
  0xfe   : > { %1353 = vmatmul.f32.gmra.mxu3 %v2157_v31  ;;  %1366 = vmatpush.msrb.mxu0 %v476_v32  ;;  %v530_v30 = vld [vmem:[#allocation8 + $0x418] sm:$0xff]  ;;  %v524_v38 = vld [vmem:[#allocation8 + $0x3e8] sm:$0xff] }
  0xff   : > { %1395 = vmatpush.msrb.mxu1 %v572_v35  ;;  %1426 = vmatpush.msrb.mxu2 %v656_v36  ;;  %v975_v44 = vadd.f32 %v974_v40, %v946_v51  ;;  %v614_v32 = vld [vmem:[#allocation8 + $0x6b8] sm:$0xff]  ;;  %v428_v35 = vld [vmem:[#allocation8 + $0xe8] sm:$0xff] }
 0x100   : > { %1454 = vmatpush.msrb.mxu3 %v758_v39  ;;  %1266 = vmatmul.f32.gmra.mxu0 %v2240_v49  ;;  %v1003_v52 = vpop.f32.mrf.mxu3  ;;  %v608_v39 = vld [vmem:[#allocation8 + $0x688] sm:$0xff] }
 0x101   : > { %1295 = vmatmul.f32.gmra.mxu1 %v2164_v37  ;;  %1367 = vmatpush.msrb.mxu0 %v470_v41  ;;  %v2274_v55 = vadd.f32 %v1003_v52, %v975_v44  ;;  %v710_v41 = vld [vmem:[#allocation8 + $0x9b8] sm:$0xff] }
 0x102   : > { %1396 = vmatpush.msrb.mxu1 %v566_v42  ;;  %1427 = vmatpush.msrb.mxu2 %v650_v43  ;;  %v422_v43 = vld [vmem:[#allocation8 + $0xb8] sm:$0xff] }
 0x103   : > { %1455 = vmatpush.msrb.mxu3 %v752_v46  ;;  %1368 = vmatpush.msrb.mxu0 %v464_v47  ;;  %v518_v44 = vld [vmem:[#allocation8 + $0x3b8] sm:$0xff] }
 0x104   : > { %1397 = vmatpush.msrb.mxu1 %v560_v53  ;;  %1428 = vmatpush.msrb.mxu2 %v644_v54  ;;  %v602_v46 = vld [vmem:[#allocation8 + $0x658] sm:$0xff]  ;;  %v704_v53 = vld [vmem:[#allocation8 + $0x988] sm:$0xff] }
 0x105   : > { %1456 = vmatpush.msrb.mxu3 %v746_v57  ;;  %1327 = vmatmul.f32.gmra.mxu2 %v2171_v48  ;;  %v919_v1 = vpop.f32.mrf.mxu0  ;;  %v416_v54 = vld [vmem:[#allocation8 + $0x88] sm:$0xff] }
 0x106   : > { %1369 = vmatpush.msrb.mxu0 %v458_v59  ;;  %1398 = vmatpush.msrb.mxu1 %v554_v60  ;;  %v948_v6 = vpop.f32.mrf.mxu1  ;;  %v977_v7 = vpop.f32.mrf.mxu2  ;;  %v512_v57 = vld [vmem:[#allocation8 + $0x388] sm:$0xff] }
 0x107   : > { %1429 = vmatpush.msrb.mxu2 %v638_v61  ;;  %1457 = vmatpush.msrb.mxu3 %v740_v63  ;;  %v949_v9 = vadd.f32 %v948_v6, %v919_v1  ;;  %v596_v59 = vld [vmem:[#allocation8 + $0x628] sm:$0xff]  ;;  %v698_v61 = vld [vmem:[#allocation8 + $0x958] sm:$0xff] }
 0x108   : > { %1356 = vmatmul.f32.gmra.mxu3 %v2176_v56  ;;  %1370 = vmatpush.msrb.mxu0 %v452_v0  ;;  %v410_v63 = vld [vmem:[#allocation8 + $0x58] sm:$0xff]  ;;  %v692_v1 = vld [vmem:[#allocation8 + $0x928] sm:$0xff] }
 0x109   : > { %1399 = vmatpush.msrb.mxu1 %v548_v2  ;;  %1430 = vmatpush.msrb.mxu2 %v632_v3  ;;  %v978_v33 = vadd.f32 %v977_v7, %v949_v9  ;;  %v1006_v17 = vpop.f32.mrf.mxu3  ;;  %v506_v0 = vld [vmem:[#allocation8 + $0x358] sm:$0xff]  ;;  %v404_v2 = vld [vmem:[#allocation8 + $0x28] sm:$0xff] }
 0x10a   : > { %1458 = vmatpush.msrb.mxu3 %v734_v8  ;;  %1269 = vmatmul.f32.gmra.mxu0 %v2249_v16  ;;  %v500_v3 = vld [vmem:[#allocation8 + $0x328] sm:$0xff] }
 0x10b   : > { %1298 = vmatmul.f32.gmra.mxu1 %v2181_v62  ;;  %1371 = vmatpush.msrb.mxu0 %v446_v11  ;;  %v2280_v27 = vadd.f32 %v1006_v17, %v978_v33 }
 0x10c   : > { %1400 = vmatpush.msrb.mxu1 %v542_v13  ;;  %1431 = vmatpush.msrb.mxu2 %v626_v15 }
 0x10d   : > { %1459 = vmatpush.msrb.mxu3 %v728_v18  ;;  %1372 = vmatpush.msrb.mxu0 %v440_v50 }
 0x10e   : > { %1401 = vmatpush.msrb.mxu1 %v536_v20  ;;  %1432 = vmatpush.msrb.mxu2 %v620_v21 }
 0x10f   : > { %1460 = vmatpush.msrb.mxu3 %v722_v28  ;;  %1330 = vmatmul.f32.gmra.mxu2 %v2186_v12  ;;  %v922_v36 = vpop.f32.mrf.mxu0 }
 0x110   : > { %1373 = vmatpush.msrb.mxu0 %v434_v29  ;;  %1402 = vmatpush.msrb.mxu1 %v530_v30  ;;  %v951_v51 = vpop.f32.mrf.mxu1  ;;  %v980_v40 = vpop.f32.mrf.mxu2 }
 0x111   : > { %1433 = vmatpush.msrb.mxu2 %v614_v32  ;;  %1461 = vmatpush.msrb.mxu3 %v716_v34  ;;  %v952_v42 = vadd.f32 %v951_v51, %v922_v36 }
 0x112   : > { %1359 = vmatmul.f32.gmra.mxu3 %v2190_v19  ;;  %1374 = vmatpush.msrb.mxu0 %v428_v35 }
 0x113   : > { %1403 = vmatpush.msrb.mxu1 %v524_v38  ;;  %1434 = vmatpush.msrb.mxu2 %v608_v39  ;;  %v981_v47 = vadd.f32 %v980_v40, %v952_v42  ;;  %v1009_v52 = vpop.f32.mrf.mxu3 }
 0x114   : > { %1462 = vmatpush.msrb.mxu3 %v710_v41  ;;  %1272 = vmatmul.f32.gmra.mxu0 %v2258_v45 }
 0x115   : > { %1301 = vmatmul.f32.gmra.mxu1 %v2194_v24  ;;  %1375 = vmatpush.msrb.mxu0 %v422_v43  ;;  %v2286_v60 = vadd.f32 %v1009_v52, %v981_v47  ;;  %v1479_v43 = vmul.f32 %v2244_v10, %v2244_v10 }
 0x116   : > { %1404 = vmatpush.msrb.mxu1 %v518_v44  ;;  %1435 = vmatpush.msrb.mxu2 %v602_v46 }
 0x117   : > { %1463 = vmatpush.msrb.mxu3 %v704_v53  ;;  %1376 = vmatpush.msrb.mxu0 %v416_v54 }
 0x118   : > { %1405 = vmatpush.msrb.mxu1 %v512_v57  ;;  %1436 = vmatpush.msrb.mxu2 %v596_v59 }
 0x119   : > { %1464 = vmatpush.msrb.mxu3 %v698_v61  ;;  %1377 = vmatpush.msrb.mxu0 %v410_v63  ;;  %v925_v6 = vpop.f32.mrf.mxu0  ;;  %v1482_v63 = vmul.f32 %v2253_v26, %v2253_v26 }
 0x11a   : > { %1406 = vmatpush.msrb.mxu1 %v506_v0  ;;  %1437 = vmatmul.f32.vlgmr.msrb.gmra.mxu2 %v2128_v4  ;;  %v954_v7 = vpop.f32.mrf.mxu1  ;;  %v983_v8 = vpop.f32.mrf.mxu2 }
 0x11b   : > { %1465 = vmatpush.msrb.mxu3 %v692_v1  ;;  %1378 = vmatpush.msrb.mxu0 %v404_v2  ;;  %v955_v9 = vadd.f32 %v954_v7, %v925_v6 }
 0x11c   : > { %1407 = vmatpush.msrb.mxu1 %v500_v3  ;;  %1466 = vmatmul.f32.vlgmr.msrb.gmra.mxu3 %v2133_v5 }
 0x11d   : > { %1379 = vmatmul.f32.vlgmr.msrb.gmra.mxu0 %v2233_v22  ;;  %1408 = vmatmul.f32.vlgmr.msrb.gmra.mxu1 %v2143_v14  ;;  %v984_v11 = vadd.f32 %v983_v8, %v955_v9  ;;  %v1012_v13 = vpop.f32.mrf.mxu3 }
 0x11f   : > { %v2292_v15 = vadd.f32 %v1012_v13, %v984_v11  ;;  %v1485_v11 = vmul.f32 %v2262_v58, %v2262_v58 }
 0x122   : > { %1440 = vmatmul.f32.gmra.mxu2 %v2150_v25 }
 0x123   : > { %v1032_v33 = vpop.f32.mrf.mxu0 }
 0x124   : > { %1469 = vmatmul.f32.gmra.mxu3 %v2157_v31  ;;  %v1061_v4 = vpop.f32.mrf.mxu1 }
 0x125   : > { %1382 = vmatmul.f32.gmra.mxu0 %v2240_v49  ;;  %1411 = vmatmul.f32.gmra.mxu1 %v2164_v37  ;;  %v1062_v17 = vadd.f32 %v1061_v4, %v1032_v33  ;;  %v1090_v5 = vpop.f32.mrf.mxu2 }
 0x127   : > { %v1091_v18 = vadd.f32 %v1090_v5, %v1062_v17 }
 0x128   : > { %v1119_v22 = vpop.f32.mrf.mxu3 }
 0x129   : > { %v2298_v50 = vadd.f32 %v1119_v22, %v1091_v18 }
 0x12a   : > { %1443 = vmatmul.f32.gmra.mxu2 %v2171_v48 }
 0x12c   : > { %1472 = vmatmul.f32.gmra.mxu3 %v2176_v56 }
 0x12d   : > { %1385 = vmatmul.f32.gmra.mxu0 %v2249_v16  ;;  %1414 = vmatmul.f32.gmra.mxu1 %v2181_v62  ;;  %v1035_v14 = vpop.f32.mrf.mxu0 }
 0x12e   : > { %v1064_v25 = vpop.f32.mrf.mxu1  ;;  %v1093_v31 = vpop.f32.mrf.mxu2 }
 0x12f   : > { %v1065_v49 = vadd.f32 %v1064_v25, %v1035_v14  ;;  %v1488_v25 = vmul.f32 %v2268_v23, %v2268_v23 }
 0x131   : > { %v1094_v20 = vadd.f32 %v1093_v31, %v1065_v49  ;;  %v1122_v37 = vpop.f32.mrf.mxu3 }
 0x132   : > { %1446 = vmatmul.f32.gmra.mxu2 %v2186_v12 }
 0x133   : > { %v2305_v21 = vadd.f32 %v1122_v37, %v1094_v20 }
 0x134   : > { %1475 = vmatmul.f32.gmra.mxu3 %v2190_v19 }
 0x135   : > { %1388 = vmatmul.f32.gmra.mxu0 %v2258_v45  ;;  %1417 = vmatmul.f32.gmra.mxu1 %v2194_v24 }
 0x137   : > { %v1038_v48 = vpop.f32.mrf.mxu0 }
 0x138   : > { %v1067_v56 = vpop.f32.mrf.mxu1  ;;  %v1096_v16 = vpop.f32.mrf.mxu2 }
 0x139   : > { %v1068_v62 = vadd.f32 %v1067_v56, %v1038_v48 }
 0x13b   : > { %v1097_v28 = vadd.f32 %v1096_v16, %v1068_v62  ;;  %v1125_v29 = vpop.f32.mrf.mxu3 }
 0x13d   : > { %v2310_v30 = vadd.f32 %v1125_v29, %v1097_v28  ;;  %v1480_v28 = vmul.f32 %v2274_v55, %v2274_v55 }
 0x141   : > { %v1041_v32 = vpop.f32.mrf.mxu0 }
 0x142   : > { %v1070_v34 = vpop.f32.mrf.mxu1  ;;  %v1099_v12 = vpop.f32.mrf.mxu2 }
 0x143   : > { %v1071_v35 = vadd.f32 %v1070_v34, %v1041_v32 }
 0x145   : > { %v1100_v36 = vadd.f32 %v1099_v12, %v1071_v35  ;;  %v1128_v38 = vpop.f32.mrf.mxu3 }
 0x147   : > { %v2312_v19 = vadd.f32 %v1128_v38, %v1100_v36 }
 0x14b   : > { %v1148_v45 = vpop.f32.mrf.mxu0 }
 0x14c   : > { %v1177_v39 = vpop.f32.mrf.mxu1 }
 0x14d   : > { %v1178_v24 = vadd.f32 %v1177_v39, %v1148_v45  ;;  %v1206_v51 = vpop.f32.mrf.mxu2  ;;  %v1483_v39 = vmul.f32 %v2280_v27, %v2280_v27 }
 0x14f   : > { %v1207_v40 = vadd.f32 %v1206_v51, %v1178_v24 }
 0x150   : > { %v1235_v41 = vpop.f32.mrf.mxu3 }
 0x151   : > { %v1236_v42 = vadd.f32 %v1235_v41, %v1207_v40 }
 0x153   : > { %v1491_v44 = vmul.f32 %v1236_v42, %v1236_v42 }
 0x155   : > { %v1503_v46 = vadd.f32 %v1491_v44, %v1479_v43  ;;  %v1151_v47 = vpop.f32.mrf.mxu0 }
 0x156   : > { %v1180_v52 = vpop.f32.mrf.mxu1  ;;  %v1209_v53 = vpop.f32.mrf.mxu2 }
 0x157   : > { %1515 = vst [vmem:[%s2317_s20] sm:$0xff] %v1503_v46  ;;  %v1181_v54 = vadd.f32 %v1180_v52, %v1151_v47  ;;  %v1486_v47 = vmul.f32 %v2286_v60, %v2286_v60 }
 0x159   : > { %v1210_v57 = vadd.f32 %v1209_v53, %v1181_v54  ;;  %v1238_v59 = vpop.f32.mrf.mxu3 }
 0x15b   : > { %v1239_v61 = vadd.f32 %v1238_v59, %v1210_v57 }
 0x15d   : > { %v1494_v0 = vmul.f32 %v1239_v61, %v1239_v61 }
 0x15f   : > { %v1506_v10 = vadd.f32 %v1494_v0, %v1482_v63  ;;  %v1154_v1 = vpop.f32.mrf.mxu0 }
 0x160   : > { %v1183_v2 = vpop.f32.mrf.mxu1  ;;  %v1212_v3 = vpop.f32.mrf.mxu2 }
 0x161   : > { %1518 = vst [vmem:[%s2317_s20 + $0x18] sm:$0xff] %v1506_v10  ;;  %v1184_v6 = vadd.f32 %v1183_v2, %v1154_v1  ;;  %v1489_v10 = vmul.f32 %v2292_v15, %v2292_v15 }
 0x163   : > { %v1213_v7 = vadd.f32 %v1212_v3, %v1184_v6  ;;  %v1241_v8 = vpop.f32.mrf.mxu3 }
 0x165   : > { %v1242_v9 = vadd.f32 %v1241_v8, %v1213_v7 }
 0x167   : > { %v1497_v13 = vmul.f32 %v1242_v9, %v1242_v9 }
 0x169   : > { %v1509_v33 = vadd.f32 %v1497_v13, %v1485_v11  ;;  %v1157_v4 = vpop.f32.mrf.mxu0  ;;  %v1481_v13 = vmul.f32 %v2298_v50, %v2298_v50 }
 0x16a   : > { %v1186_v17 = vpop.f32.mrf.mxu1  ;;  %v1215_v26 = vpop.f32.mrf.mxu2 }
 0x16b   : > { %1521 = vst [vmem:[%s2317_s20 + $0x30] sm:$0xff] %v1509_v33  ;;  %v1187_v5 = vadd.f32 %v1186_v17, %v1157_v4 }
 0x16d   : > { %v1216_v18 = vadd.f32 %v1215_v26, %v1187_v5  ;;  %v1244_v22 = vpop.f32.mrf.mxu3 }
 0x16f   : > { %v1245_v14 = vadd.f32 %v1244_v22, %v1216_v18 }
 0x171   : > { %v1500_v31 = vmul.f32 %v1245_v14, %v1245_v14 }
 0x173   : > { %v1512_v49 = vadd.f32 %v1500_v31, %v1488_v25  ;;  %v1264_v20 = vpop.f32.mrf.mxu0  ;;  %v1484_v25 = vmul.f32 %v2305_v21, %v2305_v21 }
 0x174   : > { %v1293_v37 = vpop.f32.mrf.mxu1 }
 0x175   : > { %1524 = vst [vmem:[%s2317_s20 + $0x48] sm:$0xff] %v1512_v49  ;;  %v1294_v58 = vadd.f32 %v1293_v37, %v1264_v20  ;;  %v1322_v48 = vpop.f32.mrf.mxu2 }
 0x177   : > { %v1323_v56 = vadd.f32 %v1322_v48, %v1294_v58 }
 0x178   : > { %v1351_v16 = vpop.f32.mrf.mxu3 }
 0x179   : > { %v1352_v62 = vadd.f32 %v1351_v16, %v1323_v56 }
 0x17b   : > { %v1492_v29 = vmul.f32 %v1352_v62, %v1352_v62  ;;  %v1487_v62 = vmul.f32 %v2310_v30, %v2310_v30  ;;  %v1490_v30 = vmul.f32 %v2312_v19, %v2312_v19 }
 0x17d   : > { %v1504_v32 = vadd.f32 %v1492_v29, %v1480_v28  ;;  %v1267_v34 = vpop.f32.mrf.mxu0 }
 0x17e   : > { %v1296_v12 = vpop.f32.mrf.mxu1  ;;  %v1325_v23 = vpop.f32.mrf.mxu2 }
 0x17f   : > { %1516 = vst [vmem:[%s2317_s20 + $0x8] sm:$0xff] %v1504_v32  ;;  %v1297_v35 = vadd.f32 %v1296_v12, %v1267_v34 }
 0x181   : > { %v1326_v36 = vadd.f32 %v1325_v23, %v1297_v35  ;;  %v1354_v38 = vpop.f32.mrf.mxu3 }
 0x183   : > { %v1355_v45 = vadd.f32 %v1354_v38, %v1326_v36 }
 0x185   : > { %v1495_v24 = vmul.f32 %v1355_v45, %v1355_v45 }
 0x187   : > { %v1507_v51 = vadd.f32 %v1495_v24, %v1483_v39  ;;  %v1270_v40 = vpop.f32.mrf.mxu0 }
 0x188   : > { %v1299_v41 = vpop.f32.mrf.mxu1  ;;  %v1328_v55 = vpop.f32.mrf.mxu2 }
 0x189   : > { %1519 = vst [vmem:[%s2317_s20 + $0x20] sm:$0xff] %v1507_v51  ;;  %v1300_v42 = vadd.f32 %v1299_v41, %v1270_v40 }
 0x18b   : > { %v1329_v43 = vadd.f32 %v1328_v55, %v1300_v42  ;;  %v1357_v44 = vpop.f32.mrf.mxu3 }
 0x18d   : > { %v1358_v46 = vadd.f32 %v1357_v44, %v1329_v43 }
 0x18f   : > { %v1498_v52 = vmul.f32 %v1358_v46, %v1358_v46 }
 0x191   : > { %v1510_v53 = vadd.f32 %v1498_v52, %v1486_v47  ;;  %v1273_v54 = vpop.f32.mrf.mxu0 }
 0x192   : > { %v1302_v57 = vpop.f32.mrf.mxu1  ;;  %v1331_v27 = vpop.f32.mrf.mxu2 }
 0x193   : > { %1522 = vst [vmem:[%s2317_s20 + $0x38] sm:$0xff] %v1510_v53  ;;  %v1303_v59 = vadd.f32 %v1302_v57, %v1273_v54 }
 0x195   : > { %v1332_v61 = vadd.f32 %v1331_v27, %v1303_v59  ;;  %v1360_v63 = vpop.f32.mrf.mxu3 }
 0x197   : > { %v1361_v0 = vadd.f32 %v1360_v63, %v1332_v61 }
 0x199   : > { %v1501_v1 = vmul.f32 %v1361_v0, %v1361_v0 }
 0x19a   : > { %v1380_v2 = vpop.f32.mrf.mxu0  ;;  %v1409_v3 = vpop.f32.mrf.mxu1 }
 0x19b   : > { %v1513_v6 = vadd.f32 %v1501_v1, %v1489_v10  ;;  %v1410_v60 = vadd.f32 %v1409_v3, %v1380_v2 }
 0x19d   : > { %1525 = vst [vmem:[%s2317_s20 + $0x50] sm:$0xff] %v1513_v6  ;;  %v1438_v7 = vpop.f32.mrf.mxu2 }
 0x19e   : > { %v1439_v8 = vadd.f32 %v1438_v7, %v1410_v60 }
 0x19f   : > { %v1467_v9 = vpop.f32.mrf.mxu3 }
 0x1a0   : > { %v1468_v11 = vadd.f32 %v1467_v9, %v1439_v8 }
 0x1a2   : > { %v1493_v33 = vmul.f32 %v1468_v11, %v1468_v11  ;;  %v1383_v4 = vpop.f32.mrf.mxu0  ;;  %v1412_v17 = vpop.f32.mrf.mxu1 }
 0x1a3   : > { %v1413_v26 = vadd.f32 %v1412_v17, %v1383_v4 }
 0x1a4   : > { %v1505_v15 = vadd.f32 %v1493_v33, %v1481_v13 }
 0x1a5   : > { %v1441_v5 = vpop.f32.mrf.mxu2 }
 0x1a6   : > { %1517 = vst [vmem:[%s2317_s20 + $0x10] sm:$0xff] %v1505_v15  ;;  %v1442_v18 = vadd.f32 %v1441_v5, %v1413_v26 }
 0x1a7   : > { %v1470_v22 = vpop.f32.mrf.mxu3 }
 0x1a8   : > { %v1471_v14 = vadd.f32 %v1470_v22, %v1442_v18 }
 0x1aa   : > { %v1496_v31 = vmul.f32 %v1471_v14, %v1471_v14  ;;  %v1386_v49 = vpop.f32.mrf.mxu0  ;;  %v1415_v20 = vpop.f32.mrf.mxu1 }
 0x1ab   : > { %v1416_v37 = vadd.f32 %v1415_v20, %v1386_v49 }
 0x1ac   : > { %v1508_v50 = vadd.f32 %v1496_v31, %v1484_v25 }
 0x1ad   : > { %v1444_v58 = vpop.f32.mrf.mxu2 }
 0x1ae   : > { %1520 = vst [vmem:[%s2317_s20 + $0x28] sm:$0xff] %v1508_v50  ;;  %v1445_v48 = vadd.f32 %v1444_v58, %v1416_v37 }
 0x1af   : > { %v1473_v56 = vpop.f32.mrf.mxu3 }
 0x1b0   : > { %v1474_v16 = vadd.f32 %v1473_v56, %v1445_v48 }
 0x1b2   : > { %v1499_v28 = vmul.f32 %v1474_v16, %v1474_v16  ;;  %v1389_v29 = vpop.f32.mrf.mxu0  ;;  %v1418_v32 = vpop.f32.mrf.mxu1 }
 0x1b3   : > { %v1419_v21 = vadd.f32 %v1418_v32, %v1389_v29 }
 0x1b4   : > { %v1511_v34 = vadd.f32 %v1499_v28, %v1487_v62 }
 0x1b5   : > { %v1447_v12 = vpop.f32.mrf.mxu2 }
 0x1b6   : > { %1523 = vst [vmem:[%s2317_s20 + $0x40] sm:$0xff] %v1511_v34  ;;  %v1448_v23 = vadd.f32 %v1447_v12, %v1419_v21 }
 0x1b7   : > { %v1476_v35 = vpop.f32.mrf.mxu3 }
 0x1b8   : > { %v1477_v36 = vadd.f32 %v1476_v35, %v1448_v23 }
 0x1ba   : > { %v1502_v38 = vmul.f32 %v1477_v36, %v1477_v36 }
 0x1bc   : > { %v1514_v45 = vadd.f32 %v1502_v38, %v1490_v30 }
 0x1be   : > { %1526 = vst [vmem:[%s2317_s20 + $0x58] sm:$0xff] %v1514_v45 }
 0x1bf   : > { %1902 = shalt.err (!%p1899_p0)
}
 0x1c0   : > { %s1972_s19 = smov 384   ;;  %s1973_s30 = smov 24  }
 0x1c1   : > { %1705 = dma.vmem_to_hbm [thread:$0]  (%p2065_p5), %s1546_s15, 1536, %s1548_s4, %s1528_s6, %s1972_s19, %s1972_s19, %s1973_s30  }
 0x1c2 PF: > { %s1562_s16 = sand.u32 1, %s1945_s12   ;;  %p1719_p3 = pnand %p1682_p11, %p2039_p6 }
 0x1c3   : > { %s1563_s25 = scalar_lea.sflag [#allocation5], %s1562_s16 }
 0x1c4   : > { %p1720_p7 = pneg %p1719_p3 }
 0x1c6   : > { %1940 = dma.done.wait (%p1720_p7), %s1563_s25, 1536  }
 0x1c7   : > { %1942 = vsyncadd (%p1720_p7), %s1563_s25, 4294965760  ;;  %s22_s17 = sadd.s32 1, %s1965_s17   ;;  %s2408_s9 = sld [smem:[#allocation16_spill]] }
 0x1c8   : > { %p19_p9 = scmp.ge.s32.totalorder %s22_s17, 4   ;;  %s2409_s15 = sld [smem:[#allocation14_spill]] }
 0x1c9   : > { %s2410_s16 = sld [smem:[#allocation15_spill]]  ;;  %s2411_s12 = smov %s1949_s13 }
 0x1ca   : > { %s2412_s13 = smov %s1953_s14  ;;  %21 = sbr.rel (!%p19_p9) target bundleno = 10 (0xa), region = 95 }
 0x1cd   : > { %s2413_s14 = smov %s2408_s9 }
 0x1cf   :  { %1569 = vsyncpa [#allocation4], 1 }
 0x1d0   :  { %1571 = vsyncpa [#allocation4 + $0x1], 1 }
 0x1d1   :  { %1572 = vsyncpa [#allocation7], 1 }
 0x1d2   :  { %1574 = vsyncpa [#allocation7 + $0x1], 1 }
 0x1d3   :  { %1575 = vsyncpa [#allocation5], 1 }
 0x1d4   :  { %1577 = vsyncpa [#allocation5 + $0x1], 1 }

</bundles_post_ra>
